<compile_context>
chip_gen: v7x
topology: tpu7x:2x2x1
jax: 0.10.0
libtpu: 0.0.40
codegen_flags: <defaults>
</compile_context>

<pallas_src>
import functools

import jax
import jax.numpy as jnp
from jax.experimental import pallas as pl
from jax.experimental.pallas import tpu as pltpu


LANE = 128  # TPU lane width; padded feature dimension.

CFG = dict(img=16, patch=4, in_chans=3, dim=32, depth=2, heads=4,
           mlp_ratio=4, num_classes=10)


def _round_up(x, m):
    return (x + m - 1) // m * m


# ----------------------------- in-kernel helpers ----------------------------

def _layernorm_rows(x, g, b, dim_mask, inv_d, eps):
    """LayerNorm over the last axis of (R, Dp).  Columns >= d_real of x are
    zero (so full-row sums equal real-row sums); dim_mask zeroes the padded
    columns of (x - mu); g/b are zero-padded so padded output columns stay 0.
    Two-pass variance (E[(x-mu)^2]) for better precision than E[x^2]-mu^2."""
    mu = jnp.sum(x, axis=-1, keepdims=True) * inv_d
    xc = (x - mu) * dim_mask
    var = jnp.sum(xc * xc, axis=-1, keepdims=True) * inv_d
    return xc * jax.lax.rsqrt(var + eps) * g + b


# ------------------------------ fused kernel --------------------------------

def _fused_vit_kernel(patches_ref, pe_w_ref, pe_combo_ref,
                      ln1_g_ref, ln1_b_ref, qkv_w_ref, qkv_b_ref,
                      proj_w_ref, proj_b_ref, ln2_g_ref, ln2_b_ref,
                      fc1_w_ref, fc1_b_ref, fc2_w_ref, fc2_b_ref,
                      lnf_g_ref, lnf_b_ref, fc_w_ref, fc_b_ref,
                      feat_ref, logit_ref,
                      *, depth, heads, dh, d_real, n_real, eps):
    """Whole ViT forward for one batch element, entirely in VMEM/vregs."""
    f32, bf16 = jnp.float32, jnp.bfloat16
    inv_d = 1.0 / float(d_real)

    # -------- patch embed: matmul + (cls + pos + patch-bias) combo add -------
    # patches_ref[0]: (Np, 48) with row 0 (CLS slot) and padded rows zeroed.
    x = jnp.dot(patches_ref[0].astype(bf16), pe_w_ref[...],
                preferred_element_type=f32) + pe_combo_ref[...]      # (Np, Dp)
    np_, dp = x.shape

    # -------- constants hoisted out of the block loop (computed once) --------
    lane = jax.lax.broadcasted_iota(jnp.int32, (1, dp), 1)
    dim_mask = (lane < d_real).astype(f32)                           # (1, Dp)
    head_masks = [jnp.logical_and(lane >= h * dh,
                                  lane < (h + 1) * dh).astype(f32)
                  for h in range(heads)]                             # (1, Dp)
    key_pos = jax.lax.broadcasted_iota(jnp.int32, (1, np_), 1)
    key_mask = key_pos < n_real                                      # (1, Np)
    neg_big = jnp.float32(-1e30)

    # ----------------------------- transformer blocks ------------------------
    for blk in range(depth):
        # ---- MHSA (pre-LN) ----
        h1 = _layernorm_rows(x, ln1_g_ref[blk], ln1_b_ref[blk],
                             dim_mask, inv_d, eps)
        qkv = jnp.dot(h1.astype(bf16), qkv_w_ref[blk],
                      preferred_element_type=f32) + qkv_b_ref[blk]   # (Np,3Dp)
        # 128-lane-aligned slices (tile-aligned, no relayout).
        q = qkv[:, 0:dp]             # 1/sqrt(dh) already folded into weights
        k = qkv[:, dp:2 * dp]
        v = qkv[:, 2 * dp:3 * dp]

        # Head-stacked masked Q: rows [h*Np, (h+1)*Np) hold head h's queries
        # with only that head's 8 lanes nonzero -> one matmul gives all-head
        # scores (contraction over the full 128 lanes picks up head h only).
        q_st = jnp.concatenate([q * head_masks[h] for h in range(heads)],
                               axis=0)                               # (H*Np,Dp)
        s = jax.lax.dot_general(q_st.astype(bf16), k.astype(bf16),
                                (((1,), (1,)), ((), ())),
                                preferred_element_type=f32)          # (H*Np,Np)
        s = jnp.where(key_mask, s, neg_big)            # mask padded keys
        s = s - jnp.max(s, axis=-1, keepdims=True)     # single softmax chain
        p = jnp.exp(s)
        p = p * pl.reciprocal(jnp.sum(p, axis=-1, keepdims=True), approx=True)

        # One PV matmul for all heads; per-head row blocks are lane-masked to
        # the owning head's 8 lanes and summed (sublane-aligned slices only),
        # which reproduces the head concatenation without any lane shuffles.
        o_all = jnp.dot(p.astype(bf16), v.astype(bf16),
                        preferred_element_type=f32)                  # (H*Np,Dp)
        attn_cat = head_masks[0] * o_all[0:np_]
        for h in range(1, heads):
            attn_cat = attn_cat + head_masks[h] * o_all[h * np_:(h + 1) * np_]

        attn = jnp.dot(attn_cat.astype(bf16), proj_w_ref[blk],
                       preferred_element_type=f32) + proj_b_ref[blk]
        x = x + attn                                                 # residual 1

        # ---- MLP (pre-LN) ----
        h2 = _layernorm_rows(x, ln2_g_ref[blk], ln2_b_ref[blk],
                             dim_mask, inv_d, eps)
        h2 = jnp.dot(h2.astype(bf16), fc1_w_ref[blk],
                     preferred_element_type=f32) + fc1_b_ref[blk]
        # TODO(synk): timm's default GELU is the exact erf form; tanh
        # approximation is used for guaranteed Mosaic lowering (tiny delta).
        h2 = jax.nn.gelu(h2, approximate=True)
        h2 = jnp.dot(h2.astype(bf16), fc2_w_ref[blk],
                     preferred_element_type=f32) + fc2_b_ref[blk]
        x = x + h2                                                   # residual 2

    # -------- final LN on CLS token + SimpleLinear fc head --------
    cls = x[0:1, :]
    f = _layernorm_rows(cls, lnf_g_ref[...], lnf_b_ref[...],
                        dim_mask, inv_d, eps)
    feat_ref[0] = f                                                  # (1, 128)
    logit_ref[0] = jnp.dot(f.astype(bf16), fc_w_ref[...],
                           preferred_element_type=f32) + fc_b_ref[...]


# ----------------------------- model forward --------------------------------

def vit_forward_fused(pp, x_nchw, cfg):
    B, C, H, W = x_nchw.shape
    p = cfg["patch"]
    nh, nw = H // p, W // p
    n_patches = nh * nw
    patch_dim = C * p * p
    n_tokens = n_patches + 1
    NP = _round_up(n_tokens, 8)
    D = cfg["dim"]
    heads = cfg["heads"]
    dh = D // heads
    depth = cfg["depth"]

    # Patchify (kernel=stride=p conv == flatten patches + matmul).  Patch rows
    # are pre-placed at token rows 1..n_patches (row 0 = CLS slot, tail = pad),
    # so the kernel never concatenates rows.  Last dim stays 48 (no lane pad).
    patches = x_nchw.reshape(B, C, nh, p, nw, p).transpose(0, 2, 4, 1, 3, 5)
    patches = patches.reshape(B, n_patches, patch_dim).astype(jnp.float32)
    patches = jnp.pad(patches, ((0, 0), (1, NP - n_tokens), (0, 0)))

    def const_spec(shape):
        nd = len(shape)
        return pl.BlockSpec(shape, lambda i, _nd=nd: (0,) * _nd)

    kernel = functools.partial(_fused_vit_kernel, depth=depth, heads=heads,
                               dh=dh, d_real=D, n_real=n_tokens, eps=1e-6)

    feat_pad, logit_pad = pl.pallas_call(
        kernel,
        grid=(B,),
        in_specs=[
            pl.BlockSpec((1, NP, patch_dim), lambda i: (i, 0, 0)),
            const_spec(pp["pe_w"].shape),
            const_spec(pp["pe_combo"].shape),
            const_spec(pp["ln1_g"].shape),
            const_spec(pp["ln1_b"].shape),
            const_spec(pp["qkv_w"].shape),
            const_spec(pp["qkv_b"].shape),
            const_spec(pp["proj_w"].shape),
            const_spec(pp["proj_b"].shape),
            const_spec(pp["ln2_g"].shape),
            const_spec(pp["ln2_b"].shape),
            const_spec(pp["fc1_w"].shape),
            const_spec(pp["fc1_b"].shape),
            const_spec(pp["fc2_w"].shape),
            const_spec(pp["fc2_b"].shape),
            const_spec(pp["lnf_g"].shape),
            const_spec(pp["lnf_b"].shape),
            const_spec(pp["fc_w"].shape),
            const_spec(pp["fc_b"].shape),
        ],
        out_specs=[
            pl.BlockSpec((1, 1, LANE), lambda i: (i, 0, 0)),
            pl.BlockSpec((1, 1, LANE), lambda i: (i, 0, 0)),
        ],
        out_shape=(jax.ShapeDtypeStruct((B, 1, LANE), jnp.float32),
                   jax.ShapeDtypeStruct((B, 1, LANE), jnp.float32)),
        compiler_params=pltpu.CompilerParams(
            dimension_semantics=("parallel",)),
    )(patches, pp["pe_w"], pp["pe_combo"], pp["ln1_g"], pp["ln1_b"],
      pp["qkv_w"], pp["qkv_b"], pp["proj_w"], pp["proj_b"],
      pp["ln2_g"], pp["ln2_b"], pp["fc1_w"], pp["fc1_b"],
      pp["fc2_w"], pp["fc2_b"], pp["lnf_g"], pp["lnf_b"],
      pp["fc_w"], pp["fc_b"])

    # Lane-dense kernel outputs; narrow slices happen here in XLA.
    features = feat_pad[:, 0, :D]
    logits = logit_pad[:, 0, :cfg["num_classes"]]
    return features, logits


def incremental_net_forward(prepared_params, x_nchw, cfg=CFG):
    """IncrementalNet.forward (model_type='vit', gradcam=False)."""
    features, logits = vit_forward_fused(prepared_params, x_nchw, cfg)
    return {"logits": logits, "features": features}
    # TODO(synk): gradcam hooks / update_fc / weight_align / copy / freeze are
    # training-time mutation & autograd-hook machinery, not forward compute.


# --------------------------- parameters --------------------------------------

def init_params(key, cfg):
    """Deterministic params in the PyTorch layouts (nn.Linear weight is
    (out_features, in_features); LN/bias params are 1-D)."""
    D = cfg["dim"]
    C = cfg["in_chans"]
    p = cfg["patch"]
    n_tokens = (cfg["img"] // p) ** 2 + 1
    hidden = cfg["mlp_ratio"] * D

    def nrm(k, shape, s=0.02):
        return s * jax.random.normal(k, shape, dtype=jnp.float32)

    keys = jax.random.split(key, 4 + cfg["depth"])
    backbone = dict(
        patch_w=nrm(keys[0], (D, C * p * p)),
        patch_b=jnp.zeros((D,), jnp.float32),
        cls_token=nrm(keys[1], (1, 1, D)),
        pos_embed=nrm(keys[2], (1, n_tokens, D)),
        ln_g=jnp.ones((D,), jnp.float32),
        ln_b=jnp.zeros((D,), jnp.float32),
        blocks=[],
    )
    for i in range(cfg["depth"]):
        bk = jax.random.split(keys[4 + i], 4)
        backbone["blocks"].append(dict(
            ln1_g=jnp.ones((D,), jnp.float32), ln1_b=jnp.zeros((D,), jnp.float32),
            qkv_w=nrm(bk[0], (3 * D, D)), qkv_b=jnp.zeros((3 * D,), jnp.float32),
            proj_w=nrm(bk[1], (D, D)), proj_b=jnp.zeros((D,), jnp.float32),
            ln2_g=jnp.ones((D,), jnp.float32), ln2_b=jnp.zeros((D,), jnp.float32),
            fc1_w=nrm(bk[2], (hidden, D)), fc1_b=jnp.zeros((hidden,), jnp.float32),
            fc2_w=nrm(bk[3], (D, hidden)), fc2_b=jnp.zeros((D,), jnp.float32),
        ))
    fc_key = jax.random.split(keys[3], 2)
    return dict(
        backbone=backbone,
        fc_w=nrm(fc_key[0], (cfg["num_classes"], D)),   # SimpleLinear weight
        fc_b=jnp.zeros((cfg["num_classes"],), jnp.float32),
    )


def _pad2(a, rows, cols, dtype):
    r, c = a.shape
    return jnp.pad(a, ((0, rows - r), (0, cols - c))).astype(dtype)


def _pad_vec(v, cols):
    return jnp.pad(v.reshape(1, -1),
                   ((0, 0), (0, cols - v.shape[0]))).astype(jnp.float32)


def _linear_wt(w_torch, kp, np_out):
    """PyTorch (out, in) weight -> transposed (in, out), zero-padded, bf16."""
    return _pad2(w_torch.T, kp, np_out, jnp.bfloat16)


def prepare_params(params, cfg):
    """One-time conversion to the padded / transposed / bf16 kernel layout."""
    D = cfg["dim"]
    C = cfg["in_chans"]
    p = cfg["patch"]
    patch_dim = C * p * p
    n_patches = (cfg["img"] // p) ** 2
    n_tokens = n_patches + 1
    NP = _round_up(n_tokens, 8)
    hidden = cfg["mlp_ratio"] * D
    HP = _round_up(hidden, LANE)
    NCP = _round_up(cfg["num_classes"], LANE)
    heads = cfg["heads"]
    dh = D // heads
    scale = float(dh) ** -0.5
    bb = params["backbone"]

    # Patch-embed weight (48, 128) bf16; cls token + pos embed + patch bias
    # folded into one (NP, 128) f32 combo slab added after the matmul.
    pe_w = _linear_wt(bb["patch_w"], patch_dim, LANE)
    combo = jnp.zeros((NP, LANE), jnp.float32)
    combo = combo.at[:n_tokens, :D].set(bb["pos_embed"][0])
    combo = combo.at[0, :D].add(bb["cls_token"][0, 0])
    combo = combo.at[1:n_tokens, :D].add(bb["patch_b"])

    def prep_block(blk):
        wq, wk, wv = jnp.split(blk["qkv_w"], 3, axis=0)      # each (D, D)
        bq, bk_, bv = jnp.split(blk["qkv_b"], 3)
        # Fold 1/sqrt(dh) attention scale into the Q projection.
        qkv_w = jnp.concatenate(
            [_linear_wt(wq * scale, LANE, LANE), _linear_wt(wk, LANE, LANE),
             _linear_wt(wv, LANE, LANE)], axis=1)            # (Dp, 3*Dp) bf16
        qkv_b = jnp.concatenate(
            [_pad_vec(bq * scale, LANE), _pad_vec(bk_, LANE),
             _pad_vec(bv, LANE)], axis=1)
        return dict(
            ln1_g=_pad_vec(blk["ln1_g"], LANE), ln1_b=_pad_vec(blk["ln1_b"], LANE),
            qkv_w=qkv_w, qkv_b=qkv_b,
            proj_w=_linear_wt(blk["proj_w"], LANE, LANE),
            proj_b=_pad_vec(blk["proj_b"], LANE),
            ln2_g=_pad_vec(blk["ln2_g"], LANE), ln2_b=_pad_vec(blk["ln2_b"], LANE),
            fc1_w=_linear_wt(blk["fc1_w"], LANE, HP),
            fc1_b=_pad_vec(blk["fc1_b"], HP),
            fc2_w=_linear_wt(blk["fc2_w"], HP, LANE),
            fc2_b=_pad_vec(blk["fc2_b"], LANE),
        )

    blocks = [prep_block(b) for b in bb["blocks"]]

    def stack(name):
        return jnp.stack([b[name] for b in blocks], axis=0)

    return dict(
        pe_w=pe_w, pe_combo=combo,
        ln1_g=stack("ln1_g"), ln1_b=stack("ln1_b"),
        qkv_w=stack("qkv_w"), qkv_b=stack("qkv_b"),
        proj_w=stack("proj_w"), proj_b=stack("proj_b"),
        ln2_g=stack("ln2_g"), ln2_b=stack("ln2_b"),
        fc1_w=stack("fc1_w"), fc1_b=stack("fc1_b"),
        fc2_w=stack("fc2_w"), fc2_b=stack("fc2_b"),
        lnf_g=_pad_vec(bb["ln_g"], LANE), lnf_b=_pad_vec(bb["ln_b"], LANE),
        fc_w=_linear_wt(params["fc_w"], LANE, NCP),
        fc_b=_pad_vec(params["fc_b"], NCP),
    )


# --------------------------------- main --------------------------------------

if __name__ == "__main__":
    key = jax.random.PRNGKey(0)
    k_param, k_x = jax.random.split(key)
    torch_layout_params = init_params(k_param, CFG)
    params = prepare_params(torch_layout_params, CFG)   # one-time prep

    # PyTorch-convention NCHW input.
    x = jax.random.normal(k_x, (2, CFG["in_chans"], CFG["img"], CFG["img"]),
                          dtype=jnp.float32)

    fwd = jax.jit(incremental_net_forward)
    out = fwd(params, x)
    jax.block_until_ready(out["logits"])
    jax.block_until_ready(out["features"])

    assert out["features"].shape == (2, CFG["dim"])
    assert out["logits"].shape == (2, CFG["num_classes"])
    assert bool(jnp.all(jnp.isfinite(out["logits"])))
    assert bool(jnp.all(jnp.isfinite(out["features"])))
    print("KERNEL_OK")
</pallas_src>

<mosaic_0001>
module attributes {stable_mosaic.version = 11 : i64} {
  func.func @_fused_vit_kernel(%arg0: i32, %arg1: memref<1x24x48xf32, #tpu.memory_space<vmem>>, %arg2: memref<48x128xbf16, #tpu.memory_space<vmem>>, %arg3: memref<24x128xf32, #tpu.memory_space<vmem>>, %arg4: memref<2x1x128xf32, #tpu.memory_space<vmem>>, %arg5: memref<2x1x128xf32, #tpu.memory_space<vmem>>, %arg6: memref<2x128x384xbf16, #tpu.memory_space<vmem>>, %arg7: memref<2x1x384xf32, #tpu.memory_space<vmem>>, %arg8: memref<2x128x128xbf16, #tpu.memory_space<vmem>>, %arg9: memref<2x1x128xf32, #tpu.memory_space<vmem>>, %arg10: memref<2x1x128xf32, #tpu.memory_space<vmem>>, %arg11: memref<2x1x128xf32, #tpu.memory_space<vmem>>, %arg12: memref<2x128x128xbf16, #tpu.memory_space<vmem>>, %arg13: memref<2x1x128xf32, #tpu.memory_space<vmem>>, %arg14: memref<2x128x128xbf16, #tpu.memory_space<vmem>>, %arg15: memref<2x1x128xf32, #tpu.memory_space<vmem>>, %arg16: memref<1x128xf32, #tpu.memory_space<vmem>>, %arg17: memref<1x128xf32, #tpu.memory_space<vmem>>, %arg18: memref<128x128xbf16, #tpu.memory_space<vmem>>, %arg19: memref<1x128xf32, #tpu.memory_space<vmem>>, %arg20: memref<1x1x128xf32, #tpu.memory_space<vmem>>, %arg21: memref<1x1x128xf32, #tpu.memory_space<vmem>>) attributes {dimension_semantics = [#tpu.dimension_semantics<parallel>], iteration_bounds = array<i64: 2>, scalar_prefetch = 0 : i64, scratch_operands = 0 : i64, tpu.core_type = #tpu.core_type<tc>, window_params = [{transform_indices = @transform_0, window_bounds = array<i64: 1, 24, 48>}, {pipeline_mode = #tpu.pipeline_mode<synchronous>, transform_indices = @transform_1, window_bounds = array<i64: 48, 128>}, {pipeline_mode = #tpu.pipeline_mode<synchronous>, transform_indices = @transform_2, window_bounds = array<i64: 24, 128>}, {pipeline_mode = #tpu.pipeline_mode<synchronous>, transform_indices = @transform_3, window_bounds = array<i64: 2, 1, 128>}, {pipeline_mode = #tpu.pipeline_mode<synchronous>, transform_indices = @transform_4, window_bounds = array<i64: 2, 1, 128>}, {pipeline_mode = #tpu.pipeline_mode<synchronous>, transform_indices = @transform_5, window_bounds = array<i64: 2, 128, 384>}, {pipeline_mode = #tpu.pipeline_mode<synchronous>, transform_indices = @transform_6, window_bounds = array<i64: 2, 1, 384>}, {pipeline_mode = #tpu.pipeline_mode<synchronous>, transform_indices = @transform_7, window_bounds = array<i64: 2, 128, 128>}, {pipeline_mode = #tpu.pipeline_mode<synchronous>, transform_indices = @transform_8, window_bounds = array<i64: 2, 1, 128>}, {pipeline_mode = #tpu.pipeline_mode<synchronous>, transform_indices = @transform_9, window_bounds = array<i64: 2, 1, 128>}, {pipeline_mode = #tpu.pipeline_mode<synchronous>, transform_indices = @transform_10, window_bounds = array<i64: 2, 1, 128>}, {pipeline_mode = #tpu.pipeline_mode<synchronous>, transform_indices = @transform_11, window_bounds = array<i64: 2, 128, 128>}, {pipeline_mode = #tpu.pipeline_mode<synchronous>, transform_indices = @transform_12, window_bounds = array<i64: 2, 1, 128>}, {pipeline_mode = #tpu.pipeline_mode<synchronous>, transform_indices = @transform_13, window_bounds = array<i64: 2, 128, 128>}, {pipeline_mode = #tpu.pipeline_mode<synchronous>, transform_indices = @transform_14, window_bounds = array<i64: 2, 1, 128>}, {pipeline_mode = #tpu.pipeline_mode<synchronous>, transform_indices = @transform_15, window_bounds = array<i64: 1, 128>}, {pipeline_mode = #tpu.pipeline_mode<synchronous>, transform_indices = @transform_16, window_bounds = array<i64: 1, 128>}, {pipeline_mode = #tpu.pipeline_mode<synchronous>, transform_indices = @transform_17, window_bounds = array<i64: 128, 128>}, {pipeline_mode = #tpu.pipeline_mode<synchronous>, transform_indices = @transform_18, window_bounds = array<i64: 1, 128>}, {transform_indices = @transform_19, window_bounds = array<i64: 1, 1, 128>}, {transform_indices = @transform_20, window_bounds = array<i64: 1, 1, 128>}]} {
    %c0 = arith.constant 0 : index
    %c0_0 = arith.constant 0 : index
    %c0_1 = arith.constant 0 : index
    %0 = vector.load %arg1[%c0, %c0_0, %c0_1] : memref<1x24x48xf32, #tpu.memory_space<vmem>>, vector<1x24x48xf32>
    %1 = vector.shape_cast %0 : vector<1x24x48xf32> to vector<24x48xf32>
    %2 = arith.truncf %1 : vector<24x48xf32> to vector<24x48xbf16>
    %c0_2 = arith.constant 0 : index
    %c0_3 = arith.constant 0 : index
    %3 = vector.load %arg2[%c0_2, %c0_3] : memref<48x128xbf16, #tpu.memory_space<vmem>>, vector<48x128xbf16>
    %cst = arith.constant dense<0.000000e+00> : vector<24x128xf32>
    %4 = tpu.matmul %2, %3, %cst {dimension_numbers = #tpu.dot_dimension_numbers<[1], [0], [0], [1], [0, 0, 1, 1], [], []>} : vector<24x48xbf16>, vector<48x128xbf16>, vector<24x128xf32> -> vector<24x128xf32>
    %c0_4 = arith.constant 0 : index
    %c0_5 = arith.constant 0 : index
    %5 = vector.load %arg3[%c0_4, %c0_5] : memref<24x128xf32, #tpu.memory_space<vmem>>, vector<24x128xf32>
    %6 = arith.addf %4, %5 : vector<24x128xf32>
    %7 = tpu.iota {dimensions = array<i32: 1>} : vector<1x128xi32>
    %c32_i32 = arith.constant 32 : i32
    %8 = vector.broadcast %c32_i32 : i32 to vector<1x128xi32>
    %9 = arith.cmpi slt, %7, %8 : vector<1x128xi32>
    %10 = arith.extui %9 : vector<1x128xi1> to vector<1x128xi32>
    %11 = arith.sitofp %10 : vector<1x128xi32> to vector<1x128xf32>
    %c0_i32 = arith.constant 0 : i32
    %12 = vector.broadcast %c0_i32 : i32 to vector<1x128xi32>
    %13 = arith.cmpi sge, %7, %12 : vector<1x128xi32>
    %c8_i32 = arith.constant 8 : i32
    %14 = vector.broadcast %c8_i32 : i32 to vector<1x128xi32>
    %15 = arith.cmpi slt, %7, %14 : vector<1x128xi32>
    %16 = arith.andi %13, %15 : vector<1x128xi1>
    %17 = arith.extui %16 : vector<1x128xi1> to vector<1x128xi32>
    %18 = arith.sitofp %17 : vector<1x128xi32> to vector<1x128xf32>
    %c8_i32_6 = arith.constant 8 : i32
    %19 = vector.broadcast %c8_i32_6 : i32 to vector<1x128xi32>
    %20 = arith.cmpi sge, %7, %19 : vector<1x128xi32>
    %c16_i32 = arith.constant 16 : i32
    %21 = vector.broadcast %c16_i32 : i32 to vector<1x128xi32>
    %22 = arith.cmpi slt, %7, %21 : vector<1x128xi32>
    %23 = arith.andi %20, %22 : vector<1x128xi1>
    %24 = arith.extui %23 : vector<1x128xi1> to vector<1x128xi32>
    %25 = arith.sitofp %24 : vector<1x128xi32> to vector<1x128xf32>
    %c16_i32_7 = arith.constant 16 : i32
    %26 = vector.broadcast %c16_i32_7 : i32 to vector<1x128xi32>
    %27 = arith.cmpi sge, %7, %26 : vector<1x128xi32>
    %c24_i32 = arith.constant 24 : i32
    %28 = vector.broadcast %c24_i32 : i32 to vector<1x128xi32>
    %29 = arith.cmpi slt, %7, %28 : vector<1x128xi32>
    %30 = arith.andi %27, %29 : vector<1x128xi1>
    %31 = arith.extui %30 : vector<1x128xi1> to vector<1x128xi32>
    %32 = arith.sitofp %31 : vector<1x128xi32> to vector<1x128xf32>
    %c24_i32_8 = arith.constant 24 : i32
    %33 = vector.broadcast %c24_i32_8 : i32 to vector<1x128xi32>
    %34 = arith.cmpi sge, %7, %33 : vector<1x128xi32>
    %c32_i32_9 = arith.constant 32 : i32
    %35 = vector.broadcast %c32_i32_9 : i32 to vector<1x128xi32>
    %36 = arith.cmpi slt, %7, %35 : vector<1x128xi32>
    %37 = arith.andi %34, %36 : vector<1x128xi1>
    %38 = arith.extui %37 : vector<1x128xi1> to vector<1x128xi32>
    %39 = arith.sitofp %38 : vector<1x128xi32> to vector<1x128xf32>
    %40 = tpu.iota {dimensions = array<i32: 1>} : vector<1x24xi32>
    %c17_i32 = arith.constant 17 : i32
    %41 = vector.broadcast %c17_i32 : i32 to vector<1x24xi32>
    %42 = arith.cmpi slt, %40, %41 : vector<1x24xi32>
    %c0_10 = arith.constant 0 : index
    %c0_11 = arith.constant 0 : index
    %c0_12 = arith.constant 0 : index
    %43 = vector.load %arg4[%c0_10, %c0_11, %c0_12] : memref<2x1x128xf32, #tpu.memory_space<vmem>>, vector<1x1x128xf32>
    %44 = vector.shape_cast %43 : vector<1x1x128xf32> to vector<1x128xf32>
    %c0_13 = arith.constant 0 : index
    %c0_14 = arith.constant 0 : index
    %c0_15 = arith.constant 0 : index
    %45 = vector.load %arg5[%c0_13, %c0_14, %c0_15] : memref<2x1x128xf32, #tpu.memory_space<vmem>>, vector<1x1x128xf32>
    %46 = vector.shape_cast %45 : vector<1x1x128xf32> to vector<1x128xf32>
    %cst_16 = arith.constant dense<0.000000e+00> : vector<24xf32>
    %47 = vector.multi_reduction <add>, %6, %cst_16 [1] : vector<24x128xf32> to vector<24xf32>
    %48 = vector.shape_cast %47 : vector<24xf32> to vector<24x1xf32>
    %cst_17 = arith.constant 3.125000e-02 : f32
    %49 = vector.broadcast %cst_17 : f32 to vector<24x1xf32>
    %50 = arith.mulf %48, %49 : vector<24x1xf32>
    %51 = vector.broadcast %50 : vector<24x1xf32> to vector<24x128xf32>
    %52 = arith.subf %6, %51 : vector<24x128xf32>
    %53 = vector.broadcast %11 : vector<1x128xf32> to vector<24x128xf32>
    %54 = arith.mulf %52, %53 : vector<24x128xf32>
    %55 = arith.mulf %54, %54 : vector<24x128xf32>
    %cst_18 = arith.constant dense<0.000000e+00> : vector<24xf32>
    %56 = vector.multi_reduction <add>, %55, %cst_18 [1] : vector<24x128xf32> to vector<24xf32>
    %57 = vector.shape_cast %56 : vector<24xf32> to vector<24x1xf32>
    %cst_19 = arith.constant 3.125000e-02 : f32
    %58 = vector.broadcast %cst_19 : f32 to vector<24x1xf32>
    %59 = arith.mulf %57, %58 : vector<24x1xf32>
    %cst_20 = arith.constant 9.99999997E-7 : f32
    %60 = vector.broadcast %cst_20 : f32 to vector<24x1xf32>
    %61 = arith.addf %59, %60 : vector<24x1xf32>
    %62 = math.rsqrt %61 : vector<24x1xf32>
    %63 = vector.broadcast %62 : vector<24x1xf32> to vector<24x128xf32>
    %64 = arith.mulf %54, %63 : vector<24x128xf32>
    %65 = vector.broadcast %44 : vector<1x128xf32> to vector<24x128xf32>
    %66 = arith.mulf %64, %65 : vector<24x128xf32>
    %67 = vector.broadcast %46 : vector<1x128xf32> to vector<24x128xf32>
    %68 = arith.addf %66, %67 : vector<24x128xf32>
    %69 = arith.truncf %68 : vector<24x128xf32> to vector<24x128xbf16>
    %c0_21 = arith.constant 0 : index
    %c0_22 = arith.constant 0 : index
    %c0_23 = arith.constant 0 : index
    %70 = vector.load %arg6[%c0_21, %c0_22, %c0_23] : memref<2x128x384xbf16, #tpu.memory_space<vmem>>, vector<1x128x384xbf16>
    %71 = vector.shape_cast %70 : vector<1x128x384xbf16> to vector<128x384xbf16>
    %cst_24 = arith.constant dense<0.000000e+00> : vector<24x384xf32>
    %72 = tpu.matmul %69, %71, %cst_24 {dimension_numbers = #tpu.dot_dimension_numbers<[1], [0], [0], [1], [0, 0, 1, 1], [], []>} : vector<24x128xbf16>, vector<128x384xbf16>, vector<24x384xf32> -> vector<24x384xf32>
    %c0_25 = arith.constant 0 : index
    %c0_26 = arith.constant 0 : index
    %c0_27 = arith.constant 0 : index
    %73 = vector.load %arg7[%c0_25, %c0_26, %c0_27] : memref<2x1x384xf32, #tpu.memory_space<vmem>>, vector<1x1x384xf32>
    %74 = vector.shape_cast %73 : vector<1x1x384xf32> to vector<1x384xf32>
    %75 = vector.broadcast %74 : vector<1x384xf32> to vector<24x384xf32>
    %76 = arith.addf %72, %75 : vector<24x384xf32>
    %77 = vector.extract_strided_slice %76 {offsets = [0, 0], sizes = [24, 128], strides = [1, 1]} : vector<24x384xf32> to vector<24x128xf32>
    %78 = vector.extract_strided_slice %76 {offsets = [0, 128], sizes = [24, 128], strides = [1, 1]} : vector<24x384xf32> to vector<24x128xf32>
    %79 = vector.extract_strided_slice %76 {offsets = [0, 256], sizes = [24, 128], strides = [1, 1]} : vector<24x384xf32> to vector<24x128xf32>
    %80 = vector.broadcast %18 : vector<1x128xf32> to vector<24x128xf32>
    %81 = arith.mulf %77, %80 : vector<24x128xf32>
    %82 = vector.broadcast %25 : vector<1x128xf32> to vector<24x128xf32>
    %83 = arith.mulf %77, %82 : vector<24x128xf32>
    %84 = vector.broadcast %32 : vector<1x128xf32> to vector<24x128xf32>
    %85 = arith.mulf %77, %84 : vector<24x128xf32>
    %86 = vector.broadcast %39 : vector<1x128xf32> to vector<24x128xf32>
    %87 = arith.mulf %77, %86 : vector<24x128xf32>
    %88 = tpu.concatenate %81, %83, %85, %87 in 0 : vector<24x128xf32>, vector<24x128xf32>, vector<24x128xf32>, vector<24x128xf32> -> vector<96x128xf32>
    %89 = arith.truncf %88 : vector<96x128xf32> to vector<96x128xbf16>
    %90 = arith.truncf %78 : vector<24x128xf32> to vector<24x128xbf16>
    %cst_28 = arith.constant dense<0.000000e+00> : vector<96x24xf32>
    %91 = tpu.matmul %89, %90, %cst_28 {dimension_numbers = #tpu.dot_dimension_numbers<[1], [1], [0], [0], [0, 0, 1, 0], [], []>} : vector<96x128xbf16>, vector<24x128xbf16>, vector<96x24xf32> -> vector<96x24xf32>
    %cst_29 = arith.constant -1.000000e+30 : f32
    %92 = vector.shape_cast %42 : vector<1x24xi1> to vector<1x24xi1>
    %93 = vector.broadcast %92 : vector<1x24xi1> to vector<96x24xi1>
    %94 = vector.broadcast %cst_29 : f32 to vector<96x24xf32>
    %95 = arith.select %93, %91, %94 : vector<96x24xi1>, vector<96x24xf32>
    %cst_30 = arith.constant dense<0xFF800000> : vector<96xf32>
    %96 = vector.multi_reduction <maximumf>, %95, %cst_30 [1] : vector<96x24xf32> to vector<96xf32>
    %97 = vector.shape_cast %96 : vector<96xf32> to vector<96x1xf32>
    %98 = vector.broadcast %97 : vector<96x1xf32> to vector<96x24xf32>
    %99 = arith.subf %95, %98 : vector<96x24xf32>
    %100 = math.exp %99 : vector<96x24xf32>
    %cst_31 = arith.constant dense<0.000000e+00> : vector<96xf32>
    %101 = vector.multi_reduction <add>, %100, %cst_31 [1] : vector<96x24xf32> to vector<96xf32>
    %102 = vector.shape_cast %101 : vector<96xf32> to vector<96x1xf32>
    %103 = tpu.reciprocal %102 {approx = true} : vector<96x1xf32> -> vector<96x1xf32>
    %104 = vector.broadcast %103 : vector<96x1xf32> to vector<96x24xf32>
    %105 = arith.mulf %100, %104 : vector<96x24xf32>
    %106 = arith.truncf %105 : vector<96x24xf32> to vector<96x24xbf16>
    %107 = arith.truncf %79 : vector<24x128xf32> to vector<24x128xbf16>
    %cst_32 = arith.constant dense<0.000000e+00> : vector<96x128xf32>
    %108 = tpu.matmul %106, %107, %cst_32 {dimension_numbers = #tpu.dot_dimension_numbers<[1], [0], [0], [1], [0, 0, 1, 1], [], []>} : vector<96x24xbf16>, vector<24x128xbf16>, vector<96x128xf32> -> vector<96x128xf32>
    %109 = vector.extract_strided_slice %108 {offsets = [0, 0], sizes = [24, 128], strides = [1, 1]} : vector<96x128xf32> to vector<24x128xf32>
    %110 = vector.broadcast %18 : vector<1x128xf32> to vector<24x128xf32>
    %111 = arith.mulf %110, %109 : vector<24x128xf32>
    %112 = vector.extract_strided_slice %108 {offsets = [24, 0], sizes = [24, 128], strides = [1, 1]} : vector<96x128xf32> to vector<24x128xf32>
    %113 = vector.broadcast %25 : vector<1x128xf32> to vector<24x128xf32>
    %114 = arith.mulf %113, %112 : vector<24x128xf32>
    %115 = arith.addf %111, %114 : vector<24x128xf32>
    %116 = vector.extract_strided_slice %108 {offsets = [48, 0], sizes = [24, 128], strides = [1, 1]} : vector<96x128xf32> to vector<24x128xf32>
    %117 = vector.broadcast %32 : vector<1x128xf32> to vector<24x128xf32>
    %118 = arith.mulf %117, %116 : vector<24x128xf32>
    %119 = arith.addf %115, %118 : vector<24x128xf32>
    %120 = vector.extract_strided_slice %108 {offsets = [72, 0], sizes = [24, 128], strides = [1, 1]} : vector<96x128xf32> to vector<24x128xf32>
    %121 = vector.broadcast %39 : vector<1x128xf32> to vector<24x128xf32>
    %122 = arith.mulf %121, %120 : vector<24x128xf32>
    %123 = arith.addf %119, %122 : vector<24x128xf32>
    %124 = arith.truncf %123 : vector<24x128xf32> to vector<24x128xbf16>
    %c0_33 = arith.constant 0 : index
    %c0_34 = arith.constant 0 : index
    %c0_35 = arith.constant 0 : index
    %125 = vector.load %arg8[%c0_33, %c0_34, %c0_35] : memref<2x128x128xbf16, #tpu.memory_space<vmem>>, vector<1x128x128xbf16>
    %126 = vector.shape_cast %125 : vector<1x128x128xbf16> to vector<128x128xbf16>
    %cst_36 = arith.constant dense<0.000000e+00> : vector<24x128xf32>
    %127 = tpu.matmul %124, %126, %cst_36 {dimension_numbers = #tpu.dot_dimension_numbers<[1], [0], [0], [1], [0, 0, 1, 1], [], []>} : vector<24x128xbf16>, vector<128x128xbf16>, vector<24x128xf32> -> vector<24x128xf32>
    %c0_37 = arith.constant 0 : index
    %c0_38 = arith.constant 0 : index
    %c0_39 = arith.constant 0 : index
    %128 = vector.load %arg9[%c0_37, %c0_38, %c0_39] : memref<2x1x128xf32, #tpu.memory_space<vmem>>, vector<1x1x128xf32>
    %129 = vector.shape_cast %128 : vector<1x1x128xf32> to vector<1x128xf32>
    %130 = vector.broadcast %129 : vector<1x128xf32> to vector<24x128xf32>
    %131 = arith.addf %127, %130 : vector<24x128xf32>
    %132 = arith.addf %6, %131 : vector<24x128xf32>
    %c0_40 = arith.constant 0 : index
    %c0_41 = arith.constant 0 : index
    %c0_42 = arith.constant 0 : index
    %133 = vector.load %arg10[%c0_40, %c0_41, %c0_42] : memref<2x1x128xf32, #tpu.memory_space<vmem>>, vector<1x1x128xf32>
    %134 = vector.shape_cast %133 : vector<1x1x128xf32> to vector<1x128xf32>
    %c0_43 = arith.constant 0 : index
    %c0_44 = arith.constant 0 : index
    %c0_45 = arith.constant 0 : index
    %135 = vector.load %arg11[%c0_43, %c0_44, %c0_45] : memref<2x1x128xf32, #tpu.memory_space<vmem>>, vector<1x1x128xf32>
    %136 = vector.shape_cast %135 : vector<1x1x128xf32> to vector<1x128xf32>
    %cst_46 = arith.constant dense<0.000000e+00> : vector<24xf32>
    %137 = vector.multi_reduction <add>, %132, %cst_46 [1] : vector<24x128xf32> to vector<24xf32>
    %138 = vector.shape_cast %137 : vector<24xf32> to vector<24x1xf32>
    %cst_47 = arith.constant 3.125000e-02 : f32
    %139 = vector.broadcast %cst_47 : f32 to vector<24x1xf32>
    %140 = arith.mulf %138, %139 : vector<24x1xf32>
    %141 = vector.broadcast %140 : vector<24x1xf32> to vector<24x128xf32>
    %142 = arith.subf %132, %141 : vector<24x128xf32>
    %143 = vector.broadcast %11 : vector<1x128xf32> to vector<24x128xf32>
    %144 = arith.mulf %142, %143 : vector<24x128xf32>
    %145 = arith.mulf %144, %144 : vector<24x128xf32>
    %cst_48 = arith.constant dense<0.000000e+00> : vector<24xf32>
    %146 = vector.multi_reduction <add>, %145, %cst_48 [1] : vector<24x128xf32> to vector<24xf32>
    %147 = vector.shape_cast %146 : vector<24xf32> to vector<24x1xf32>
    %cst_49 = arith.constant 3.125000e-02 : f32
    %148 = vector.broadcast %cst_49 : f32 to vector<24x1xf32>
    %149 = arith.mulf %147, %148 : vector<24x1xf32>
    %cst_50 = arith.constant 9.99999997E-7 : f32
    %150 = vector.broadcast %cst_50 : f32 to vector<24x1xf32>
    %151 = arith.addf %149, %150 : vector<24x1xf32>
    %152 = math.rsqrt %151 : vector<24x1xf32>
    %153 = vector.broadcast %152 : vector<24x1xf32> to vector<24x128xf32>
    %154 = arith.mulf %144, %153 : vector<24x128xf32>
    %155 = vector.broadcast %134 : vector<1x128xf32> to vector<24x128xf32>
    %156 = arith.mulf %154, %155 : vector<24x128xf32>
    %157 = vector.broadcast %136 : vector<1x128xf32> to vector<24x128xf32>
    %158 = arith.addf %156, %157 : vector<24x128xf32>
    %159 = arith.truncf %158 : vector<24x128xf32> to vector<24x128xbf16>
    %c0_51 = arith.constant 0 : index
    %c0_52 = arith.constant 0 : index
    %c0_53 = arith.constant 0 : index
    %160 = vector.load %arg12[%c0_51, %c0_52, %c0_53] : memref<2x128x128xbf16, #tpu.memory_space<vmem>>, vector<1x128x128xbf16>
    %161 = vector.shape_cast %160 : vector<1x128x128xbf16> to vector<128x128xbf16>
    %cst_54 = arith.constant dense<0.000000e+00> : vector<24x128xf32>
    %162 = tpu.matmul %159, %161, %cst_54 {dimension_numbers = #tpu.dot_dimension_numbers<[1], [0], [0], [1], [0, 0, 1, 1], [], []>} : vector<24x128xbf16>, vector<128x128xbf16>, vector<24x128xf32> -> vector<24x128xf32>
    %c0_55 = arith.constant 0 : index
    %c0_56 = arith.constant 0 : index
    %c0_57 = arith.constant 0 : index
    %163 = vector.load %arg13[%c0_55, %c0_56, %c0_57] : memref<2x1x128xf32, #tpu.memory_space<vmem>>, vector<1x1x128xf32>
    %164 = vector.shape_cast %163 : vector<1x1x128xf32> to vector<1x128xf32>
    %165 = vector.broadcast %164 : vector<1x128xf32> to vector<24x128xf32>
    %166 = arith.addf %162, %165 : vector<24x128xf32>
    %167 = arith.mulf %166, %166 : vector<24x128xf32>
    %168 = arith.mulf %166, %167 : vector<24x128xf32>
    %cst_58 = arith.constant 4.471500e-02 : f32
    %169 = vector.broadcast %cst_58 : f32 to vector<24x128xf32>
    %170 = arith.mulf %169, %168 : vector<24x128xf32>
    %171 = arith.addf %166, %170 : vector<24x128xf32>
    %cst_59 = arith.constant 0.797884583 : f32
    %172 = vector.broadcast %cst_59 : f32 to vector<24x128xf32>
    %173 = arith.mulf %172, %171 : vector<24x128xf32>
    %174 = math.tanh %173 : vector<24x128xf32>
    %cst_60 = arith.constant 1.000000e+00 : f32
    %175 = vector.broadcast %cst_60 : f32 to vector<24x128xf32>
    %176 = arith.addf %175, %174 : vector<24x128xf32>
    %cst_61 = arith.constant 5.000000e-01 : f32
    %177 = vector.broadcast %cst_61 : f32 to vector<24x128xf32>
    %178 = arith.mulf %177, %176 : vector<24x128xf32>
    %179 = arith.mulf %166, %178 : vector<24x128xf32>
    %180 = arith.truncf %179 : vector<24x128xf32> to vector<24x128xbf16>
    %c0_62 = arith.constant 0 : index
    %c0_63 = arith.constant 0 : index
    %c0_64 = arith.constant 0 : index
    %181 = vector.load %arg14[%c0_62, %c0_63, %c0_64] : memref<2x128x128xbf16, #tpu.memory_space<vmem>>, vector<1x128x128xbf16>
    %182 = vector.shape_cast %181 : vector<1x128x128xbf16> to vector<128x128xbf16>
    %cst_65 = arith.constant dense<0.000000e+00> : vector<24x128xf32>
    %183 = tpu.matmul %180, %182, %cst_65 {dimension_numbers = #tpu.dot_dimension_numbers<[1], [0], [0], [1], [0, 0, 1, 1], [], []>} : vector<24x128xbf16>, vector<128x128xbf16>, vector<24x128xf32> -> vector<24x128xf32>
    %c0_66 = arith.constant 0 : index
    %c0_67 = arith.constant 0 : index
    %c0_68 = arith.constant 0 : index
    %184 = vector.load %arg15[%c0_66, %c0_67, %c0_68] : memref<2x1x128xf32, #tpu.memory_space<vmem>>, vector<1x1x128xf32>
    %185 = vector.shape_cast %184 : vector<1x1x128xf32> to vector<1x128xf32>
    %186 = vector.broadcast %185 : vector<1x128xf32> to vector<24x128xf32>
    %187 = arith.addf %183, %186 : vector<24x128xf32>
    %188 = arith.addf %132, %187 : vector<24x128xf32>
    %c1 = arith.constant 1 : index
    %c0_69 = arith.constant 0 : index
    %c0_70 = arith.constant 0 : index
    %189 = vector.load %arg4[%c1, %c0_69, %c0_70] : memref<2x1x128xf32, #tpu.memory_space<vmem>>, vector<1x1x128xf32>
    %190 = vector.shape_cast %189 : vector<1x1x128xf32> to vector<1x128xf32>
    %c1_71 = arith.constant 1 : index
    %c0_72 = arith.constant 0 : index
    %c0_73 = arith.constant 0 : index
    %191 = vector.load %arg5[%c1_71, %c0_72, %c0_73] : memref<2x1x128xf32, #tpu.memory_space<vmem>>, vector<1x1x128xf32>
    %192 = vector.shape_cast %191 : vector<1x1x128xf32> to vector<1x128xf32>
    %cst_74 = arith.constant dense<0.000000e+00> : vector<24xf32>
    %193 = vector.multi_reduction <add>, %188, %cst_74 [1] : vector<24x128xf32> to vector<24xf32>
    %194 = vector.shape_cast %193 : vector<24xf32> to vector<24x1xf32>
    %cst_75 = arith.constant 3.125000e-02 : f32
    %195 = vector.broadcast %cst_75 : f32 to vector<24x1xf32>
    %196 = arith.mulf %194, %195 : vector<24x1xf32>
    %197 = vector.broadcast %196 : vector<24x1xf32> to vector<24x128xf32>
    %198 = arith.subf %188, %197 : vector<24x128xf32>
    %199 = vector.broadcast %11 : vector<1x128xf32> to vector<24x128xf32>
    %200 = arith.mulf %198, %199 : vector<24x128xf32>
    %201 = arith.mulf %200, %200 : vector<24x128xf32>
    %cst_76 = arith.constant dense<0.000000e+00> : vector<24xf32>
    %202 = vector.multi_reduction <add>, %201, %cst_76 [1] : vector<24x128xf32> to vector<24xf32>
    %203 = vector.shape_cast %202 : vector<24xf32> to vector<24x1xf32>
    %cst_77 = arith.constant 3.125000e-02 : f32
    %204 = vector.broadcast %cst_77 : f32 to vector<24x1xf32>
    %205 = arith.mulf %203, %204 : vector<24x1xf32>
    %cst_78 = arith.constant 9.99999997E-7 : f32
    %206 = vector.broadcast %cst_78 : f32 to vector<24x1xf32>
    %207 = arith.addf %205, %206 : vector<24x1xf32>
    %208 = math.rsqrt %207 : vector<24x1xf32>
    %209 = vector.broadcast %208 : vector<24x1xf32> to vector<24x128xf32>
    %210 = arith.mulf %200, %209 : vector<24x128xf32>
    %211 = vector.broadcast %190 : vector<1x128xf32> to vector<24x128xf32>
    %212 = arith.mulf %210, %211 : vector<24x128xf32>
    %213 = vector.broadcast %192 : vector<1x128xf32> to vector<24x128xf32>
    %214 = arith.addf %212, %213 : vector<24x128xf32>
    %215 = arith.truncf %214 : vector<24x128xf32> to vector<24x128xbf16>
    %c1_79 = arith.constant 1 : index
    %c0_80 = arith.constant 0 : index
    %c0_81 = arith.constant 0 : index
    %216 = vector.load %arg6[%c1_79, %c0_80, %c0_81] : memref<2x128x384xbf16, #tpu.memory_space<vmem>>, vector<1x128x384xbf16>
    %217 = vector.shape_cast %216 : vector<1x128x384xbf16> to vector<128x384xbf16>
    %cst_82 = arith.constant dense<0.000000e+00> : vector<24x384xf32>
    %218 = tpu.matmul %215, %217, %cst_82 {dimension_numbers = #tpu.dot_dimension_numbers<[1], [0], [0], [1], [0, 0, 1, 1], [], []>} : vector<24x128xbf16>, vector<128x384xbf16>, vector<24x384xf32> -> vector<24x384xf32>
    %c1_83 = arith.constant 1 : index
    %c0_84 = arith.constant 0 : index
    %c0_85 = arith.constant 0 : index
    %219 = vector.load %arg7[%c1_83, %c0_84, %c0_85] : memref<2x1x384xf32, #tpu.memory_space<vmem>>, vector<1x1x384xf32>
    %220 = vector.shape_cast %219 : vector<1x1x384xf32> to vector<1x384xf32>
    %221 = vector.broadcast %220 : vector<1x384xf32> to vector<24x384xf32>
    %222 = arith.addf %218, %221 : vector<24x384xf32>
    %223 = vector.extract_strided_slice %222 {offsets = [0, 0], sizes = [24, 128], strides = [1, 1]} : vector<24x384xf32> to vector<24x128xf32>
    %224 = vector.extract_strided_slice %222 {offsets = [0, 128], sizes = [24, 128], strides = [1, 1]} : vector<24x384xf32> to vector<24x128xf32>
    %225 = vector.extract_strided_slice %222 {offsets = [0, 256], sizes = [24, 128], strides = [1, 1]} : vector<24x384xf32> to vector<24x128xf32>
    %226 = vector.broadcast %18 : vector<1x128xf32> to vector<24x128xf32>
    %227 = arith.mulf %223, %226 : vector<24x128xf32>
    %228 = vector.broadcast %25 : vector<1x128xf32> to vector<24x128xf32>
    %229 = arith.mulf %223, %228 : vector<24x128xf32>
    %230 = vector.broadcast %32 : vector<1x128xf32> to vector<24x128xf32>
    %231 = arith.mulf %223, %230 : vector<24x128xf32>
    %232 = vector.broadcast %39 : vector<1x128xf32> to vector<24x128xf32>
    %233 = arith.mulf %223, %232 : vector<24x128xf32>
    %234 = tpu.concatenate %227, %229, %231, %233 in 0 : vector<24x128xf32>, vector<24x128xf32>, vector<24x128xf32>, vector<24x128xf32> -> vector<96x128xf32>
    %235 = arith.truncf %234 : vector<96x128xf32> to vector<96x128xbf16>
    %236 = arith.truncf %224 : vector<24x128xf32> to vector<24x128xbf16>
    %cst_86 = arith.constant dense<0.000000e+00> : vector<96x24xf32>
    %237 = tpu.matmul %235, %236, %cst_86 {dimension_numbers = #tpu.dot_dimension_numbers<[1], [1], [0], [0], [0, 0, 1, 0], [], []>} : vector<96x128xbf16>, vector<24x128xbf16>, vector<96x24xf32> -> vector<96x24xf32>
    %cst_87 = arith.constant -1.000000e+30 : f32
    %238 = vector.shape_cast %42 : vector<1x24xi1> to vector<1x24xi1>
    %239 = vector.broadcast %238 : vector<1x24xi1> to vector<96x24xi1>
    %240 = vector.broadcast %cst_87 : f32 to vector<96x24xf32>
    %241 = arith.select %239, %237, %240 : vector<96x24xi1>, vector<96x24xf32>
    %cst_88 = arith.constant dense<0xFF800000> : vector<96xf32>
    %242 = vector.multi_reduction <maximumf>, %241, %cst_88 [1] : vector<96x24xf32> to vector<96xf32>
    %243 = vector.shape_cast %242 : vector<96xf32> to vector<96x1xf32>
    %244 = vector.broadcast %243 : vector<96x1xf32> to vector<96x24xf32>
    %245 = arith.subf %241, %244 : vector<96x24xf32>
    %246 = math.exp %245 : vector<96x24xf32>
    %cst_89 = arith.constant dense<0.000000e+00> : vector<96xf32>
    %247 = vector.multi_reduction <add>, %246, %cst_89 [1] : vector<96x24xf32> to vector<96xf32>
    %248 = vector.shape_cast %247 : vector<96xf32> to vector<96x1xf32>
    %249 = tpu.reciprocal %248 {approx = true} : vector<96x1xf32> -> vector<96x1xf32>
    %250 = vector.broadcast %249 : vector<96x1xf32> to vector<96x24xf32>
    %251 = arith.mulf %246, %250 : vector<96x24xf32>
    %252 = arith.truncf %251 : vector<96x24xf32> to vector<96x24xbf16>
    %253 = arith.truncf %225 : vector<24x128xf32> to vector<24x128xbf16>
    %cst_90 = arith.constant dense<0.000000e+00> : vector<96x128xf32>
    %254 = tpu.matmul %252, %253, %cst_90 {dimension_numbers = #tpu.dot_dimension_numbers<[1], [0], [0], [1], [0, 0, 1, 1], [], []>} : vector<96x24xbf16>, vector<24x128xbf16>, vector<96x128xf32> -> vector<96x128xf32>
    %255 = vector.extract_strided_slice %254 {offsets = [0, 0], sizes = [24, 128], strides = [1, 1]} : vector<96x128xf32> to vector<24x128xf32>
    %256 = vector.broadcast %18 : vector<1x128xf32> to vector<24x128xf32>
    %257 = arith.mulf %256, %255 : vector<24x128xf32>
    %258 = vector.extract_strided_slice %254 {offsets = [24, 0], sizes = [24, 128], strides = [1, 1]} : vector<96x128xf32> to vector<24x128xf32>
    %259 = vector.broadcast %25 : vector<1x128xf32> to vector<24x128xf32>
    %260 = arith.mulf %259, %258 : vector<24x128xf32>
    %261 = arith.addf %257, %260 : vector<24x128xf32>
    %262 = vector.extract_strided_slice %254 {offsets = [48, 0], sizes = [24, 128], strides = [1, 1]} : vector<96x128xf32> to vector<24x128xf32>
    %263 = vector.broadcast %32 : vector<1x128xf32> to vector<24x128xf32>
    %264 = arith.mulf %263, %262 : vector<24x128xf32>
    %265 = arith.addf %261, %264 : vector<24x128xf32>
    %266 = vector.extract_strided_slice %254 {offsets = [72, 0], sizes = [24, 128], strides = [1, 1]} : vector<96x128xf32> to vector<24x128xf32>
    %267 = vector.broadcast %39 : vector<1x128xf32> to vector<24x128xf32>
    %268 = arith.mulf %267, %266 : vector<24x128xf32>
    %269 = arith.addf %265, %268 : vector<24x128xf32>
    %270 = arith.truncf %269 : vector<24x128xf32> to vector<24x128xbf16>
    %c1_91 = arith.constant 1 : index
    %c0_92 = arith.constant 0 : index
    %c0_93 = arith.constant 0 : index
    %271 = vector.load %arg8[%c1_91, %c0_92, %c0_93] : memref<2x128x128xbf16, #tpu.memory_space<vmem>>, vector<1x128x128xbf16>
    %272 = vector.shape_cast %271 : vector<1x128x128xbf16> to vector<128x128xbf16>
    %cst_94 = arith.constant dense<0.000000e+00> : vector<24x128xf32>
    %273 = tpu.matmul %270, %272, %cst_94 {dimension_numbers = #tpu.dot_dimension_numbers<[1], [0], [0], [1], [0, 0, 1, 1], [], []>} : vector<24x128xbf16>, vector<128x128xbf16>, vector<24x128xf32> -> vector<24x128xf32>
    %c1_95 = arith.constant 1 : index
    %c0_96 = arith.constant 0 : index
    %c0_97 = arith.constant 0 : index
    %274 = vector.load %arg9[%c1_95, %c0_96, %c0_97] : memref<2x1x128xf32, #tpu.memory_space<vmem>>, vector<1x1x128xf32>
    %275 = vector.shape_cast %274 : vector<1x1x128xf32> to vector<1x128xf32>
    %276 = vector.broadcast %275 : vector<1x128xf32> to vector<24x128xf32>
    %277 = arith.addf %273, %276 : vector<24x128xf32>
    %278 = arith.addf %188, %277 : vector<24x128xf32>
    %c1_98 = arith.constant 1 : index
    %c0_99 = arith.constant 0 : index
    %c0_100 = arith.constant 0 : index
    %279 = vector.load %arg10[%c1_98, %c0_99, %c0_100] : memref<2x1x128xf32, #tpu.memory_space<vmem>>, vector<1x1x128xf32>
    %280 = vector.shape_cast %279 : vector<1x1x128xf32> to vector<1x128xf32>
    %c1_101 = arith.constant 1 : index
    %c0_102 = arith.constant 0 : index
    %c0_103 = arith.constant 0 : index
    %281 = vector.load %arg11[%c1_101, %c0_102, %c0_103] : memref<2x1x128xf32, #tpu.memory_space<vmem>>, vector<1x1x128xf32>
    %282 = vector.shape_cast %281 : vector<1x1x128xf32> to vector<1x128xf32>
    %cst_104 = arith.constant dense<0.000000e+00> : vector<24xf32>
    %283 = vector.multi_reduction <add>, %278, %cst_104 [1] : vector<24x128xf32> to vector<24xf32>
    %284 = vector.shape_cast %283 : vector<24xf32> to vector<24x1xf32>
    %cst_105 = arith.constant 3.125000e-02 : f32
    %285 = vector.broadcast %cst_105 : f32 to vector<24x1xf32>
    %286 = arith.mulf %284, %285 : vector<24x1xf32>
    %287 = vector.broadcast %286 : vector<24x1xf32> to vector<24x128xf32>
    %288 = arith.subf %278, %287 : vector<24x128xf32>
    %289 = vector.broadcast %11 : vector<1x128xf32> to vector<24x128xf32>
    %290 = arith.mulf %288, %289 : vector<24x128xf32>
    %291 = arith.mulf %290, %290 : vector<24x128xf32>
    %cst_106 = arith.constant dense<0.000000e+00> : vector<24xf32>
    %292 = vector.multi_reduction <add>, %291, %cst_106 [1] : vector<24x128xf32> to vector<24xf32>
    %293 = vector.shape_cast %292 : vector<24xf32> to vector<24x1xf32>
    %cst_107 = arith.constant 3.125000e-02 : f32
    %294 = vector.broadcast %cst_107 : f32 to vector<24x1xf32>
    %295 = arith.mulf %293, %294 : vector<24x1xf32>
    %cst_108 = arith.constant 9.99999997E-7 : f32
    %296 = vector.broadcast %cst_108 : f32 to vector<24x1xf32>
    %297 = arith.addf %295, %296 : vector<24x1xf32>
    %298 = math.rsqrt %297 : vector<24x1xf32>
    %299 = vector.broadcast %298 : vector<24x1xf32> to vector<24x128xf32>
    %300 = arith.mulf %290, %299 : vector<24x128xf32>
    %301 = vector.broadcast %280 : vector<1x128xf32> to vector<24x128xf32>
    %302 = arith.mulf %300, %301 : vector<24x128xf32>
    %303 = vector.broadcast %282 : vector<1x128xf32> to vector<24x128xf32>
    %304 = arith.addf %302, %303 : vector<24x128xf32>
    %305 = arith.truncf %304 : vector<24x128xf32> to vector<24x128xbf16>
    %c1_109 = arith.constant 1 : index
    %c0_110 = arith.constant 0 : index
    %c0_111 = arith.constant 0 : index
    %306 = vector.load %arg12[%c1_109, %c0_110, %c0_111] : memref<2x128x128xbf16, #tpu.memory_space<vmem>>, vector<1x128x128xbf16>
    %307 = vector.shape_cast %306 : vector<1x128x128xbf16> to vector<128x128xbf16>
    %cst_112 = arith.constant dense<0.000000e+00> : vector<24x128xf32>
    %308 = tpu.matmul %305, %307, %cst_112 {dimension_numbers = #tpu.dot_dimension_numbers<[1], [0], [0], [1], [0, 0, 1, 1], [], []>} : vector<24x128xbf16>, vector<128x128xbf16>, vector<24x128xf32> -> vector<24x128xf32>
    %c1_113 = arith.constant 1 : index
    %c0_114 = arith.constant 0 : index
    %c0_115 = arith.constant 0 : index
    %309 = vector.load %arg13[%c1_113, %c0_114, %c0_115] : memref<2x1x128xf32, #tpu.memory_space<vmem>>, vector<1x1x128xf32>
    %310 = vector.shape_cast %309 : vector<1x1x128xf32> to vector<1x128xf32>
    %311 = vector.broadcast %310 : vector<1x128xf32> to vector<24x128xf32>
    %312 = arith.addf %308, %311 : vector<24x128xf32>
    %313 = arith.mulf %312, %312 : vector<24x128xf32>
    %314 = arith.mulf %312, %313 : vector<24x128xf32>
    %cst_116 = arith.constant 4.471500e-02 : f32
    %315 = vector.broadcast %cst_116 : f32 to vector<24x128xf32>
    %316 = arith.mulf %315, %314 : vector<24x128xf32>
    %317 = arith.addf %312, %316 : vector<24x128xf32>
    %cst_117 = arith.constant 0.797884583 : f32
    %318 = vector.broadcast %cst_117 : f32 to vector<24x128xf32>
    %319 = arith.mulf %318, %317 : vector<24x128xf32>
    %320 = math.tanh %319 : vector<24x128xf32>
    %cst_118 = arith.constant 1.000000e+00 : f32
    %321 = vector.broadcast %cst_118 : f32 to vector<24x128xf32>
    %322 = arith.addf %321, %320 : vector<24x128xf32>
    %cst_119 = arith.constant 5.000000e-01 : f32
    %323 = vector.broadcast %cst_119 : f32 to vector<24x128xf32>
    %324 = arith.mulf %323, %322 : vector<24x128xf32>
    %325 = arith.mulf %312, %324 : vector<24x128xf32>
    %326 = arith.truncf %325 : vector<24x128xf32> to vector<24x128xbf16>
    %c1_120 = arith.constant 1 : index
    %c0_121 = arith.constant 0 : index
    %c0_122 = arith.constant 0 : index
    %327 = vector.load %arg14[%c1_120, %c0_121, %c0_122] : memref<2x128x128xbf16, #tpu.memory_space<vmem>>, vector<1x128x128xbf16>
    %328 = vector.shape_cast %327 : vector<1x128x128xbf16> to vector<128x128xbf16>
    %cst_123 = arith.constant dense<0.000000e+00> : vector<24x128xf32>
    %329 = tpu.matmul %326, %328, %cst_123 {dimension_numbers = #tpu.dot_dimension_numbers<[1], [0], [0], [1], [0, 0, 1, 1], [], []>} : vector<24x128xbf16>, vector<128x128xbf16>, vector<24x128xf32> -> vector<24x128xf32>
    %c1_124 = arith.constant 1 : index
    %c0_125 = arith.constant 0 : index
    %c0_126 = arith.constant 0 : index
    %330 = vector.load %arg15[%c1_124, %c0_125, %c0_126] : memref<2x1x128xf32, #tpu.memory_space<vmem>>, vector<1x1x128xf32>
    %331 = vector.shape_cast %330 : vector<1x1x128xf32> to vector<1x128xf32>
    %332 = vector.broadcast %331 : vector<1x128xf32> to vector<24x128xf32>
    %333 = arith.addf %329, %332 : vector<24x128xf32>
    %334 = arith.addf %278, %333 : vector<24x128xf32>
    %335 = vector.extract_strided_slice %334 {offsets = [0, 0], sizes = [1, 128], strides = [1, 1]} : vector<24x128xf32> to vector<1x128xf32>
    %c0_127 = arith.constant 0 : index
    %c0_128 = arith.constant 0 : index
    %336 = vector.load %arg16[%c0_127, %c0_128] : memref<1x128xf32, #tpu.memory_space<vmem>>, vector<1x128xf32>
    %c0_129 = arith.constant 0 : index
    %c0_130 = arith.constant 0 : index
    %337 = vector.load %arg17[%c0_129, %c0_130] : memref<1x128xf32, #tpu.memory_space<vmem>>, vector<1x128xf32>
    %cst_131 = arith.constant dense<0.000000e+00> : vector<1xf32>
    %338 = vector.multi_reduction <add>, %335, %cst_131 [1] : vector<1x128xf32> to vector<1xf32>
    %339 = vector.shape_cast %338 : vector<1xf32> to vector<1x1xf32>
    %cst_132 = arith.constant 3.125000e-02 : f32
    %340 = vector.broadcast %cst_132 : f32 to vector<1x1xf32>
    %341 = arith.mulf %339, %340 : vector<1x1xf32>
    %342 = vector.broadcast %341 : vector<1x1xf32> to vector<1x128xf32>
    %343 = arith.subf %335, %342 : vector<1x128xf32>
    %344 = arith.mulf %343, %11 : vector<1x128xf32>
    %345 = arith.mulf %344, %344 : vector<1x128xf32>
    %cst_133 = arith.constant dense<0.000000e+00> : vector<1xf32>
    %346 = vector.multi_reduction <add>, %345, %cst_133 [1] : vector<1x128xf32> to vector<1xf32>
    %347 = vector.shape_cast %346 : vector<1xf32> to vector<1x1xf32>
    %cst_134 = arith.constant 3.125000e-02 : f32
    %348 = vector.broadcast %cst_134 : f32 to vector<1x1xf32>
    %349 = arith.mulf %347, %348 : vector<1x1xf32>
    %cst_135 = arith.constant 9.99999997E-7 : f32
    %350 = vector.broadcast %cst_135 : f32 to vector<1x1xf32>
    %351 = arith.addf %349, %350 : vector<1x1xf32>
    %352 = math.rsqrt %351 : vector<1x1xf32>
    %353 = vector.broadcast %352 : vector<1x1xf32> to vector<1x128xf32>
    %354 = arith.mulf %344, %353 : vector<1x128xf32>
    %355 = arith.mulf %354, %336 : vector<1x128xf32>
    %356 = arith.addf %355, %337 : vector<1x128xf32>
    %c0_136 = arith.constant 0 : index
    %c0_137 = arith.constant 0 : index
    %c0_138 = arith.constant 0 : index
    %357 = vector.load %arg20[%c0_136, %c0_137, %c0_138] : memref<1x1x128xf32, #tpu.memory_space<vmem>>, vector<1x1x128xf32>
    %358 = vector.shape_cast %357 : vector<1x1x128xf32> to vector<1x128xf32>
    %359 = vector.shape_cast %356 : vector<1x128xf32> to vector<1x1x128xf32>
    tpu.vector_store %arg20[%c0_136, %c0_137, %c0_138], %359 {strides = array<i32>} : memref<1x1x128xf32, #tpu.memory_space<vmem>>, vector<1x1x128xf32>,
    %360 = arith.truncf %356 : vector<1x128xf32> to vector<1x128xbf16>
    %c0_139 = arith.constant 0 : index
    %c0_140 = arith.constant 0 : index
    %361 = vector.load %arg18[%c0_139, %c0_140] : memref<128x128xbf16, #tpu.memory_space<vmem>>, vector<128x128xbf16>
    %cst_141 = arith.constant dense<0.000000e+00> : vector<1x128xf32>
    %362 = tpu.matmul %360, %361, %cst_141 {dimension_numbers = #tpu.dot_dimension_numbers<[1], [0], [0], [1], [0, 0, 1, 1], [], []>} : vector<1x128xbf16>, vector<128x128xbf16>, vector<1x128xf32> -> vector<1x128xf32>
    %c0_142 = arith.constant 0 : index
    %c0_143 = arith.constant 0 : index
    %363 = vector.load %arg19[%c0_142, %c0_143] : memref<1x128xf32, #tpu.memory_space<vmem>>, vector<1x128xf32>
    %364 = arith.addf %362, %363 : vector<1x128xf32>
    %c0_144 = arith.constant 0 : index
    %c0_145 = arith.constant 0 : index
    %c0_146 = arith.constant 0 : index
    %365 = vector.load %arg21[%c0_144, %c0_145, %c0_146] : memref<1x1x128xf32, #tpu.memory_space<vmem>>, vector<1x1x128xf32>
    %366 = vector.shape_cast %365 : vector<1x1x128xf32> to vector<1x128xf32>
    %367 = vector.shape_cast %364 : vector<1x128xf32> to vector<1x1x128xf32>
    tpu.vector_store %arg21[%c0_144, %c0_145, %c0_146], %367 {strides = array<i32>} : memref<1x1x128xf32, #tpu.memory_space<vmem>>, vector<1x1x128xf32>,
    return
  }
  func.func @transform_0(%arg0: i32) -> (i32, i32, i32) {
    %c0_i32 = arith.constant 0 : i32
    %c0_i32_0 = arith.constant 0 : i32
    %c0_i32_1 = arith.constant 0 : i32
    return %arg0, %c0_i32, %c0_i32_0 : i32, i32, i32
  }
  func.func @transform_1(%arg0: i32) -> (i32, i32) {
    %c0_i32 = arith.constant 0 : i32
    %c0_i32_0 = arith.constant 0 : i32
    %c0_i32_1 = arith.constant 0 : i32
    return %c0_i32, %c0_i32_0 : i32, i32
  }
  func.func @transform_2(%arg0: i32) -> (i32, i32) {
    %c0_i32 = arith.constant 0 : i32
    %c0_i32_0 = arith.constant 0 : i32
    %c0_i32_1 = arith.constant 0 : i32
    return %c0_i32, %c0_i32_0 : i32, i32
  }
  func.func @transform_3(%arg0: i32) -> (i32, i32, i32) {
    %c0_i32 = arith.constant 0 : i32
    %c0_i32_0 = arith.constant 0 : i32
    %c0_i32_1 = arith.constant 0 : i32
    %c0_i32_2 = arith.constant 0 : i32
    return %c0_i32, %c0_i32_0, %c0_i32_1 : i32, i32, i32
  }
  func.func @transform_4(%arg0: i32) -> (i32, i32, i32) {
    %c0_i32 = arith.constant 0 : i32
    %c0_i32_0 = arith.constant 0 : i32
    %c0_i32_1 = arith.constant 0 : i32
    %c0_i32_2 = arith.constant 0 : i32
    return %c0_i32, %c0_i32_0, %c0_i32_1 : i32, i32, i32
  }
  func.func @transform_5(%arg0: i32) -> (i32, i32, i32) {
    %c0_i32 = arith.constant 0 : i32
    %c0_i32_0 = arith.constant 0 : i32
    %c0_i32_1 = arith.constant 0 : i32
    %c0_i32_2 = arith.constant 0 : i32
    return %c0_i32, %c0_i32_0, %c0_i32_1 : i32, i32, i32
  }
  func.func @transform_6(%arg0: i32) -> (i32, i32, i32) {
    %c0_i32 = arith.constant 0 : i32
    %c0_i32_0 = arith.constant 0 : i32
    %c0_i32_1 = arith.constant 0 : i32
    %c0_i32_2 = arith.constant 0 : i32
    return %c0_i32, %c0_i32_0, %c0_i32_1 : i32, i32, i32
  }
  func.func @transform_7(%arg0: i32) -> (i32, i32, i32) {
    %c0_i32 = arith.constant 0 : i32
    %c0_i32_0 = arith.constant 0 : i32
    %c0_i32_1 = arith.constant 0 : i32
    %c0_i32_2 = arith.constant 0 : i32
    return %c0_i32, %c0_i32_0, %c0_i32_1 : i32, i32, i32
  }
  func.func @transform_8(%arg0: i32) -> (i32, i32, i32) {
    %c0_i32 = arith.constant 0 : i32
    %c0_i32_0 = arith.constant 0 : i32
    %c0_i32_1 = arith.constant 0 : i32
    %c0_i32_2 = arith.constant 0 : i32
    return %c0_i32, %c0_i32_0, %c0_i32_1 : i32, i32, i32
  }
  func.func @transform_9(%arg0: i32) -> (i32, i32, i32) {
    %c0_i32 = arith.constant 0 : i32
    %c0_i32_0 = arith.constant 0 : i32
    %c0_i32_1 = arith.constant 0 : i32
    %c0_i32_2 = arith.constant 0 : i32
    return %c0_i32, %c0_i32_0, %c0_i32_1 : i32, i32, i32
  }
  func.func @transform_10(%arg0: i32) -> (i32, i32, i32) {
    %c0_i32 = arith.constant 0 : i32
    %c0_i32_0 = arith.constant 0 : i32
    %c0_i32_1 = arith.constant 0 : i32
    %c0_i32_2 = arith.constant 0 : i32
    return %c0_i32, %c0_i32_0, %c0_i32_1 : i32, i32, i32
  }
  func.func @transform_11(%arg0: i32) -> (i32, i32, i32) {
    %c0_i32 = arith.constant 0 : i32
    %c0_i32_0 = arith.constant 0 : i32
    %c0_i32_1 = arith.constant 0 : i32
    %c0_i32_2 = arith.constant 0 : i32
    return %c0_i32, %c0_i32_0, %c0_i32_1 : i32, i32, i32
  }
  func.func @transform_12(%arg0: i32) -> (i32, i32, i32) {
    %c0_i32 = arith.constant 0 : i32
    %c0_i32_0 = arith.constant 0 : i32
    %c0_i32_1 = arith.constant 0 : i32
    %c0_i32_2 = arith.constant 0 : i32
    return %c0_i32, %c0_i32_0, %c0_i32_1 : i32, i32, i32
  }
  func.func @transform_13(%arg0: i32) -> (i32, i32, i32) {
    %c0_i32 = arith.constant 0 : i32
    %c0_i32_0 = arith.constant 0 : i32
    %c0_i32_1 = arith.constant 0 : i32
    %c0_i32_2 = arith.constant 0 : i32
    return %c0_i32, %c0_i32_0, %c0_i32_1 : i32, i32, i32
  }
  func.func @transform_14(%arg0: i32) -> (i32, i32, i32) {
    %c0_i32 = arith.constant 0 : i32
    %c0_i32_0 = arith.constant 0 : i32
    %c0_i32_1 = arith.constant 0 : i32
    %c0_i32_2 = arith.constant 0 : i32
    return %c0_i32, %c0_i32_0, %c0_i32_1 : i32, i32, i32
  }
  func.func @transform_15(%arg0: i32) -> (i32, i32) {
    %c0_i32 = arith.constant 0 : i32
    %c0_i32_0 = arith.constant 0 : i32
    %c0_i32_1 = arith.constant 0 : i32
    return %c0_i32, %c0_i32_0 : i32, i32
  }
  func.func @transform_16(%arg0: i32) -> (i32, i32) {
    %c0_i32 = arith.constant 0 : i32
    %c0_i32_0 = arith.constant 0 : i32
    %c0_i32_1 = arith.constant 0 : i32
    return %c0_i32, %c0_i32_0 : i32, i32
  }
  func.func @transform_17(%arg0: i32) -> (i32, i32) {
    %c0_i32 = arith.constant 0 : i32
    %c0_i32_0 = arith.constant 0 : i32
    %c0_i32_1 = arith.constant 0 : i32
    return %c0_i32, %c0_i32_0 : i32, i32
  }
  func.func @transform_18(%arg0: i32) -> (i32, i32) {
    %c0_i32 = arith.constant 0 : i32
    %c0_i32_0 = arith.constant 0 : i32
    %c0_i32_1 = arith.constant 0 : i32
    return %c0_i32, %c0_i32_0 : i32, i32
  }
  func.func @transform_19(%arg0: i32) -> (i32, i32, i32) {
    %c0_i32 = arith.constant 0 : i32
    %c0_i32_0 = arith.constant 0 : i32
    %c0_i32_1 = arith.constant 0 : i32
    return %arg0, %c0_i32, %c0_i32_0 : i32, i32, i32
  }
  func.func @transform_20(%arg0: i32) -> (i32, i32, i32) {
    %c0_i32 = arith.constant 0 : i32
    %c0_i32_0 = arith.constant 0 : i32
    %c0_i32_1 = arith.constant 0 : i32
    return %arg0, %c0_i32, %c0_i32_0 : i32, i32, i32
  }
}

</mosaic_0001>

<bundles_post_ra>
// kernel: incremental_net_forward.1
= control target key start
LH: loop header
LB: loop body
LE: loop exit
PB: predicated region body
PF: predicated region fallthrough
CT: control target
= control target key end

     0   :  { %s5401_s0 = inlined_call_operand.vmem [shape: f32[2,24,48], index: 0, kind: input, shape index: {}]   ;;  %s5402_s1 = inlined_call_operand.vmem [shape: bf16[48,128], index: 1, kind: input, shape index: {}]   ;;  %s5403_s2 = inlined_call_operand.vmem [shape: f32[24,128], index: 2, kind: input, shape index: {}]   ;;  %s5404_s3 = inlined_call_operand.vmem [shape: f32[2,1,128], index: 3, kind: input, shape index: {}]   ;;  %s5405_s4 = inlined_call_operand.vmem [shape: f32[2,1,128], index: 4, kind: input, shape index: {}]   ;;  %s5406_s5 = inlined_call_operand.vmem [shape: bf16[2,128,384], index: 5, kind: input, shape index: {}]   ;;  %s5407_s6 = inlined_call_operand.vmem [shape: f32[2,1,384], index: 6, kind: input, shape index: {}]   ;;  %s5408_s7 = inlined_call_operand.vmem [shape: bf16[2,128,128], index: 7, kind: input, shape index: {}]   ;;  %s5409_s8 = inlined_call_operand.vmem [shape: f32[2,1,128], index: 8, kind: input, shape index: {}]   ;;  %s5410_s9 = inlined_call_operand.vmem [shape: f32[2,1,128], index: 9, kind: input, shape index: {}]   ;;  %s5411_s10 = inlined_call_operand.vmem [shape: f32[2,1,128], index: 10, kind: input, shape index: {}]   ;;  %s5412_s11 = inlined_call_operand.vmem [shape: bf16[2,128,128], index: 11, kind: input, shape index: {}]   ;;  %s5413_s12 = inlined_call_operand.vmem [shape: f32[2,1,128], index: 12, kind: input, shape index: {}]   ;;  %s5414_s13 = inlined_call_operand.vmem [shape: bf16[2,128,128], index: 13, kind: input, shape index: {}]   ;;  %s5415_s14 = inlined_call_operand.vmem [shape: f32[2,1,128], index: 14, kind: input, shape index: {}]   ;;  %s5416_s15 = inlined_call_operand.vmem [shape: f32[1,128], index: 15, kind: input, shape index: {}]   ;;  %s5417_s16 = inlined_call_operand.vmem [shape: f32[1,128], index: 16, kind: input, shape index: {}]   ;;  %s5418_s17 = inlined_call_operand.vmem [shape: bf16[128,128], index: 17, kind: input, shape index: {}]   ;;  %s5419_s18 = inlined_call_operand.vmem [shape: f32[1,128], index: 18, kind: input, shape index: {}]   ;;  %s5420_s19 = inlined_call_operand.hbm [shape: f32[2,1,128], index: 19, kind: output, shape index: {0}]   ;;  %s5421_s20 = inlined_call_operand.hbm [shape: f32[2,1,128], index: 20, kind: output, shape index: {1}]  }
   0x1   :  { %5435 = sst [smem:[#allocation14_spill]] %s5401_s0 }
   0x2   :  { %5436 = sst [smem:[#allocation15_spill]] %s5402_s1 }
   0x3   :  { %5437 = sst [smem:[#allocation16_spill]] %s5403_s2 }
   0x4   :  { %5438 = sst [smem:[#allocation17_spill]] %s5404_s3 }
   0x5   :  { %5439 = sst [smem:[#allocation18_spill]] %s5405_s4 }
   0x6   :  { %5440 = sst [smem:[#allocation19_spill]] %s5406_s5 }
   0x7   :  { %5441 = sst [smem:[#allocation20_spill]] %s5407_s6 }
   0x8   :  { %26 = vsyncpa [#allocation3], 0 }
   0x9   :  { %28 = vsyncpa [#allocation3 + $0x1], 0 }
   0xa   :  { %29 = vsyncpa [#allocation5], 0 }
   0xb   :  { %31 = vsyncpa [#allocation5 + $0x1], 0  ;;  %s4456_s1 = smov 0   ;;  %s4458_s22 = smov 0  }
   0xc   :  { %s4460_s23 = smov 0   ;;  %s4462_s24 = smov 0  }
   0xd LB: > { %5442 = sst [smem:[#allocation8_spill]] %s4332_s1  ;;  %s4477_s2 = sadd.s32 4294967295, %s4344_s24   ;;  %s4344_s24 = sphi %s4462_s24, %s5462_s24   ;;  %s4340_s23 = sphi %s4460_s23, %s5464_s23   ;;  %s4336_s22 = sphi %s4458_s22, %s5466_s22   ;;  %s4332_s1 = sphi %s4456_s1, %s5465_s1  }
   0xe   : > { %5443 = sst [smem:[#allocation9_spill]] %s4340_s23  ;;  %s3326_s25 = sadd.s32 4294967294, %s4344_s24  }
   0xf   : > { %5444 = sst [smem:[#allocation10_spill]] %s4344_s24  ;;  %s4481_s3 = sadd.s32 1, %s4344_s24  }
  0x10   : > { %5445 = sst [smem:[#allocation11_spill]] %s4481_s3  ;;  %s448_s26 = sadd.s32 1, %s4340_s23 }
  0x11   : > { %s445_s27 = ssub.s32 %s4344_s24, %s4481_s3  ;;  %p458_p0 = scmp.ne.s32.totalorder %s4340_s23, %s4336_s22 }
  0x12   : > { %p446_p1 = scmp.eq.s32.totalorder %s445_s27, 0  ;;  %p459_p2 = scmp.eq.s32.totalorder %s4477_s2, 1 }
  0x13   : > { %p464_p3 = scmp.ne.s32.totalorder %s4336_s22, %s4332_s1  ;;  %p465_p4 = scmp.eq.s32.totalorder %s3326_s25, 1 }
  0x14   : > { %s4492_s28 = scalar_select %p446_p1, %s4340_s23, %s448_s26  }
  0x15   : > { %p4494_p5 = por %p459_p2, %p458_p0  ;;  %p4498_p6 = por %p465_p4, %p464_p3 }
  0x16   : > { %5446 = sst [smem:[#allocation12_spill]] %s4492_s28  ;;  %p3329_p7 = scmp.ge.s32.totalorder %s4344_s24, 1 }
  0x17   : > { %s5448_s29 = scalar_select %p4498_p6, 1, 0 }
  0x18   : > { %p571_p8 = scmp.lt.s32.totalorder %s4344_s24, 3 }
  0x19   : > { %5449 = sst [smem:[#allocation13_spill]] %s5448_s29 }
  0x1a   : > { %p572_p9 = pnand %p3329_p7, %p571_p8 }
  0x1b   : > { %s5450_s21 = sld [smem:[#allocation15_spill]] (!%p572_p9)  ;;  %p632_p10 = scmp.lt.s32.totalorder (!%p572_p9), %s4477_s2, 1  ;;  %vm670_vm0 = vcmask (!%p572_p9), 392192   ;;  %v725_v22 = vlaneseq (!%p572_p9)  ;;  %v4346_v28 = vmov (!%p572_p9), 0.0   ;;  %v4347_v57 = vmov (!%p572_p9), 0  }
  0x1c   : > { %575 = sbr.rel (%p572_p9) target bundleno = 5461 (0x1555), region = 96  ;;  %s5451_s30 = sld [smem:[#allocation14_spill]] (!%p572_p9)  ;;  %1017 = vmatprep.mubr.bf16.mxu1 (!%p572_p9), %v4347_v57  ;;  %vm1358_vm11 = vcmask (!%p572_p9), 1043456   ;;  %vm1199_vm13 = vcmask (!%p572_p9), 195584   ;;  %vm3088_vm14 = vcmask (!%p572_p9), 1040384   ;;  %vm4348_vm15 = vmmov (!%p572_p9), 0  }
  0x1d   : > { %s5452_s28 = sld [smem:[#allocation16_spill]] (!%p572_p9)  ;;  %s5453_s5 = sld [smem:[#allocation19_spill]] (!%p572_p9)  ;;  %v4549_v23 = vand.u32 (!%p572_p9), 127, %v725_v22 }
  0x1e   : > { %s5455_s23 = sld [smem:[#allocation18_spill]] (!%p572_p9)  ;;  %s5457_s6 = sld [smem:[#allocation20_spill]] (!%p572_p9) }
  0x1f   : > { %vm727_vm1 = vcmp.lt.s32.totalorder (!%p572_p9), %v4549_v23, 32  ;;  %vm740_vm2 = vcmp.ge.s32.totalorder (!%p572_p9), %v4549_v23, 16  ;;  %vm741_vm3 = vcmp.lt.s32.totalorder (!%p572_p9), %v4549_v23, 24  ;;  %vm731_vm4 = vcmp.lt.s32.totalorder (!%p572_p9), %v4549_v23, 8  ;;  %s5317_s29 = sand.u32 (!%p572_p9), 1, %s4336_s22   ;;  %s5434_s25 = sshll.u32 (!%p572_p9), %s4477_s2, 4 }
  0x20   : > { %v4555_v29 = vsel (!%p572_p9), %vm727_vm1, 1.0, %v4346_v28  ;;  %vm742_vm5 = vmand (!%p572_p9), %vm740_vm2, %vm741_vm3  ;;  %vm735_vm6 = vcmp.ge.s32.totalorder (!%p572_p9), %v4549_v23, 8  ;;  %vm736_vm7 = vcmp.lt.s32.totalorder (!%p572_p9), %v4549_v23, 16  ;;  %vm745_vm8 = vcmp.ge.s32.totalorder (!%p572_p9), %v4549_v23, 24  ;;  %s4349_s24 = smov (!%p572_p9), [#allocation2]  }
  0x21   : > { %v3993_v0 = vld [vmem:[%s5450_s21] sm:$0xff] (!%p572_p9)   ;;  %v3994_v1 = vld [vmem:[%s5450_s21 + $0x8] sm:$0xff] (!%p572_p9)   ;;  %v3995_v2 = vld [vmem:[%s5450_s21 + $0x10] sm:$0xff] (!%p572_p9)   ;;  %vm749_vm12 = vcmp.lt.s32.totalorder (!%p572_p9), %v4549_v23, 17 }
  0x22   : > { %3689 = vmatprep.subr.bf16.mxu0 (!%p572_p9), %v3993_v0  ;;  %vm737_vm9 = vmand (!%p572_p9), %vm735_vm6, %vm736_vm7 }
  0x23   : > { %s633_s27 = scalar_select %p632_p10, %s4477_s2, 1  ;;  %3690 = vmatpush3.bf16.msra.mxu0 %v3993_v0  ;;  %v651_v8 = vld [vmem:[%s5452_s28 + $0x10] sm:$0xff]  ;;  %v649_v9 = vld [vmem:[%s5452_s28] sm:$0xff]  ;;  %v650_v16 = vld [vmem:[%s5452_s28 + $0x8] sm:$0xff] }
  0x24   : > { %3691 = vmatprep.subr.bf16.mxu0 %v3994_v1  ;;  %v3996_v18 = vld [vmem:[%s5453_s5 + $0x4] ss:$12 sps:$4 sm:$0xff]   ;;  %v3998_v19 = vld [vmem:[%s5453_s5] ss:$12 sps:$4 sm:$0xff]   ;;  %v3999_v20 = vld [vmem:[%s5453_s5 + $0x8] ss:$12 sps:$4 sm:$0xff]   ;;  %s5456_s21 = smov %s5455_s23 }
  0x25   : > { %s3945_s3 = smul.u32 24, %s633_s27  ;;  %v4000_v21 = vld [vmem:[%s5453_s5 + $0x1c] ss:$12 sps:$4 sm:$0xff]   ;;  %985 = vmatprep.subr.bf16.mxu1 %v3996_v18  ;;  %v4002_v41 = vld [vmem:[%s5453_s5 + $0x18] ss:$12 sps:$4 sm:$0xff]   ;;  %vm746_vm10 = vmand %vm745_vm8, %vm727_vm1  ;;  %s625_s28 = scalar_lea.vmem [#allocation2], %s5317_s29 }
  0x26   : > { %986 = vmatpush1.bf16.msra.mxu1 %v3998_v19  ;;  %v4003_v42 = vld [vmem:[%s5453_s5 + $0x20] ss:$12 sps:$4 sm:$0xff]   ;;  %v4006_v44 = vld [vmem:[%s5453_s5 + $0x30] ss:$12 sps:$4 sm:$0xff]   ;;  %v4007_v45 = vld [vmem:[%s5453_s5 + $0x38] ss:$12 sps:$4 sm:$0xff]   ;;  %s5329_s27 = scalar_lea.hbm %s5420_s19, %s5434_s25 }
  0x27   : > { %s636_s0 = scalar_lea.vmem %s5451_s30, %s3945_s3  ;;  %3692 = vmatpush3.bf16.msra.mxu0 %v3994_v1  ;;  %987 = vmatprep.subr.bf16.mxu1 %v4000_v21  ;;  %v4004_v43 = vld [vmem:[%s5453_s5 + $0x34] ss:$12 sps:$4 sm:$0xff]   ;;  %v4008_v46 = vld [vmem:[%s5453_s5 + $0x4c] ss:$12 sps:$4 sm:$0xff]   ;;  %v4011_v48 = vld [vmem:[%s5453_s5 + $0x50] ss:$12 sps:$4 sm:$0xff]  }
  0x28   : > { %v638_v3 = vld [vmem:[%s636_s0] sm:$0xff]  ;;  %v639_v4 = vld [vmem:[%s636_s0 + $0x8] sm:$0xff]  ;;  %v640_v5 = vld [vmem:[%s636_s0 + $0x10] sm:$0xff]  ;;  %3693 = vmatprep.subr.bf16.mxu0 %v3995_v2  ;;  %s5454_s30 = sld [smem:[#allocation17_spill]]  ;;  %s3230_s1 = sshll.u32 %s625_s28, 4  ;;  %s3231_s1 = int_to_ptr.vmem [resolvable:$true] %s3230_s1 }
  0x29   : > { %v641_v6 = vpack.c.bf16 %v639_v4, %v638_v3  ;;  %v642_v7 = vpack.c.bf16 %v640_v5, %v640_v5  ;;  %v4010_v47 = vld [vmem:[%s5453_s5 + $0x48] ss:$12 sps:$4 sm:$0xff]   ;;  %v4012_v49 = vld [vmem:[%s5453_s5 + $0x64] ss:$12 sps:$4 sm:$0xff]   ;;  %v4014_v50 = vld [vmem:[%s5453_s5 + $0x60] ss:$12 sps:$4 sm:$0xff]  }
  0x2a   : > { %988 = vmatpush1.bf16.msra.mxu1 %v4002_v41  ;;  %v4015_v51 = vld [vmem:[%s5453_s5 + $0x68] ss:$12 sps:$4 sm:$0xff]   ;;  %v4019_v53 = vld [vmem:[%s5453_s5 + $0x80] ss:$12 sps:$4 sm:$0xff]   ;;  %v4018_v54 = vld [vmem:[%s5453_s5 + $0x78] ss:$12 sps:$4 sm:$0xff]  }
  0x2b   : > { %3695 = vmatprep.mubr.msk.bf16.mxu0 %vm670_vm0, %v641_v6  ;;  %3694 = vmatpush3.bf16.msra.mxu0 %v3995_v2  ;;  %v4016_v52 = vld [vmem:[%s5453_s5 + $0x7c] ss:$12 sps:$4 sm:$0xff]   ;;  %v4020_v55 = vld [vmem:[%s5453_s5 + $0x94] ss:$12 sps:$4 sm:$0xff]   ;;  %v4023_v56 = vld [vmem:[%s5453_s5 + $0x98] ss:$12 sps:$4 sm:$0xff]  }
  0x2c   : > { %3699 = vmatprep.subr.bf16.mxu0 %v3999_v20  ;;  %989 = vmatprep.subr.bf16.mxu1 %v4004_v43  ;;  %v4022_v58 = vld [vmem:[%s5453_s5 + $0x90] ss:$12 sps:$4 sm:$0xff]   ;;  %v4024_v59 = vld [vmem:[%s5453_s5 + $0xac] ss:$12 sps:$4 sm:$0xff]   ;;  %v4026_v61 = vld [vmem:[%s5453_s5 + $0xa8] ss:$12 sps:$4 sm:$0xff]  }
  0x2d   : > { %v4027_v60 = vld [vmem:[%s5453_s5 + $0xb0] ss:$12 sps:$4 sm:$0xff]   ;;  %v3342_v18 = vld [vmem:[%s5455_s23] ss:$0 sm:$0xff]  ;;  %v4667_v41 = vsel %vm731_vm4, 1.0, %v4346_v28  ;;  %s3214_s3 = scalar_lea.sflag [#allocation3], %s5317_s29 }
  0x2e   : > { %3696 = vmatmul.mubr.msk.bf16.vlgmr.msra.gmra.mrb[0].mxu0 %vm670_vm0, %v642_v7  ;;  %990 = vmatpush1.bf16.msra.mxu1 %v4006_v44  ;;  %v4671_v44 = vsel %vm742_vm5, 1.0, %v4346_v28  ;;  %s4250_s0 = scalar_lea.vmem %s3231_s1, 16 }
  0x2f   : > { %3700 = vmatpush3.bf16.msra.mxu0 %v3999_v20  ;;  %991 = vmatprep.subr.bf16.mxu1 %v4008_v46  ;;  %p4251_p11 = scmp.ne.s32.totalorder %s3231_s1, %s4250_s0 }
  0x30   : > { %3701 = vmatprep.subr.bf16.mxu0 %v4003_v42 }
  0x31   : > { %p4252_p12 = pnand %p4251_p11, %p4494_p5 }
  0x32   : > { %992 = vmatpush1.bf16.msra.mxu1 %v4010_v47 }
  0x33   : > { %3702 = vmatpush3.bf16.msra.mxu0 %v4003_v42  ;;  %993 = vmatprep.subr.bf16.mxu1 %v4012_v49  ;;  %p4253_p13 = pneg %p4252_p12 }
  0x34   : > { %3703 = vmatprep.subr.bf16.mxu0 %v4007_v45 }
  0x36   : > { %994 = vmatpush1.bf16.msra.mxu1 %v4014_v50 }
  0x37   : > { %3704 = vmatpush3.bf16.msra.mxu0 %v4007_v45  ;;  %995 = vmatprep.subr.bf16.mxu1 %v4016_v52 }
  0x38   : > { %3705 = vmatprep.subr.bf16.mxu0 %v4011_v48 }
  0x3a   : > { %996 = vmatpush1.bf16.msra.mxu1 %v4018_v54 }
  0x3b   : > { %3706 = vmatpush3.bf16.msra.mxu0 %v4011_v48  ;;  %997 = vmatprep.subr.bf16.mxu1 %v4020_v55 }
  0x3c   : > { %3707 = vmatprep.subr.bf16.mxu0 %v4015_v51 }
  0x3e   : > { %998 = vmatpush1.bf16.msra.mxu1 %v4022_v58 }
  0x3f   : > { %3708 = vmatpush3.bf16.msra.mxu0 %v4015_v51  ;;  %999 = vmatprep.subr.bf16.mxu1 %v4024_v59  ;;  %v4680_v59 = vsel %vm737_vm9, 1.0, %v4346_v28 }
  0x40   : > { %3709 = vmatprep.subr.bf16.mxu0 %v4019_v53 }
  0x42   : > { %1000 = vmatpush1.bf16.msra.mxu1 %v4026_v61 }
  0x43   : > { %3710 = vmatpush3.bf16.msra.mxu0 %v4019_v53 }
  0x44   : > { %3711 = vmatprep.subr.bf16.mxu0 %v4023_v56 }
  0x47   : > { %3712 = vmatpush3.bf16.msra.mxu0 %v4023_v56 }
  0x48   : > { %3713 = vmatprep.subr.bf16.mxu0 %v4027_v60 }
  0x4b   : > { %3714 = vmatpush3.bf16.msra.mxu0 %v4027_v60 }
 0x101   : > { %v3697_v10 = vpop.f32.mrb[0].mxu0 }
 0x102   : > { %v4524_v11 = vadd.f32 %v3697_v10, %v651_v8  ;;  %v711_v12 = vpop.f32.mrb[1].mxu0 }
 0x103   : > { %v4526_v13 = vadd.f32 %v711_v12, %v649_v9  ;;  %v3698_v14 = vpop.f32.mrb[2].mxu0  ;;  %v3341_v9 = vld [vmem:[%s5454_s30] ss:$0 sm:$0xff] }
 0x104   : > { %756 = vadd.xlane.f32.xlu1 %v4524_v11  ;;  %v714_v15 = vpop.f32.mrb[3].mxu0 }
 0x105   : > { %752 = vadd.xlane.f32.xlu0 %v4526_v13  ;;  %v4533_v17 = vadd.f32 %v714_v15, %v650_v16 }
 0x109   : > { %754 = vadd.xlane.f32.xlu0 %v4533_v17 }
 0x191   : > { %v757_v24 = vpop.xlane.xlu1 %756 }
 0x192   : > { %v760_v25 = vmul.f32 0.03125, %v757_v24  ;;  %v753_v26 = vpop.xlane.xlu0 %752 }
 0x193   : > { %v758_v27 = vmul.f32 0.03125, %v753_v26 }
 0x194   : > { %v763_v30 = vsub.f32 %v4524_v11, %v760_v25 }
 0x195   : > { %v761_v31 = vsub.f32 %v4526_v13, %v758_v27 }
 0x196   : > { %v755_v32 = vpop.xlane.xlu0 %754  ;;  %v4566_v37 = vmul.f32 %v4555_v29, %v763_v30  ;;  %v4647_v30 = vshrl.u32 %v725_v22, 7 }
 0x197   : > { %v759_v33 = vmul.f32 0.03125, %v755_v32  ;;  %v4560_v34 = vmul.f32 %v4555_v29, %v761_v31  ;;  %v840_v32 = vld [vmem:[%s5457_s6] sm:$0x7] }
 0x198   : > { %v769_v39 = vmul.f32 %v4566_v37, %v4566_v37  ;;  %v844_v31 = vsub.s32 0, %v4647_v30 }
 0x199   : > { %v762_v35 = vsub.f32 %v4533_v17, %v759_v33  ;;  %v767_v36 = vmul.f32 %v4560_v34, %v4560_v34  ;;  %v848_v33 = vsub.s32 1, %v4647_v30 }
 0x19b   : > { %770 = vadd.xlane.f32.xlu1 %v767_v36  ;;  %v4569_v38 = vmul.f32 %v4555_v29, %v762_v35  ;;  %v845_v35 = vrot.slane %v840_v32, %v844_v31  ;;  %v849_v22 = vrot.slane %v840_v32, %v848_v33 }
 0x19d   : > { %v768_v40 = vmul.f32 %v4569_v38, %v4569_v38 }
 0x19f   : > { %774 = vadd.xlane.f32.xlu1 %v769_v39  ;;  %772 = vadd.xlane.f32.xlu0 %v768_v40 }
 0x228   : > { %v771_v62 = vpop.xlane.xlu1 %770 }
 0x229   : > { %v776_v63 = vmul.f32 0.03125, %v771_v62 }
 0x22b   : > { %v779_v0 = vadd.f32 1e-06, %v776_v63 }
 0x22c   : > { %v775_v1 = vpop.xlane.xlu1 %774  ;;  %v773_v2 = vpop.xlane.xlu0 %772 }
 0x22d   : > { %4116 = vrsqrt.f32 %v779_v0  ;;  %v778_v3 = vmul.f32 0.03125, %v775_v1  ;;  %v777_v4 = vmul.f32 0.03125, %v773_v2  ;;  %v4683_v0 = vsel %vm746_vm10, 1.0, %v4346_v28 }
 0x22f   : > { %v781_v5 = vadd.f32 1e-06, %v778_v3  ;;  %v780_v6 = vadd.f32 1e-06, %v777_v4 }
 0x231   : > { %4118 = vrsqrt.f32 %v781_v5 }
 0x232   : > { %4120 = vrsqrt.f32 %v780_v6 }
 0x237   : > { %v4117_v7 = vpop.eup %4116 }
 0x238   : > { %v785_v8 = vmul.f32 %v4117_v7, %v4560_v34  ;;  %v852_v34 = vsub.s32 2, %v4647_v30 }
 0x23a   : > { %v794_v16 = vmul.f32 %v3341_v9, %v785_v8 }
 0x23b   : > { %v4119_v10 = vpop.eup %4118 }
 0x23c   : > { %v4121_v12 = vpop.eup %4120  ;;  %v787_v14 = vmul.f32 %v4119_v10, %v4566_v37  ;;  %v803_v24 = vadd.f32 %v3342_v18, %v794_v16  ;;  %v853_v37 = vrot.slane %v840_v32, %v852_v34 }
 0x23d   : > { %v786_v15 = vmul.f32 %v4121_v12, %v4569_v38 }
 0x23e   : > { %v796_v19 = vmul.f32 %v3341_v9, %v787_v14 }
 0x23f   : > { %v795_v20 = vmul.f32 %v3341_v9, %v786_v15 }
 0x240   : > { %v805_v21 = vadd.f32 %v3342_v18, %v796_v19 }
 0x241   : > { %v804_v25 = vadd.f32 %v3342_v18, %v795_v20 }
 0x242   : > { %v807_v26 = vpack.c.bf16 %v805_v21, %v805_v21 }
 0x243   : > { %v806_v27 = vpack.c.bf16 %v804_v25, %v803_v24 }
 0x245   : > { %1018 = vmatmul.mubr.bf16.vlgmr.msra.gmra.mrb[0].mxu1 %v806_v27  ;;  %3715 = vmatprep.mubr.bf16.mxu0 %v806_v27 }
 0x246   : > { %3716 = vmatmul.mubr.bf16.vlgmr.msra.gmra.mrb[4].mxu0 %v807_v26  ;;  %1027 = vmatprep.mubr.bf16.mxu1 %v4347_v57 }
 0x24d   : > { %1028 = vmatmul.mubr.bf16.gmra.mrb[4].mxu1 %v807_v26 }
 0x318   : > { %v1019_v36 = vpop.f32.mrb[0].mxu1 }
 0x319   : > { %v1020_v38 = vadd.f32 %v1019_v36, %v845_v35  ;;  %v1021_v39 = vpop.f32.mrb[1].mxu1  ;;  %v3717_v40 = vpop.f32.mrb[4].mxu0 }
 0x31a   : > { %v1023_v42 = vpop.f32.mrb[2].mxu1  ;;  %v1070_v43 = vpop.f32.mrb[5].mxu0  ;;  %v1022_v45 = vadd.f32 %v1021_v39, %v849_v22  ;;  %v1079_v49 = vadd.f32 %v3717_v40, %v853_v37 }
 0x31b   : > { %v1024_v46 = vadd.f32 %v1023_v42, %v845_v35  ;;  %v1025_v47 = vpop.f32.mrb[3].mxu1  ;;  %v3718_v48 = vpop.f32.mrb[6].mxu0  ;;  %v1071_v50 = vadd.f32 %v1070_v43, %v853_v37  ;;  %v1084_v53 = vmul.f32 %v4667_v41, %v1020_v38  ;;  %v1090_v56 = vmul.f32 %v4671_v44, %v1020_v38 }
 0x31c   : > { %v1026_v51 = vadd.f32 %v1025_v47, %v849_v22  ;;  %v1073_v52 = vpop.f32.mrb[7].mxu0  ;;  %v1087_v2 = vmul.f32 %v4680_v59, %v1020_v38  ;;  %v1339_v3 = vpack.c.bf16 %v1079_v49, %v1079_v49  ;;  %v1093_v9 = vmul.f32 %v4683_v0, %v1020_v38 }
 0x31d   : > { %v1074_v54 = vadd.f32 %v1073_v52, %v853_v37  ;;  %v1085_v55 = vmul.f32 %v4667_v41, %v1024_v46  ;;  %v1091_v58 = vmul.f32 %v4671_v44, %v1024_v46  ;;  %v1088_v8 = vmul.f32 %v4680_v59, %v1024_v46 }
 0x31e   : > { %v1102_v60 = vpack.c.bf16 %v1026_v51, %v1022_v45  ;;  %v1094_v10 = vmul.f32 %v4683_v0, %v1024_v46  ;;  %v1360_v26 = vsel %vm1358_vm11, %v1339_v3, 0 }
 0x31f   : > { %v1338_v61 = vpack.c.bf16 %v1074_v54, %v1071_v50  ;;  %v1096_v62 = vpack.c.bf16 %v1085_v55, %v1084_v53  ;;  %v1099_v63 = vpack.c.bf16 %v1091_v58, %v1090_v56 }
 0x320   : > { %v1029_v1 = vpop.f32.mrb[4].mxu1  ;;  %3719 = vmatprep.subr.bf16.mxu1 %v1102_v60 }
 0x321   : > { %v1030_v4 = vadd.f32 %v1029_v1, %v845_v35  ;;  %v1031_v5 = vpop.f32.mrb[5].mxu1  ;;  %3720 = vmatpush3.bf16.xpose.msra.mxu1 %v1102_v60  ;;  %3723 = vmatprep.mubr.bf16.mxu1 %v1096_v62 }
 0x322   : > { %v1032_v6 = vadd.f32 %v1031_v5, %v849_v22  ;;  %3735 = vmatprep.subr.bf16.mxu0 %v1338_v61  ;;  %v1033_v7 = vpop.f32.mrb[6].mxu1 }
 0x323   : > { %v1086_v12 = vmul.f32 %v4667_v41, %v1030_v4  ;;  %3736 = vmatpush3.bf16.msra.mxu0 %v1338_v61  ;;  %v1034_v14 = vpop.f32.mrb[7].mxu1  ;;  %v1089_v15 = vmul.f32 %v4680_v59, %v1030_v4  ;;  %v1092_v16 = vmul.f32 %v4671_v44, %v1030_v4  ;;  %v1095_v18 = vmul.f32 %v4683_v0, %v1030_v4 }
 0x324   : > { %v1103_v19 = vpack.c.bf16 %v1032_v6, %v1032_v6  ;;  %3943 = vmatprep.subr.msk.bf16.mxu0 %vm1358_vm11, %v1339_v3 }
 0x325   : > { %v1097_v20 = vpack.c.bf16 %v1087_v2, %v1086_v12  ;;  %v1098_v21 = vpack.c.bf16 %v1089_v15, %v1088_v8  ;;  %v1100_v24 = vpack.c.bf16 %v1093_v9, %v1092_v16  ;;  %v1101_v25 = vpack.c.bf16 %v1095_v18, %v1094_v10 }
 0x326   : > { %3721 = vmatprep.subr.bf16.mxu1 %v1103_v19 }
 0x327   : > { %3738 = vmatpush3.bf16.msra.mxu0 %v1360_v26 }
 0x329   : > { %3722 = vmatpush3.bf16.xpose.msra.mxu1 %v1103_v19 }
 0x330   : > { %3724 = vmatmul.mubr.bf16.vlgmr.msra.gmra.mrb[8].mxu1 %v1097_v20 }
 0x331   : > { %3727 = vmatprep.mubr.bf16.mxu1 %v1098_v21 }
 0x338   : > { %3728 = vmatmul.mubr.bf16.gmra.mrb[12].mxu1 %v1099_v63 }
 0x339   : > { %3731 = vmatprep.mubr.bf16.mxu1 %v1100_v24 }
 0x340   : > { %3732 = vmatmul.mubr.bf16.gmra.mrb[16].mxu1 %v1101_v25 }
 0x403   : > { %v3725_v27 = vpop.f32.mrb[8].mxu1 }
 0x404   : > { %v1138_v32 = vpop.f32.mrb[9].mxu1  ;;  %v1189_v38 = vsel %vm749_vm12, %v3725_v27, -1e+30 }
 0x405   : > { %v1187_v35 = vsel %vm749_vm12, %v1138_v32, -1e+30  ;;  %v3726_v22 = vpop.f32.mrb[10].mxu1  ;;  %v1206_v43 = vsel %vm1199_vm13, %v1189_v38, -inf }
 0x406   : > { %v1141_v36 = vpop.f32.mrb[11].mxu1  ;;  %v1200_v37 = vsel %vm1199_vm13, %v1187_v35, -inf  ;;  %v1190_v42 = vsel %vm749_vm12, %v3726_v22, -1e+30 }
 0x407   : > { %v1188_v39 = vsel %vm749_vm12, %v1141_v36, -1e+30  ;;  %1201 = vmax.xlane.f32.xlu0 %v1200_v37  ;;  %v1209_v47 = vsel %vm1199_vm13, %v1190_v42, -inf }
 0x408   : > { %v1203_v40 = vsel %vm1199_vm13, %v1188_v39, -inf }
 0x409   : > { %1204 = vmax.xlane.f32.xlu1 %v1203_v40 }
 0x40b   : > { %1207 = vmax.xlane.f32.xlu0 %v1206_v43  ;;  %v3729_v45 = vpop.f32.mrb[12].mxu1 }
 0x40c   : > { %v1154_v46 = vpop.f32.mrb[13].mxu1  ;;  %v1193_v52 = vsel %vm749_vm12, %v3729_v45, -1e+30 }
 0x40d   : > { %v1191_v48 = vsel %vm749_vm12, %v1154_v46, -1e+30  ;;  %1210 = vmax.xlane.f32.xlu1 %v1209_v47  ;;  %v3730_v49 = vpop.f32.mrb[14].mxu1  ;;  %v1218_v56 = vsel %vm1199_vm13, %v1193_v52, -inf }
 0x40e   : > { %v1157_v50 = vpop.f32.mrb[15].mxu1  ;;  %v1212_v51 = vsel %vm1199_vm13, %v1191_v48, -inf  ;;  %v1194_v55 = vsel %vm749_vm12, %v3730_v49, -1e+30 }
 0x40f   : > { %v1192_v53 = vsel %vm749_vm12, %v1157_v50, -1e+30  ;;  %1213 = vmax.xlane.f32.xlu0 %v1212_v51  ;;  %v1221_v61 = vsel %vm1199_vm13, %v1194_v55, -inf }
 0x410   : > { %v1215_v54 = vsel %vm1199_vm13, %v1192_v53, -inf }
 0x411   : > { %1216 = vmax.xlane.f32.xlu1 %v1215_v54 }
 0x413   : > { %1219 = vmax.xlane.f32.xlu0 %v1218_v56  ;;  %v3733_v58 = vpop.f32.mrb[16].mxu1 }
 0x414   : > { %v1170_v60 = vpop.f32.mrb[17].mxu1  ;;  %v4725_v3 = vsel %vm749_vm12, %v3733_v58, -1e+30 }
 0x415   : > { %v1195_v62 = vsel %vm749_vm12, %v1170_v60, -1e+30  ;;  %1222 = vmax.xlane.f32.xlu1 %v1221_v61  ;;  %v3734_v63 = vpop.f32.mrb[18].mxu1  ;;  %v1230_v7 = vsel %vm1199_vm13, %v4725_v3, -inf }
 0x416   : > { %v1173_v1 = vpop.f32.mrb[19].mxu1  ;;  %v1224_v2 = vsel %vm1199_vm13, %v1195_v62, -inf  ;;  %v4732_v6 = vsel %vm749_vm12, %v3734_v63, -1e+30 }
 0x417   : > { %v1196_v4 = vsel %vm749_vm12, %v1173_v1, -1e+30  ;;  %1225 = vmax.xlane.f32.xlu0 %v1224_v2  ;;  %v1233_v8 = vsel %vm1199_vm13, %v4732_v6, -inf }
 0x418   : > { %v1227_v5 = vsel %vm1199_vm13, %v1196_v4, -inf }
 0x419   : > { %1228 = vmax.xlane.f32.xlu1 %v1227_v5 }
 0x41b   : > { %1231 = vmax.xlane.f32.xlu0 %v1230_v7 }
 0x41d   : > { %1234 = vmax.xlane.f32.xlu1 %v1233_v8 }
 0x494   : > { %v1202_v9 = vpop.xlane.xlu0 %1201 }
 0x495   : > { %v1236_v10 = vsub.f32 %v1187_v35, %v1202_v9 }
 0x496   : > { %v1205_v12 = vpop.xlane.xlu1 %1204 }
 0x497   : > { %v1248_v14 = vmul.f32 1.442695, %v1236_v10  ;;  %v1237_v15 = vsub.f32 %v1188_v39, %v1205_v12 }
 0x498   : > { %v1208_v16 = vpop.xlane.xlu0 %1207 }
 0x499   : > { %4122 = vpow2.f32 %v1248_v14  ;;  %v1250_v18 = vmul.f32 1.442695, %v1237_v15  ;;  %v1238_v19 = vsub.f32 %v1189_v38, %v1208_v16 }
 0x49a   : > { %v1211_v20 = vpop.xlane.xlu1 %1210 }
 0x49b   : > { %4124 = vpow2.f32 %v1250_v18  ;;  %v1252_v21 = vmul.f32 1.442695, %v1238_v19  ;;  %v1239_v24 = vsub.f32 %v1190_v42, %v1211_v20 }
 0x49c   : > { %v1214_v25 = vpop.xlane.xlu0 %1213 }
 0x49d   : > { %4126 = vpow2.f32 %v1252_v21  ;;  %v1254_v26 = vmul.f32 1.442695, %v1239_v24  ;;  %v1240_v27 = vsub.f32 %v1191_v48, %v1214_v25  ;;  %v4028_v25 = vld [vmem:[%s5408_s7] sm:$0xff]  }
 0x49e   : > { %v1217_v32 = vpop.xlane.xlu1 %1216  ;;  %3751 = vmatprep.subr.bf16.mxu1 %v4028_v25 }
 0x49f   : > { %4128 = vpow2.f32 %v1254_v26  ;;  %v1256_v22 = vmul.f32 1.442695, %v1240_v27  ;;  %v1241_v36 = vsub.f32 %v1192_v53, %v1217_v32  ;;  %v4029_v26 = vld [vmem:[%s5408_s7 + $0x8] sm:$0xff]   ;;  %3752 = vmatpush3.bf16.msra.mxu1 %v4028_v25  ;;  %v4035_v25 = vld [vmem:[%s5408_s7 + $0x38] sm:$0xff]  }
 0x4a0   : > { %v1220_v35 = vpop.xlane.xlu0 %1219  ;;  %3753 = vmatprep.subr.bf16.mxu1 %v4029_v26 }
 0x4a1   : > { %4130 = vpow2.f32 %v1256_v22  ;;  %v1258_v37 = vmul.f32 1.442695, %v1241_v36  ;;  %v1242_v39 = vsub.f32 %v1193_v52, %v1220_v35 }
 0x4a2   : > { %v1223_v40 = vpop.xlane.xlu1 %1222 }
 0x4a3   : > { %v4738_v43 = vpop.eup %4122  ;;  %4132 = vpow2.f32 %v1258_v37  ;;  %v1260_v38 = vmul.f32 1.442695, %v1242_v39  ;;  %v1243_v45 = vsub.f32 %v1194_v55, %v1223_v40  ;;  %3754 = vmatpush3.bf16.msra.mxu1 %v4029_v26 }
 0x4a4   : > { %v1226_v46 = vpop.xlane.xlu0 %1225  ;;  %v1272_v42 = vsel %vm1199_vm13, %v4738_v43, 0.0 }
 0x4a5   : > { %v4742_v47 = vpop.eup %4124  ;;  %4134 = vpow2.f32 %v1260_v38  ;;  %v1262_v48 = vmul.f32 1.442695, %v1243_v45  ;;  %v1244_v49 = vsub.f32 %v1195_v62, %v1226_v46  ;;  %1273 = vadd.xlane.f32.xlu0 %v1272_v42 }
 0x4a6   : > { %v1229_v50 = vpop.xlane.xlu1 %1228  ;;  %v1275_v51 = vsel %vm1199_vm13, %v4742_v47, 0.0 }
 0x4a7   : > { %v4746_v52 = vpop.eup %4126  ;;  %4136 = vpow2.f32 %v1262_v48  ;;  %v1264_v53 = vmul.f32 1.442695, %v1244_v49  ;;  %v1245_v54 = vsub.f32 %v1196_v4, %v1229_v50  ;;  %1276 = vadd.xlane.f32.xlu1 %v1275_v51 }
 0x4a8   : > { %v1232_v55 = vpop.xlane.xlu0 %1231  ;;  %v1278_v56 = vsel %vm1199_vm13, %v4746_v52, 0.0 }
 0x4a9   : > { %v4750_v58 = vpop.eup %4128  ;;  %4138 = vpow2.f32 %v1264_v53  ;;  %v1266_v60 = vmul.f32 1.442695, %v1245_v54  ;;  %v1246_v61 = vsub.f32 %v4725_v3, %v1232_v55  ;;  %1279 = vadd.xlane.f32.xlu0 %v1278_v56 }
 0x4aa   : > { %v1235_v62 = vpop.xlane.xlu1 %1234  ;;  %v1281_v63 = vsel %vm1199_vm13, %v4750_v58, 0.0 }
 0x4ab   : > { %v4755_v1 = vpop.eup %4130  ;;  %4140 = vpow2.f32 %v1266_v60  ;;  %v1268_v2 = vmul.f32 1.442695, %v1246_v61  ;;  %v1247_v4 = vsub.f32 %v4732_v6, %v1235_v62  ;;  %1282 = vadd.xlane.f32.xlu1 %v1281_v63 }
 0x4ac   : > { %v1284_v5 = vsel %vm1199_vm13, %v4755_v1, 0.0 }
 0x4ad   : > { %v4760_v7 = vpop.eup %4132  ;;  %4142 = vpow2.f32 %v1268_v2  ;;  %v1270_v8 = vmul.f32 1.442695, %v1247_v4  ;;  %1285 = vadd.xlane.f32.xlu0 %v1284_v5 }
 0x4ae   : > { %v1287_v3 = vsel %vm1199_vm13, %v4760_v7, 0.0 }
 0x4af   : > { %v4764_v9 = vpop.eup %4134  ;;  %4144 = vpow2.f32 %v1270_v8  ;;  %1288 = vadd.xlane.f32.xlu1 %v1287_v3 }
 0x4b0   : > { %v1290_v10 = vsel %vm1199_vm13, %v4764_v9, 0.0 }
 0x4b1   : > { %v4768_v6 = vpop.eup %4136  ;;  %1291 = vadd.xlane.f32.xlu0 %v1290_v10 }
 0x4b2   : > { %v1293_v12 = vsel %vm1199_vm13, %v4768_v6, 0.0 }
 0x4b3   : > { %v4772_v14 = vpop.eup %4138  ;;  %1294 = vadd.xlane.f32.xlu1 %v1293_v12 }
 0x4b4   : > { %v1296_v15 = vsel %vm1199_vm13, %v4772_v14, 0.0 }
 0x4b5   : > { %v4776_v16 = vpop.eup %4140  ;;  %1297 = vadd.xlane.f32.xlu0 %v1296_v15 }
 0x4b6   : > { %v1299_v18 = vsel %vm1199_vm13, %v4776_v16, 0.0 }
 0x4b7   : > { %v4780_v19 = vpop.eup %4142  ;;  %1300 = vadd.xlane.f32.xlu1 %v1299_v18 }
 0x4b8   : > { %v1302_v20 = vsel %vm1199_vm13, %v4780_v19, 0.0 }
 0x4b9   : > { %v4784_v21 = vpop.eup %4144  ;;  %1303 = vadd.xlane.f32.xlu0 %v1302_v20 }
 0x4ba   : > { %v1305_v24 = vsel %vm1199_vm13, %v4784_v21, 0.0 }
 0x4bb   : > { %1306 = vadd.xlane.f32.xlu1 %v1305_v24 }
 0x532   : > { %v1274_v27 = vpop.xlane.xlu0 %1273 }
 0x533   : > { %4146 = vrcp.f32 %v1274_v27 }
 0x534   : > { %v1277_v32 = vpop.xlane.xlu1 %1276 }
 0x535   : > { %4148 = vrcp.f32 %v1277_v32 }
 0x536   : > { %v1280_v22 = vpop.xlane.xlu0 %1279 }
 0x537   : > { %4150 = vrcp.f32 %v1280_v22 }
 0x538   : > { %v1283_v36 = vpop.xlane.xlu1 %1282 }
 0x539   : > { %4152 = vrcp.f32 %v1283_v36 }
 0x53a   : > { %v1286_v35 = vpop.xlane.xlu0 %1285 }
 0x53b   : > { %4154 = vrcp.f32 %v1286_v35 }
 0x53c   : > { %v1289_v37 = vpop.xlane.xlu1 %1288 }
 0x53d   : > { %v4147_v39 = vpop.eup %4146  ;;  %4156 = vrcp.f32 %v1289_v37 }
 0x53e   : > { %v1292_v40 = vpop.xlane.xlu0 %1291  ;;  %v1320_v46 = vmul.f32 %v4147_v39, %v4738_v43 }
 0x53f   : > { %v4149_v38 = vpop.eup %4148  ;;  %4158 = vrcp.f32 %v1292_v40 }
 0x540   : > { %v1295_v45 = vpop.xlane.xlu1 %1294  ;;  %v1321_v42 = vmul.f32 %v4149_v38, %v4742_v47 }
 0x541   : > { %v4151_v48 = vpop.eup %4150  ;;  %4160 = vrcp.f32 %v1295_v45 }
 0x542   : > { %v1298_v49 = vpop.xlane.xlu0 %1297  ;;  %v1332_v50 = vpack.c.bf16 %v1321_v42, %v1320_v46  ;;  %v1322_v53 = vmul.f32 %v4151_v48, %v4746_v52 }
 0x543   : > { %v4153_v51 = vpop.eup %4152  ;;  %4162 = vrcp.f32 %v1298_v49 }
 0x544   : > { %v1323_v54 = vmul.f32 %v4153_v51, %v4750_v58  ;;  %3739 = vmatprep.mubr.msk.bf16.mxu0 %vm1199_vm13, %v1332_v50  ;;  %v1301_v55 = vpop.xlane.xlu1 %1300 }
 0x545   : > { %v4155_v56 = vpop.eup %4154  ;;  %4164 = vrcp.f32 %v1301_v55 }
 0x546   : > { %v1304_v60 = vpop.xlane.xlu0 %1303  ;;  %v1333_v61 = vpack.c.bf16 %v1323_v54, %v1322_v53  ;;  %v1324_v62 = vmul.f32 %v4155_v56, %v4755_v1 }
 0x547   : > { %v4157_v43 = vpop.eup %4156  ;;  %4166 = vrcp.f32 %v1304_v60 }
 0x548   : > { %3740 = vmatmul.mubr.msk.bf16.vlgmr.msra.gmra.mrb[8].mxu0 %vm1199_vm13, %v1333_v61  ;;  %v1307_v47 = vpop.xlane.xlu1 %1306  ;;  %v1325_v63 = vmul.f32 %v4157_v43, %v4760_v7 }
 0x549   : > { %v4159_v2 = vpop.eup %4158  ;;  %4168 = vrcp.f32 %v1307_v47 }
 0x54a   : > { %v1334_v52 = vpack.c.bf16 %v1325_v63, %v1324_v62  ;;  %v1326_v4 = vmul.f32 %v4159_v2, %v4764_v9 }
 0x54b   : > { %v4161_v58 = vpop.eup %4160 }
 0x54c   : > { %3743 = vmatprep.mubr.msk.bf16.mxu0 %vm1199_vm13, %v1334_v52  ;;  %v1327_v5 = vmul.f32 %v4161_v58, %v4768_v6  ;;  %v4030_v6 = vld [vmem:[%s5408_s7 + $0x10] sm:$0xff]  }
 0x54d   : > { %v4163_v8 = vpop.eup %4162  ;;  %3755 = vmatprep.subr.bf16.mxu1 %v4030_v6 }
 0x54e   : > { %v1335_v3 = vpack.c.bf16 %v1327_v5, %v1326_v4  ;;  %v1328_v12 = vmul.f32 %v4163_v8, %v4772_v14  ;;  %3756 = vmatpush3.bf16.msra.mxu1 %v4030_v6  ;;  %v4031_v14 = vld [vmem:[%s5408_s7 + $0x18] sm:$0xff]  }
 0x54f   : > { %v4165_v10 = vpop.eup %4164  ;;  %3757 = vmatprep.subr.bf16.mxu1 %v4031_v14 }
 0x550   : > { %3744 = vmatmul.mubr.msk.bf16.gmra.mrb[12].mxu0 %vm1199_vm13, %v1335_v3  ;;  %v1329_v1 = vmul.f32 %v4165_v10, %v4776_v16  ;;  %v4032_v16 = vld [vmem:[%s5408_s7 + $0x20] sm:$0xff]  }
 0x551   : > { %v4167_v7 = vpop.eup %4166 }
 0x552   : > { %v1336_v15 = vpack.c.bf16 %v1329_v1, %v1328_v12  ;;  %v1330_v20 = vmul.f32 %v4167_v7, %v4780_v19  ;;  %3758 = vmatpush3.bf16.msra.mxu1 %v4031_v14  ;;  %v4033_v19 = vld [vmem:[%s5408_s7 + $0x28] sm:$0xff]   ;;  %v3373_v12 = vld [vmem:[%s5409_s8] ss:$0 sm:$0xff] }
 0x553   : > { %v4169_v18 = vpop.eup %4168  ;;  %3759 = vmatprep.subr.bf16.mxu1 %v4032_v16 }
 0x554   : > { %3747 = vmatprep.mubr.msk.bf16.mxu0 %vm1199_vm13, %v1336_v15  ;;  %v1331_v9 = vmul.f32 %v4169_v18, %v4784_v21  ;;  %v4034_v21 = vld [vmem:[%s5408_s7 + $0x30] sm:$0xff]  }
 0x556   : > { %v1337_v24 = vpack.c.bf16 %v1331_v9, %v1330_v20  ;;  %3760 = vmatpush3.bf16.msra.mxu1 %v4032_v16 }
 0x557   : > { %3761 = vmatprep.subr.bf16.mxu1 %v4033_v19 }
 0x558   : > { %3748 = vmatmul.mubr.msk.bf16.gmra.mrb[16].mxu0 %vm1199_vm13, %v1337_v24 }
 0x55a   : > { %3762 = vmatpush3.bf16.msra.mxu1 %v4033_v19  ;;  %v4036_v19 = vld [vmem:[%s5412_s11] sm:$0xff]  }
 0x55b   : > { %3763 = vmatprep.subr.bf16.mxu1 %v4034_v21  ;;  %3771 = vmatprep.subr.bf16.mxu0 %v4036_v19 }
 0x55c   : > { %3772 = vmatpush3.bf16.msra.mxu0 %v4036_v19  ;;  %v4045_v19 = vld [vmem:[%s5414_s13 + $0x8] sm:$0xff]  }
 0x55e   : > { %3764 = vmatpush3.bf16.msra.mxu1 %v4034_v21 }
 0x55f   : > { %3765 = vmatprep.subr.bf16.mxu1 %v4035_v25 }
 0x562   : > { %3766 = vmatpush3.bf16.msra.mxu1 %v4035_v25 }
 0x61b   : > { %v3741_v26 = vpop.f32.mrb[8].mxu0 }
 0x61c   : > { %v1396_v27 = vpop.f32.mrb[9].mxu0  ;;  %v1445_v51 = vmul.f32 %v3741_v26, %v4667_v41 }
 0x61d   : > { %v1443_v32 = vmul.f32 %v4667_v41, %v1396_v27  ;;  %v3742_v22 = vpop.f32.mrb[10].mxu0 }
 0x61e   : > { %v1446_v36 = vmul.f32 %v3742_v22, %v4680_v59  ;;  %v1399_v35 = vpop.f32.mrb[11].mxu0 }
 0x61f   : > { %v1444_v45 = vmul.f32 %v4667_v41, %v1399_v35 }
 0x620   : > { %v1449_v37 = vadd.f32 %v1446_v36, %v1443_v32 }
 0x623   : > { %v3745_v39 = vpop.f32.mrb[12].mxu0 }
 0x624   : > { %v1452_v40 = vmul.f32 %v3745_v39, %v4671_v44  ;;  %v1412_v38 = vpop.f32.mrb[13].mxu0 }
 0x625   : > { %v1447_v46 = vmul.f32 %v4680_v59, %v1412_v38  ;;  %v3746_v42 = vpop.f32.mrb[14].mxu0 }
 0x626   : > { %v1455_v48 = vadd.f32 %v1452_v40, %v1449_v37  ;;  %v1453_v49 = vmul.f32 %v3746_v42, %v4671_v44  ;;  %v1415_v50 = vpop.f32.mrb[15].mxu0  ;;  %v4039_v42 = vld [vmem:[%s5412_s11 + $0x18] sm:$0xff]  }
 0x627   : > { %v1450_v53 = vadd.f32 %v1447_v46, %v1444_v45  ;;  %v1448_v54 = vmul.f32 %v4680_v59, %v1415_v50  ;;  %v4038_v46 = vld [vmem:[%s5412_s11 + $0x10] sm:$0xff]  }
 0x628   : > { %v4042_v50 = vld [vmem:[%s5412_s11 + $0x30] sm:$0xff]  }
 0x629   : > { %v1456_v55 = vadd.f32 %v1453_v49, %v1450_v53  ;;  %v1451_v56 = vadd.f32 %v1448_v54, %v1445_v51  ;;  %v4041_v49 = vld [vmem:[%s5412_s11 + $0x28] sm:$0xff]   ;;  %v4043_v51 = vld [vmem:[%s5412_s11 + $0x38] sm:$0xff]  }
 0x62b   : > { %v3749_v60 = vpop.f32.mrb[16].mxu0 }
 0x62c   : > { %v1459_v61 = vmul.f32 %v3749_v60, %v4683_v0  ;;  %v1428_v43 = vpop.f32.mrb[17].mxu0 }
 0x62d   : > { %v1454_v47 = vmul.f32 %v4671_v44, %v1428_v43  ;;  %v3750_v62 = vpop.f32.mrb[18].mxu0 }
 0x62e   : > { %v1462_v63 = vadd.f32 %v1459_v61, %v1456_v55  ;;  %v1460_v2 = vmul.f32 %v3750_v62, %v4683_v0  ;;  %v1431_v52 = vpop.f32.mrb[19].mxu0 }
 0x62f   : > { %v1457_v58 = vadd.f32 %v1454_v47, %v1451_v56  ;;  %v1458_v4 = vmul.f32 %v4683_v0, %v1431_v52 }
 0x631   : > { %v1463_v5 = vadd.f32 %v1460_v2, %v1457_v58  ;;  %v1461_v8 = vadd.f32 %v1458_v4, %v1455_v48  ;;  %v4040_v48 = vld [vmem:[%s5412_s11 + $0x20] sm:$0xff]  }
 0x632   : > { %v3382_v2 = vld [vmem:[%s5410_s9] ss:$0 sm:$0xff] }
 0x633   : > { %v1465_v3 = vpack.c.bf16 %v1463_v5, %v1463_v5  ;;  %v1464_v10 = vpack.c.bf16 %v1462_v63, %v1461_v8 }
 0x635   : > { %3767 = vmatprep.mubr.bf16.mxu1 %v1464_v10 }
 0x636   : > { %3768 = vmatmul.mubr.bf16.vlgmr.msra.gmra.mrb[20].mxu1 %v1465_v3  ;;  %v3383_v3 = vld [vmem:[%s5411_s10] ss:$0 sm:$0xff] }
 0x709   : > { %v3769_v1 = vpop.f32.mrb[20].mxu1 }
 0x70a   : > { %v1571_v7 = vpop.f32.mrb[21].mxu1  ;;  %v1580_v9 = vadd.f32 %v3769_v1, %v3373_v12 }
 0x70b   : > { %v1572_v15 = vadd.f32 %v3373_v12, %v1571_v7  ;;  %v3770_v18 = vpop.f32.mrb[22].mxu1 }
 0x70c   : > { %v1574_v20 = vpop.f32.mrb[23].mxu1  ;;  %v4853_v16 = vadd.f32 %v1580_v9, %v4524_v11 }
 0x70d   : > { %v4846_v24 = vadd.f32 %v1572_v15, %v4526_v13  ;;  %v1575_v6 = vadd.f32 %v3373_v12, %v1574_v20  ;;  %v4037_v13 = vld [vmem:[%s5412_s11 + $0x8] sm:$0xff]  }
 0x70e   : > { %3773 = vmatprep.subr.bf16.mxu0 %v4037_v13 }
 0x70f   : > { %v4849_v14 = vadd.f32 %v1575_v6, %v4533_v17  ;;  %1590 = vadd.xlane.f32.xlu0 %v4846_v24  ;;  %3774 = vmatpush3.bf16.msra.mxu0 %v4037_v13  ;;  %v4044_v6 = vld [vmem:[%s5414_s13] sm:$0xff]   ;;  %v4046_v13 = vld [vmem:[%s5414_s13 + $0x10] sm:$0xff]  }
 0x710   : > { %3775 = vmatprep.subr.bf16.mxu0 %v4038_v46  ;;  %3791 = vmatprep.subr.bf16.mxu1 %v4044_v6 }
 0x711   : > { %1592 = vadd.xlane.f32.xlu1 %v4849_v14  ;;  %3792 = vmatpush3.bf16.msra.mxu1 %v4044_v6 }
 0x712   : > { %3793 = vmatprep.subr.bf16.mxu1 %v4045_v19 }
 0x713   : > { %1594 = vadd.xlane.f32.xlu0 %v4853_v16  ;;  %3776 = vmatpush3.bf16.msra.mxu0 %v4038_v46 }
 0x714   : > { %3777 = vmatprep.subr.bf16.mxu0 %v4039_v42 }
 0x715   : > { %3794 = vmatpush3.bf16.msra.mxu1 %v4045_v19 }
 0x716   : > { %3795 = vmatprep.subr.bf16.mxu1 %v4046_v13 }
 0x717   : > { %3778 = vmatpush3.bf16.msra.mxu0 %v4039_v42 }
 0x718   : > { %3779 = vmatprep.subr.bf16.mxu0 %v4040_v48 }
 0x719   : > { %3796 = vmatpush3.bf16.msra.mxu1 %v4046_v13 }
 0x71b   : > { %3780 = vmatpush3.bf16.msra.mxu0 %v4040_v48 }
 0x71c   : > { %3781 = vmatprep.subr.bf16.mxu0 %v4041_v49 }
 0x71f   : > { %3782 = vmatpush3.bf16.msra.mxu0 %v4041_v49 }
 0x720   : > { %3783 = vmatprep.subr.bf16.mxu0 %v4042_v50 }
 0x723   : > { %3784 = vmatpush3.bf16.msra.mxu0 %v4042_v50 }
 0x724   : > { %3785 = vmatprep.subr.bf16.mxu0 %v4043_v51 }
 0x727   : > { %3786 = vmatpush3.bf16.msra.mxu0 %v4043_v51 }
 0x79c   : > { %v1591_v17 = vpop.xlane.xlu0 %1590 }
 0x79d   : > { %v1596_v21 = vmul.f32 0.03125, %v1591_v17  ;;  %v4047_v17 = vld [vmem:[%s5414_s13 + $0x18] sm:$0xff]  }
 0x79e   : > { %v1593_v11 = vpop.xlane.xlu1 %1592  ;;  %3797 = vmatprep.subr.bf16.mxu1 %v4047_v17 }
 0x79f   : > { %v1599_v25 = vsub.f32 %v4846_v24, %v1596_v21  ;;  %v1597_v26 = vmul.f32 0.03125, %v1593_v11  ;;  %v4048_v21 = vld [vmem:[%s5414_s13 + $0x20] sm:$0xff]   ;;  %3798 = vmatpush3.bf16.msra.mxu1 %v4047_v17  ;;  %v4049_v11 = vld [vmem:[%s5414_s13 + $0x28] sm:$0xff]  }
 0x7a0   : > { %v1595_v27 = vpop.xlane.xlu0 %1594  ;;  %3799 = vmatprep.subr.bf16.mxu1 %v4048_v21 }
 0x7a1   : > { %v1600_v32 = vsub.f32 %v4849_v14, %v1597_v26  ;;  %v1598_v22 = vmul.f32 0.03125, %v1595_v27  ;;  %v1602_v36 = vmul.f32 %v4555_v29, %v1599_v25  ;;  %v4050_v25 = vld [vmem:[%s5414_s13 + $0x30] sm:$0xff]   ;;  %v4051_v26 = vld [vmem:[%s5414_s13 + $0x38] sm:$0xff]   ;;  %v3384_v27 = vld [vmem:[%s5413_s12] ss:$0 sm:$0xff] }
 0x7a3   : > { %v1601_v35 = vsub.f32 %v4853_v16, %v1598_v22  ;;  %v1605_v37 = vmul.f32 %v1602_v36, %v1602_v36  ;;  %v1603_v39 = vmul.f32 %v4555_v29, %v1600_v32  ;;  %3800 = vmatpush3.bf16.msra.mxu1 %v4048_v21 }
 0x7a4   : > { %3801 = vmatprep.subr.bf16.mxu1 %v4049_v11 }
 0x7a5   : > { %1608 = vadd.xlane.f32.xlu1 %v1605_v37  ;;  %v1606_v40 = vmul.f32 %v1603_v39, %v1603_v39  ;;  %v1604_v38 = vmul.f32 %v4555_v29, %v1601_v35 }
 0x7a7   : > { %1610 = vadd.xlane.f32.xlu0 %v1606_v40  ;;  %v1607_v45 = vmul.f32 %v1604_v38, %v1604_v38  ;;  %3802 = vmatpush3.bf16.msra.mxu1 %v4049_v11 }
 0x7a8   : > { %3803 = vmatprep.subr.bf16.mxu1 %v4050_v25 }
 0x7a9   : > { %1612 = vadd.xlane.f32.xlu1 %v1607_v45 }
 0x7ab   : > { %3804 = vmatpush3.bf16.msra.mxu1 %v4050_v25 }
 0x7ac   : > { %3805 = vmatprep.subr.bf16.mxu1 %v4051_v26 }
 0x7af   : > { %3806 = vmatpush3.bf16.msra.mxu1 %v4051_v26  ;;  %v4052_v26 = vld [vmem:[%s5453_s5 + $0xc0] ss:$12 sps:$4 sm:$0xff]  }
 0x832   : > { %v1609_v53 = vpop.xlane.xlu1 %1608 }
 0x833   : > { %v1614_v54 = vmul.f32 0.03125, %v1609_v53 }
 0x834   : > { %v1611_v55 = vpop.xlane.xlu0 %1610 }
 0x835   : > { %v1617_v56 = vadd.f32 1e-06, %v1614_v54  ;;  %v1615_v60 = vmul.f32 0.03125, %v1611_v55 }
 0x836   : > { %v1613_v61 = vpop.xlane.xlu1 %1612 }
 0x837   : > { %4170 = vrsqrt.f32 %v1617_v56  ;;  %v1618_v43 = vadd.f32 1e-06, %v1615_v60  ;;  %v1616_v47 = vmul.f32 0.03125, %v1613_v61 }
 0x839   : > { %4172 = vrsqrt.f32 %v1618_v43  ;;  %v1619_v62 = vadd.f32 1e-06, %v1616_v47 }
 0x83b   : > { %4174 = vrsqrt.f32 %v1619_v62 }
 0x841   : > { %v4171_v63 = vpop.eup %4170 }
 0x842   : > { %v1623_v52 = vmul.f32 %v4171_v63, %v1602_v36 }
 0x843   : > { %v4173_v58 = vpop.eup %4172 }
 0x844   : > { %v1624_v4 = vmul.f32 %v4173_v58, %v1603_v39  ;;  %v1632_v5 = vmul.f32 %v3382_v2, %v1623_v52 }
 0x845   : > { %v4175_v8 = vpop.eup %4174 }
 0x846   : > { %v1625_v10 = vmul.f32 %v4175_v8, %v1604_v38  ;;  %v1633_v12 = vmul.f32 %v3382_v2, %v1624_v4  ;;  %v1641_v7 = vadd.f32 %v3383_v3, %v1632_v5 }
 0x848   : > { %v1634_v1 = vmul.f32 %v3382_v2, %v1625_v10  ;;  %v1642_v15 = vadd.f32 %v3383_v3, %v1633_v12 }
 0x84a   : > { %v1643_v18 = vadd.f32 %v3383_v3, %v1634_v1  ;;  %v1644_v20 = vpack.c.bf16 %v1642_v15, %v1641_v7  ;;  %v3393_v15 = vld [vmem:[%s5415_s14] ss:$0 sm:$0xff] }
 0x84c   : > { %v1645_v9 = vpack.c.bf16 %v1643_v18, %v1643_v18  ;;  %3787 = vmatprep.mubr.bf16.mxu0 %v1644_v20 }
 0x84e   : > { %3788 = vmatmul.mubr.bf16.vlgmr.msra.gmra.mrb[20].mxu0 %v1645_v9 }
 0x84f   : > { %2187 = vmatprep.mubr.bf16.mxu0 %v4347_v57 }
 0x921   : > { %v3789_v32 = vpop.f32.mrb[20].mxu0 }
 0x922   : > { %v1760_v22 = vadd.f32 %v3789_v32, %v3384_v27  ;;  %v1751_v36 = vpop.f32.mrb[21].mxu0  ;;  %v4056_v32 = vld [vmem:[%s5453_s5 + $0xd8] ss:$12 sps:$4 sm:$0xff]  }
 0x923   : > { %v1752_v35 = vadd.f32 %v3384_v27, %v1751_v36  ;;  %v3790_v37 = vpop.f32.mrb[22].mxu0 }
 0x924   : > { %v1767_v39 = vmul.f32 %v1760_v22, %v1760_v22  ;;  %v1754_v40 = vpop.f32.mrb[23].mxu0 }
 0x925   : > { %v1765_v38 = vmul.f32 %v1752_v35, %v1752_v35  ;;  %v1755_v45 = vadd.f32 %v3384_v27, %v1754_v40  ;;  %v4059_v27 = vld [vmem:[%s5453_s5 + $0xe0] ss:$12 sps:$4 sm:$0xff]  }
 0x926   : > { %v1770_v46 = vmul.f32 %v1767_v39, %v1760_v22 }
 0x927   : > { %v1768_v42 = vmul.f32 %v1765_v38, %v1752_v35  ;;  %v1766_v48 = vmul.f32 %v1755_v45, %v1755_v45 }
 0x928   : > { %v1773_v49 = vmul.f32 0.044715, %v1770_v46 }
 0x929   : > { %v1771_v50 = vmul.f32 0.044715, %v1768_v42  ;;  %v1769_v51 = vmul.f32 %v1766_v48, %v1755_v45 }
 0x92a   : > { %v1776_v53 = vadd.f32 %v1773_v49, %v1760_v22 }
 0x92b   : > { %v1774_v54 = vadd.f32 %v1771_v50, %v1752_v35  ;;  %v1772_v55 = vmul.f32 0.044715, %v1769_v51 }
 0x92c   : > { %v1779_v56 = vmul.f32 0.7978846, %v1776_v53 }
 0x92d   : > { %v1777_v60 = vmul.f32 0.7978846, %v1774_v54  ;;  %v1775_v61 = vadd.f32 %v1772_v55, %v1755_v45  ;;  %v4062_v54 = vld [vmem:[%s5453_s5 + $0xf4] ss:$12 sps:$4 sm:$0xff]   ;;  %v4060_v55 = vld [vmem:[%s5453_s5 + $0xf0] ss:$12 sps:$4 sm:$0xff]  }
 0x92e   : > { %4176 = vtanh.f32 %v1779_v56  ;;  %v4063_v56 = vld [vmem:[%s5453_s5 + $0xf8] ss:$12 sps:$4 sm:$0xff]  }
 0x92f   : > { %4178 = vtanh.f32 %v1777_v60  ;;  %v1778_v43 = vmul.f32 0.7978846, %v1775_v61  ;;  %v4066_v60 = vld [vmem:[%s5453_s5 + $0x10c] ss:$12 sps:$4 sm:$0xff]   ;;  %v4064_v61 = vld [vmem:[%s5453_s5 + $0x108] ss:$12 sps:$4 sm:$0xff]  }
 0x931   : > { %4180 = vtanh.f32 %v1778_v43  ;;  %v4067_v43 = vld [vmem:[%s5453_s5 + $0x110] ss:$12 sps:$4 sm:$0xff]  }
 0x938   : > { %v4177_v47 = vpop.eup %4176 }
 0x939   : > { %v4179_v62 = vpop.eup %4178  ;;  %v1785_v63 = vadd.f32 1.0, %v4177_v47  ;;  %v4070_v47 = vld [vmem:[%s5453_s5 + $0x124] ss:$12 sps:$4 sm:$0xff]  }
 0x93a   : > { %v1783_v2 = vadd.f32 1.0, %v4179_v62  ;;  %v4068_v62 = vld [vmem:[%s5453_s5 + $0x120] ss:$12 sps:$4 sm:$0xff]  }
 0x93b   : > { %v4181_v52 = vpop.eup %4180  ;;  %v1788_v58 = vmul.f32 0.5, %v1785_v63  ;;  %v4071_v63 = vld [vmem:[%s5453_s5 + $0x128] ss:$12 sps:$4 sm:$0xff]  }
 0x93c   : > { %v1784_v4 = vadd.f32 1.0, %v4181_v52  ;;  %v1786_v5 = vmul.f32 0.5, %v1783_v2  ;;  %v4074_v2 = vld [vmem:[%s5453_s5 + $0x13c] ss:$12 sps:$4 sm:$0xff]   ;;  %v4072_v52 = vld [vmem:[%s5453_s5 + $0x138] ss:$12 sps:$4 sm:$0xff]  }
 0x93d   : > { %v1791_v3 = vmul.f32 %v1788_v58, %v1760_v22  ;;  %v4075_v58 = vld [vmem:[%s5453_s5 + $0x140] ss:$12 sps:$4 sm:$0xff]  }
 0x93e   : > { %v1787_v8 = vmul.f32 0.5, %v1784_v4  ;;  %v1789_v10 = vmul.f32 %v1786_v5, %v1752_v35  ;;  %v4078_v4 = vld [vmem:[%s5453_s5 + $0x154] ss:$12 sps:$4 sm:$0xff]   ;;  %v4076_v5 = vld [vmem:[%s5453_s5 + $0x150] ss:$12 sps:$4 sm:$0xff]  }
 0x93f   : > { %v1793_v7 = vpack.c.bf16 %v1791_v3, %v1791_v3  ;;  %v4082_v3 = vld [vmem:[%s5453_s5 + $0x16c] ss:$12 sps:$4 sm:$0xff]  }
 0x940   : > { %v1790_v12 = vmul.f32 %v1787_v8, %v1755_v45  ;;  %v4079_v8 = vld [vmem:[%s5453_s5 + $0x158] ss:$12 sps:$4 sm:$0xff]  }
 0x942   : > { %v1792_v1 = vpack.c.bf16 %v1790_v12, %v1789_v10  ;;  %v4083_v10 = vld [vmem:[%s5453_s5 + $0x170] ss:$12 sps:$4 sm:$0xff]   ;;  %v4080_v12 = vld [vmem:[%s5453_s5 + $0x168] ss:$12 sps:$4 sm:$0xff]  }
 0x944   : > { %3807 = vmatprep.mubr.bf16.mxu1 %v1792_v1 }
 0x945   : > { %3808 = vmatmul.mubr.bf16.vlgmr.msra.gmra.mrb[24].mxu1 %v1793_v7 }
 0xa18   : > { %v3809_v18 = vpop.f32.mrb[24].mxu1 }
 0xa19   : > { %v1899_v20 = vpop.f32.mrb[25].mxu1  ;;  %v1908_v13 = vadd.f32 %v3809_v18, %v3393_v15 }
 0xa1a   : > { %v1900_v9 = vadd.f32 %v3393_v15, %v1899_v20  ;;  %v3810_v6 = vpop.f32.mrb[26].mxu1 }
 0xa1b   : > { %v1902_v19 = vpop.f32.mrb[27].mxu1  ;;  %v4932_v25 = vadd.f32 %v1908_v13, %v4853_v16  ;;  %v4058_v16 = vld [vmem:[%s5453_s5 + $0xdc] ss:$12 sps:$4 sm:$0xff]  }
 0xa1c   : > { %v4925_v17 = vadd.f32 %v1900_v9, %v4846_v24  ;;  %v1903_v21 = vadd.f32 %v3393_v15, %v1902_v19  ;;  %v4054_v24 = vld [vmem:[%s5453_s5 + $0xc4] ss:$12 sps:$4 sm:$0xff]  }
 0xa1d   : > { %2155 = vmatprep.subr.bf16.mxu0 %v4054_v24 }
 0xa1e   : > { %v4928_v11 = vadd.f32 %v1903_v21, %v4849_v14  ;;  %1920 = vadd.xlane.f32.xlu0 %v4925_v17  ;;  %v4055_v14 = vld [vmem:[%s5453_s5 + $0xc8] ss:$12 sps:$4 sm:$0xff]   ;;  %2156 = vmatpush1.bf16.msra.mxu0 %v4052_v26  ;;  %v3404_v26 = vld [vmem:[%s5454_s30 + $0x1] ss:$0 sm:$0xff]  ;;  %s4254_s5 = sshll.u32 %s4349_s24, 4  ;;  %s4255_s5 = int_to_ptr.vmem [resolvable:$false] %s4254_s5 }
 0xa1f   : > { %3811 = vmatprep.subr.bf16.mxu1 %v4055_v14  ;;  %2157 = vmatprep.subr.bf16.mxu0 %v4058_v16  ;;  %p4257_p0 = scmp.lt.s32.totalorder %s3231_s1, %s4255_s5 }
 0xa20   : > { %1922 = vadd.xlane.f32.xlu1 %v4928_v11  ;;  %3812 = vmatpush3.bf16.msra.mxu1 %v4055_v14 }
 0xa21   : > { %3813 = vmatprep.subr.bf16.mxu1 %v4059_v27 }
 0xa22   : > { %1924 = vadd.xlane.f32.xlu0 %v4932_v25  ;;  %2158 = vmatpush1.bf16.msra.mxu0 %v4056_v32 }
 0xa23   : > { %2159 = vmatprep.subr.bf16.mxu0 %v4062_v54 }
 0xa24   : > { %3814 = vmatpush3.bf16.msra.mxu1 %v4059_v27 }
 0xa25   : > { %3815 = vmatprep.subr.bf16.mxu1 %v4063_v56 }
 0xa26   : > { %2160 = vmatpush1.bf16.msra.mxu0 %v4060_v55 }
 0xa27   : > { %2161 = vmatprep.subr.bf16.mxu0 %v4066_v60 }
 0xa28   : > { %3816 = vmatpush3.bf16.msra.mxu1 %v4063_v56 }
 0xa29   : > { %3817 = vmatprep.subr.bf16.mxu1 %v4067_v43 }
 0xa2a   : > { %2162 = vmatpush1.bf16.msra.mxu0 %v4064_v61 }
 0xa2b   : > { %2163 = vmatprep.subr.bf16.mxu0 %v4070_v47 }
 0xa2c   : > { %3818 = vmatpush3.bf16.msra.mxu1 %v4067_v43 }
 0xa2d   : > { %3819 = vmatprep.subr.bf16.mxu1 %v4071_v63 }
 0xa2e   : > { %2164 = vmatpush1.bf16.msra.mxu0 %v4068_v62 }
 0xa2f   : > { %2165 = vmatprep.subr.bf16.mxu0 %v4074_v2 }
 0xa30   : > { %3820 = vmatpush3.bf16.msra.mxu1 %v4071_v63 }
 0xa31   : > { %3821 = vmatprep.subr.bf16.mxu1 %v4075_v58 }
 0xa32   : > { %2166 = vmatpush1.bf16.msra.mxu0 %v4072_v52 }
 0xa33   : > { %2167 = vmatprep.subr.bf16.mxu0 %v4078_v4 }
 0xa34   : > { %3822 = vmatpush3.bf16.msra.mxu1 %v4075_v58 }
 0xa35   : > { %3823 = vmatprep.subr.bf16.mxu1 %v4079_v8 }
 0xa36   : > { %2168 = vmatpush1.bf16.msra.mxu0 %v4076_v5 }
 0xa37   : > { %2169 = vmatprep.subr.bf16.mxu0 %v4082_v3 }
 0xa38   : > { %3824 = vmatpush3.bf16.msra.mxu1 %v4079_v8 }
 0xa39   : > { %3825 = vmatprep.subr.bf16.mxu1 %v4083_v10 }
 0xa3a   : > { %2170 = vmatpush1.bf16.msra.mxu0 %v4080_v12 }
 0xa3c   : > { %3826 = vmatpush3.bf16.msra.mxu1 %v4083_v10 }
 0xaab   : > { %v1921_v22 = vpop.xlane.xlu0 %1920 }
 0xaac   : > { %v1926_v36 = vmul.f32 0.03125, %v1921_v22  ;;  %v3405_v22 = vld [vmem:[%s5456_s21 + $0x1] ss:$0 sm:$0xff] }
 0xaad   : > { %v1923_v35 = vpop.xlane.xlu1 %1922 }
 0xaae   : > { %v1929_v37 = vsub.f32 %v4925_v17, %v1926_v36  ;;  %v1927_v39 = vmul.f32 0.03125, %v1923_v35 }
 0xaaf   : > { %v1925_v40 = vpop.xlane.xlu0 %1924 }
 0xab0   : > { %v1930_v38 = vsub.f32 %v4928_v11, %v1927_v39  ;;  %v1928_v45 = vmul.f32 0.03125, %v1925_v40  ;;  %v4957_v46 = vmul.f32 %v4555_v29, %v1929_v37 }
 0xab2   : > { %v1931_v42 = vsub.f32 %v4932_v25, %v1928_v45  ;;  %v1935_v48 = vmul.f32 %v4957_v46, %v4957_v46  ;;  %v4963_v49 = vmul.f32 %v4555_v29, %v1930_v38 }
 0xab4   : > { %1938 = vadd.xlane.f32.xlu1 %v1935_v48  ;;  %v1936_v50 = vmul.f32 %v4963_v49, %v4963_v49  ;;  %v4968_v51 = vmul.f32 %v4555_v29, %v1931_v42  ;;  %v3438_v42 = vld [vmem:[%s5457_s6 + $0x3] sm:$0x7]  ;;  %s4256_s6 = scalar_lea.vmem %s4255_s5, 32 }
 0xab5   : > { %v2015_v48 = vrot.slane %v3438_v42, %v844_v31  ;;  %v2023_v55 = vrot.slane %v3438_v42, %v852_v34  ;;  %p4258_p1 = scmp.lt.s32.totalorder %s4256_s6, %s4250_s0 }
 0xab6   : > { %1940 = vadd.xlane.f32.xlu0 %v1936_v50  ;;  %v1937_v53 = vmul.f32 %v4968_v51, %v4968_v51  ;;  %v2019_v50 = vrot.slane %v3438_v42, %v848_v33 }
 0xab7   : > { %p4259_p2 = por %p4258_p1, %p4257_p0 }
 0xab8   : > { %1942 = vadd.xlane.f32.xlu1 %v1937_v53 }
 0xab9   : > { %p4260_p3 = pnand %p4259_p2, %p4253_p13 }
 0xb41   : > { %v1939_v1 = vpop.xlane.xlu1 %1938 }
 0xb42   : > { %v1944_v7 = vmul.f32 0.03125, %v1939_v1 }
 0xb43   : > { %v1941_v15 = vpop.xlane.xlu0 %1940 }
 0xb44   : > { %v1947_v18 = vadd.f32 1e-06, %v1944_v7  ;;  %v1945_v20 = vmul.f32 0.03125, %v1941_v15 }
 0xb45   : > { %v1943_v9 = vpop.xlane.xlu1 %1942 }
 0xb46   : > { %4182 = vrsqrt.f32 %v1947_v18  ;;  %v1948_v6 = vadd.f32 1e-06, %v1945_v20  ;;  %v1946_v19 = vmul.f32 0.03125, %v1943_v9 }
 0xb48   : > { %4184 = vrsqrt.f32 %v1948_v6  ;;  %v1949_v13 = vadd.f32 1e-06, %v1946_v19 }
 0xb4a   : > { %4186 = vrsqrt.f32 %v1949_v13 }
 0xb50   : > { %v4183_v21 = vpop.eup %4182 }
 0xb51   : > { %v1953_v24 = vmul.f32 %v4183_v21, %v4957_v46 }
 0xb52   : > { %v4185_v14 = vpop.eup %4184 }
 0xb53   : > { %v1954_v16 = vmul.f32 %v4185_v14, %v4963_v49  ;;  %v1962_v27 = vmul.f32 %v3404_v26, %v1953_v24 }
 0xb54   : > { %v4187_v32 = vpop.eup %4186 }
 0xb55   : > { %v1963_v36 = vmul.f32 %v3404_v26, %v1954_v16  ;;  %v1955_v35 = vmul.f32 %v4187_v32, %v4968_v51  ;;  %v1971_v37 = vadd.f32 %v3405_v22, %v1962_v27 }
 0xb57   : > { %v1972_v39 = vadd.f32 %v3405_v22, %v1963_v36  ;;  %v1964_v40 = vmul.f32 %v3404_v26, %v1955_v35 }
 0xb59   : > { %v1974_v38 = vpack.c.bf16 %v1972_v39, %v1971_v37  ;;  %v1973_v45 = vadd.f32 %v3405_v22, %v1964_v40 }
 0xb5b   : > { %2188 = vmatmul.mubr.bf16.vlgmr.msra.gmra.mrb[24].mxu0 %v1974_v38  ;;  %3827 = vmatprep.mubr.bf16.mxu1 %v1974_v38  ;;  %v1975_v46 = vpack.c.bf16 %v1973_v45, %v1973_v45 }
 0xb5c   : > { %2197 = vmatprep.mubr.bf16.mxu0 %v4347_v57 }
 0xb5d   : > { %3828 = vmatmul.mubr.bf16.vlgmr.msra.gmra.mrb[28].mxu1 %v1975_v46 }
 0xb63   : > { %2198 = vmatmul.mubr.bf16.gmra.mrb[28].mxu0 %v1975_v46 }
 0xc2e   : > { %v2189_v49 = vpop.f32.mrb[24].mxu0 }
 0xc2f   : > { %v2190_v51 = vadd.f32 %v2189_v49, %v2015_v48  ;;  %v2191_v53 = vpop.f32.mrb[25].mxu0 }
 0xc30   : > { %v2193_v54 = vpop.f32.mrb[26].mxu0  ;;  %v3829_v57 = vpop.f32.mrb[28].mxu1  ;;  %v2192_v43 = vadd.f32 %v2191_v53, %v2019_v50 }
 0xc31   : > { %v2194_v56 = vadd.f32 %v2193_v54, %v2015_v48  ;;  %v2195_v60 = vpop.f32.mrb[27].mxu0  ;;  %v2240_v61 = vpop.f32.mrb[29].mxu1  ;;  %v2254_v31 = vmul.f32 %v4667_v41, %v2190_v51  ;;  %v2260_v33 = vmul.f32 %v4671_v44, %v2190_v51  ;;  %v2249_v58 = vadd.f32 %v3829_v57, %v2023_v55 }
 0xc32   : > { %v2196_v47 = vadd.f32 %v2195_v60, %v2019_v50  ;;  %v3830_v62 = vpop.f32.mrb[30].mxu1  ;;  %v2241_v30 = vadd.f32 %v2240_v61, %v2023_v55  ;;  %v2257_v12 = vmul.f32 %v4680_v59, %v2190_v51  ;;  %v2263_v15 = vmul.f32 %v4683_v0, %v2190_v51 }
 0xc33   : > { %v2243_v63 = vpop.f32.mrb[31].mxu1  ;;  %v2255_v2 = vmul.f32 %v4667_v41, %v2194_v56  ;;  %v2261_v52 = vmul.f32 %v4671_v44, %v2194_v56  ;;  %v2506_v18 = vpack.c.bf16 %v2249_v58, %v2249_v58  ;;  %v2258_v6 = vmul.f32 %v4680_v59, %v2194_v56 }
 0xc34   : > { %v2272_v4 = vpack.c.bf16 %v2196_v47, %v2192_v43  ;;  %v2244_v34 = vadd.f32 %v2243_v63, %v2023_v55  ;;  %v2264_v19 = vmul.f32 %v4683_v0, %v2194_v56 }
 0xc35   : > { %v2266_v5 = vpack.c.bf16 %v2255_v2, %v2254_v31  ;;  %v2269_v8 = vpack.c.bf16 %v2261_v52, %v2260_v33  ;;  %v2526_v35 = vsel %vm1358_vm11, %v2506_v18, 0 }
 0xc36   : > { %v2505_v3 = vpack.c.bf16 %v2244_v34, %v2241_v30  ;;  %v2199_v10 = vpop.f32.mrb[28].mxu0  ;;  %3831 = vmatprep.subr.bf16.mxu0 %v2272_v4 }
 0xc37   : > { %v2200_v1 = vadd.f32 %v2199_v10, %v2015_v48  ;;  %v2201_v7 = vpop.f32.mrb[29].mxu0  ;;  %3832 = vmatpush3.bf16.xpose.msra.mxu0 %v2272_v4  ;;  %3835 = vmatprep.mubr.bf16.mxu0 %v2266_v5 }
 0xc38   : > { %v2202_v20 = vadd.f32 %v2201_v7, %v2019_v50  ;;  %v2203_v9 = vpop.f32.mrb[30].mxu0  ;;  %3847 = vmatprep.subr.bf16.mxu1 %v2505_v3 }
 0xc39   : > { %v2256_v13 = vmul.f32 %v4667_v41, %v2200_v1  ;;  %v2204_v21 = vpop.f32.mrb[31].mxu0  ;;  %3848 = vmatpush3.bf16.msra.mxu1 %v2505_v3  ;;  %v2259_v26 = vmul.f32 %v4680_v59, %v2200_v1  ;;  %v2262_v24 = vmul.f32 %v4671_v44, %v2200_v1  ;;  %v2265_v14 = vmul.f32 %v4683_v0, %v2200_v1 }
 0xc3a   : > { %v2273_v16 = vpack.c.bf16 %v2202_v20, %v2202_v20  ;;  %3944 = vmatprep.subr.msk.bf16.mxu1 %vm1358_vm11, %v2506_v18 }
 0xc3b   : > { %v2267_v27 = vpack.c.bf16 %v2257_v12, %v2256_v13  ;;  %v2268_v32 = vpack.c.bf16 %v2259_v26, %v2258_v6  ;;  %v2270_v22 = vpack.c.bf16 %v2263_v15, %v2262_v24  ;;  %v2271_v36 = vpack.c.bf16 %v2265_v14, %v2264_v19 }
 0xc3c   : > { %3833 = vmatprep.subr.bf16.mxu0 %v2273_v16 }
 0xc3d   : > { %3850 = vmatpush3.bf16.msra.mxu1 %v2526_v35 }
 0xc3f   : > { %3834 = vmatpush3.bf16.xpose.msra.mxu0 %v2273_v16 }
 0xc46   : > { %3836 = vmatmul.mubr.bf16.vlgmr.msra.gmra.mrb[32].mxu0 %v2267_v27 }
 0xc47   : > { %3839 = vmatprep.mubr.bf16.mxu0 %v2268_v32 }
 0xc4e   : > { %3840 = vmatmul.mubr.bf16.gmra.mrb[36].mxu0 %v2269_v8 }
 0xc4f   : > { %3843 = vmatprep.mubr.bf16.mxu0 %v2270_v22 }
 0xc56   : > { %3844 = vmatmul.mubr.bf16.gmra.mrb[40].mxu0 %v2271_v36 }
 0xd19   : > { %v3837_v37 = vpop.f32.mrb[32].mxu0 }
 0xd1a   : > { %v2308_v39 = vpop.f32.mrb[33].mxu0  ;;  %v2357_v42 = vsel %vm749_vm12, %v3837_v37, -1e+30 }
 0xd1b   : > { %v2355_v40 = vsel %vm749_vm12, %v2308_v39, -1e+30  ;;  %v3838_v38 = vpop.f32.mrb[34].mxu0  ;;  %v2373_v51 = vsel %vm1199_vm13, %v2357_v42, -inf }
 0xd1c   : > { %v2311_v45 = vpop.f32.mrb[35].mxu0  ;;  %v2367_v46 = vsel %vm1199_vm13, %v2355_v40, -inf  ;;  %v2358_v50 = vsel %vm749_vm12, %v3838_v38, -1e+30 }
 0xd1d   : > { %v2356_v48 = vsel %vm749_vm12, %v2311_v45, -1e+30  ;;  %2368 = vmax.xlane.f32.xlu0 %v2367_v46  ;;  %v2376_v55 = vsel %vm1199_vm13, %v2358_v50, -inf }
 0xd1e   : > { %v2370_v49 = vsel %vm1199_vm13, %v2356_v48, -inf }
 0xd1f   : > { %2371 = vmax.xlane.f32.xlu1 %v2370_v49 }
 0xd21   : > { %2374 = vmax.xlane.f32.xlu0 %v2373_v51  ;;  %v3841_v53 = vpop.f32.mrb[36].mxu0 }
 0xd22   : > { %v2324_v54 = vpop.f32.mrb[37].mxu0  ;;  %v2361_v43 = vsel %vm749_vm12, %v3841_v53, -1e+30 }
 0xd23   : > { %v2359_v57 = vsel %vm749_vm12, %v2324_v54, -1e+30  ;;  %2377 = vmax.xlane.f32.xlu1 %v2376_v55  ;;  %v3842_v56 = vpop.f32.mrb[38].mxu0  ;;  %v2385_v31 = vsel %vm1199_vm13, %v2361_v43, -inf }
 0xd24   : > { %v2327_v60 = vpop.f32.mrb[39].mxu0  ;;  %v2379_v61 = vsel %vm1199_vm13, %v2359_v57, -inf  ;;  %v2362_v63 = vsel %vm749_vm12, %v3842_v56, -1e+30 }
 0xd25   : > { %v2360_v47 = vsel %vm749_vm12, %v2327_v60, -1e+30  ;;  %2380 = vmax.xlane.f32.xlu0 %v2379_v61  ;;  %v2388_v52 = vsel %vm1199_vm13, %v2362_v63, -inf }
 0xd26   : > { %v2382_v62 = vsel %vm1199_vm13, %v2360_v47, -inf }
 0xd27   : > { %2383 = vmax.xlane.f32.xlu1 %v2382_v62 }
 0xd29   : > { %2386 = vmax.xlane.f32.xlu0 %v2385_v31  ;;  %v3845_v2 = vpop.f32.mrb[40].mxu0 }
 0xd2a   : > { %v2340_v33 = vpop.f32.mrb[41].mxu0  ;;  %v5088_v5 = vsel %vm749_vm12, %v3845_v2, -1e+30 }
 0xd2b   : > { %v2363_v58 = vsel %vm749_vm12, %v2340_v33, -1e+30  ;;  %2389 = vmax.xlane.f32.xlu1 %v2388_v52  ;;  %v3846_v4 = vpop.f32.mrb[42].mxu0  ;;  %v2397_v12 = vsel %vm1199_vm13, %v5088_v5, -inf }
 0xd2c   : > { %v2343_v30 = vpop.f32.mrb[43].mxu0  ;;  %v2391_v34 = vsel %vm1199_vm13, %v2363_v58, -inf  ;;  %v5095_v10 = vsel %vm749_vm12, %v3846_v4, -1e+30 }
 0xd2d   : > { %v2364_v8 = vsel %vm749_vm12, %v2343_v30, -1e+30  ;;  %2392 = vmax.xlane.f32.xlu0 %v2391_v34  ;;  %v2400_v1 = vsel %vm1199_vm13, %v5095_v10, -inf }
 0xd2e   : > { %v2394_v3 = vsel %vm1199_vm13, %v2364_v8, -inf }
 0xd2f   : > { %2395 = vmax.xlane.f32.xlu1 %v2394_v3 }
 0xd31   : > { %2398 = vmax.xlane.f32.xlu0 %v2397_v12 }
 0xd33   : > { %2401 = vmax.xlane.f32.xlu1 %v2400_v1 }
 0xdaa   : > { %v2369_v7 = vpop.xlane.xlu0 %2368 }
 0xdab   : > { %v2403_v15 = vsub.f32 %v2355_v40, %v2369_v7 }
 0xdac   : > { %v2372_v18 = vpop.xlane.xlu1 %2371 }
 0xdad   : > { %v2415_v20 = vmul.f32 1.442695, %v2403_v15  ;;  %v2404_v9 = vsub.f32 %v2356_v48, %v2372_v18 }
 0xdae   : > { %v2375_v6 = vpop.xlane.xlu0 %2374 }
 0xdaf   : > { %4188 = vpow2.f32 %v2415_v20  ;;  %v2417_v19 = vmul.f32 1.442695, %v2404_v9  ;;  %v2405_v23 = vsub.f32 %v2357_v42, %v2375_v6  ;;  %v4084_v6 = vld [vmem:[%s5408_s7 + $0x40] sm:$0xff]  }
 0xdb0   : > { %v2378_v13 = vpop.xlane.xlu1 %2377  ;;  %3863 = vmatprep.subr.bf16.mxu0 %v4084_v6 }
 0xdb1   : > { %4190 = vpow2.f32 %v2417_v19  ;;  %v2419_v21 = vmul.f32 1.442695, %v2405_v23  ;;  %v2406_v26 = vsub.f32 %v2358_v50, %v2378_v13  ;;  %v4085_v19 = vld [vmem:[%s5408_s7 + $0x48] sm:$0xff]   ;;  %3864 = vmatpush3.bf16.msra.mxu0 %v4084_v6 }
 0xdb2   : > { %v2381_v24 = vpop.xlane.xlu0 %2380  ;;  %3865 = vmatprep.subr.bf16.mxu0 %v4085_v19 }
 0xdb3   : > { %4192 = vpow2.f32 %v2419_v21  ;;  %v2421_v14 = vmul.f32 1.442695, %v2406_v26  ;;  %v2407_v16 = vsub.f32 %v2359_v57, %v2381_v24 }
 0xdb4   : > { %v2384_v27 = vpop.xlane.xlu1 %2383 }
 0xdb5   : > { %4194 = vpow2.f32 %v2421_v14  ;;  %v2423_v32 = vmul.f32 1.442695, %v2407_v16  ;;  %v2408_v22 = vsub.f32 %v2360_v47, %v2384_v27  ;;  %3866 = vmatpush3.bf16.msra.mxu0 %v4085_v19 }
 0xdb6   : > { %v2387_v36 = vpop.xlane.xlu0 %2386 }
 0xdb7   : > { %4196 = vpow2.f32 %v2423_v32  ;;  %v2425_v35 = vmul.f32 1.442695, %v2408_v22  ;;  %v2409_v37 = vsub.f32 %v2361_v43, %v2387_v36 }
 0xdb8   : > { %v2390_v39 = vpop.xlane.xlu1 %2389 }
 0xdb9   : > { %v5101_v40 = vpop.eup %4188  ;;  %4198 = vpow2.f32 %v2425_v35  ;;  %v2427_v38 = vmul.f32 1.442695, %v2409_v37  ;;  %v2410_v45 = vsub.f32 %v2362_v63, %v2390_v39 }
 0xdba   : > { %v2393_v46 = vpop.xlane.xlu0 %2392  ;;  %v2439_v42 = vsel %vm1199_vm13, %v5101_v40, 0.0 }
 0xdbb   : > { %v5105_v48 = vpop.eup %4190  ;;  %4200 = vpow2.f32 %v2427_v38  ;;  %v2429_v49 = vmul.f32 1.442695, %v2410_v45  ;;  %v2411_v50 = vsub.f32 %v2363_v58, %v2393_v46  ;;  %2440 = vadd.xlane.f32.xlu0 %v2439_v42 }
 0xdbc   : > { %v2396_v51 = vpop.xlane.xlu1 %2395  ;;  %v2442_v53 = vsel %vm1199_vm13, %v5105_v48, 0.0 }
 0xdbd   : > { %v5109_v54 = vpop.eup %4192  ;;  %4202 = vpow2.f32 %v2429_v49  ;;  %v2431_v55 = vmul.f32 1.442695, %v2411_v50  ;;  %v2412_v57 = vsub.f32 %v2364_v8, %v2396_v51  ;;  %2443 = vadd.xlane.f32.xlu1 %v2442_v53 }
 0xdbe   : > { %v2399_v56 = vpop.xlane.xlu0 %2398  ;;  %v2445_v60 = vsel %vm1199_vm13, %v5109_v54, 0.0 }
 0xdbf   : > { %v5113_v61 = vpop.eup %4194  ;;  %4204 = vpow2.f32 %v2431_v55  ;;  %v2433_v43 = vmul.f32 1.442695, %v2412_v57  ;;  %v2413_v47 = vsub.f32 %v5088_v5, %v2399_v56  ;;  %2446 = vadd.xlane.f32.xlu0 %v2445_v60 }
 0xdc0   : > { %v2402_v62 = vpop.xlane.xlu1 %2401  ;;  %v2448_v63 = vsel %vm1199_vm13, %v5113_v61, 0.0 }
 0xdc1   : > { %v5118_v31 = vpop.eup %4196  ;;  %4206 = vpow2.f32 %v2433_v43  ;;  %v2435_v2 = vmul.f32 1.442695, %v2413_v47  ;;  %v2414_v33 = vsub.f32 %v5095_v10, %v2402_v62  ;;  %2449 = vadd.xlane.f32.xlu1 %v2448_v63 }
 0xdc2   : > { %v2451_v52 = vsel %vm1199_vm13, %v5118_v31, 0.0 }
 0xdc3   : > { %v5123_v58 = vpop.eup %4198  ;;  %4208 = vpow2.f32 %v2435_v2  ;;  %v2437_v4 = vmul.f32 1.442695, %v2414_v33  ;;  %2452 = vadd.xlane.f32.xlu0 %v2451_v52 }
 0xdc4   : > { %v2454_v30 = vsel %vm1199_vm13, %v5123_v58, 0.0 }
 0xdc5   : > { %v5127_v34 = vpop.eup %4200  ;;  %4210 = vpow2.f32 %v2437_v4  ;;  %2455 = vadd.xlane.f32.xlu1 %v2454_v30 }
 0xdc6   : > { %v2457_v5 = vsel %vm1199_vm13, %v5127_v34, 0.0 }
 0xdc7   : > { %v5131_v8 = vpop.eup %4202  ;;  %2458 = vadd.xlane.f32.xlu0 %v2457_v5  ;;  %v4086_v5 = vld [vmem:[%s5408_s7 + $0x50] sm:$0xff]  }
 0xdc8   : > { %v2460_v3 = vsel %vm1199_vm13, %v5131_v8, 0.0  ;;  %3867 = vmatprep.subr.bf16.mxu0 %v4086_v5 }
 0xdc9   : > { %v5135_v10 = vpop.eup %4204  ;;  %2461 = vadd.xlane.f32.xlu1 %v2460_v3  ;;  %3868 = vmatpush3.bf16.msra.mxu0 %v4086_v5  ;;  %v4088_v3 = vld [vmem:[%s5408_s7 + $0x60] sm:$0xff]  }
 0xdca   : > { %v2463_v12 = vsel %vm1199_vm13, %v5135_v10, 0.0 }
 0xdcb   : > { %v5139_v1 = vpop.eup %4206  ;;  %2464 = vadd.xlane.f32.xlu0 %v2463_v12  ;;  %v4090_v12 = vld [vmem:[%s5408_s7 + $0x70] sm:$0xff]  }
 0xdcc   : > { %v2466_v7 = vsel %vm1199_vm13, %v5139_v1, 0.0 }
 0xdcd   : > { %v5143_v15 = vpop.eup %4208  ;;  %2467 = vadd.xlane.f32.xlu1 %v2466_v7 }
 0xdce   : > { %v2469_v18 = vsel %vm1199_vm13, %v5143_v15, 0.0 }
 0xdcf   : > { %v5147_v20 = vpop.eup %4210  ;;  %2470 = vadd.xlane.f32.xlu0 %v2469_v18 }
 0xdd0   : > { %v2472_v9 = vsel %vm1199_vm13, %v5147_v20, 0.0 }
 0xdd1   : > { %2473 = vadd.xlane.f32.xlu1 %v2472_v9 }
 0xe48   : > { %v2441_v23 = vpop.xlane.xlu0 %2440 }
 0xe49   : > { %4212 = vrcp.f32 %v2441_v23 }
 0xe4a   : > { %v2444_v13 = vpop.xlane.xlu1 %2443 }
 0xe4b   : > { %4214 = vrcp.f32 %v2444_v13 }
 0xe4c   : > { %v2447_v21 = vpop.xlane.xlu0 %2446 }
 0xe4d   : > { %4216 = vrcp.f32 %v2447_v21 }
 0xe4e   : > { %v2450_v26 = vpop.xlane.xlu1 %2449 }
 0xe4f   : > { %4218 = vrcp.f32 %v2450_v26 }
 0xe50   : > { %v2453_v24 = vpop.xlane.xlu0 %2452 }
 0xe51   : > { %4220 = vrcp.f32 %v2453_v24 }
 0xe52   : > { %v2456_v14 = vpop.xlane.xlu1 %2455 }
 0xe53   : > { %v4213_v16 = vpop.eup %4212  ;;  %4222 = vrcp.f32 %v2456_v14 }
 0xe54   : > { %v2459_v27 = vpop.xlane.xlu0 %2458  ;;  %v2487_v36 = vmul.f32 %v4213_v16, %v5101_v40 }
 0xe55   : > { %v4215_v32 = vpop.eup %4214  ;;  %4224 = vrcp.f32 %v2459_v27 }
 0xe56   : > { %v2462_v22 = vpop.xlane.xlu1 %2461  ;;  %v2488_v35 = vmul.f32 %v4215_v32, %v5105_v48 }
 0xe57   : > { %v4217_v37 = vpop.eup %4216  ;;  %4226 = vrcp.f32 %v2462_v22 }
 0xe58   : > { %v2465_v39 = vpop.xlane.xlu0 %2464  ;;  %v2499_v38 = vpack.c.bf16 %v2488_v35, %v2487_v36  ;;  %v2489_v46 = vmul.f32 %v4217_v37, %v5109_v54 }
 0xe59   : > { %v4219_v45 = vpop.eup %4218  ;;  %4228 = vrcp.f32 %v2465_v39 }
 0xe5a   : > { %v2490_v42 = vmul.f32 %v4219_v45, %v5113_v61  ;;  %3851 = vmatprep.mubr.msk.bf16.mxu1 %vm1199_vm13, %v2499_v38  ;;  %v2468_v49 = vpop.xlane.xlu1 %2467 }
 0xe5b   : > { %v4221_v50 = vpop.eup %4220  ;;  %4230 = vrcp.f32 %v2468_v49 }
 0xe5c   : > { %v2471_v51 = vpop.xlane.xlu0 %2470  ;;  %v2500_v53 = vpack.c.bf16 %v2490_v42, %v2489_v46  ;;  %v2491_v55 = vmul.f32 %v4221_v50, %v5118_v31 }
 0xe5d   : > { %v4223_v40 = vpop.eup %4222  ;;  %4232 = vrcp.f32 %v2471_v51 }
 0xe5e   : > { %3852 = vmatmul.mubr.msk.bf16.vlgmr.msra.gmra.mrb[32].mxu1 %vm1199_vm13, %v2500_v53  ;;  %v2474_v48 = vpop.xlane.xlu1 %2473  ;;  %v2492_v57 = vmul.f32 %v4223_v40, %v5123_v58 }
 0xe5f   : > { %v4225_v56 = vpop.eup %4224  ;;  %4234 = vrcp.f32 %v2474_v48 }
 0xe60   : > { %v2501_v54 = vpack.c.bf16 %v2492_v57, %v2491_v55  ;;  %v2493_v61 = vmul.f32 %v4225_v56, %v5127_v34  ;;  %v3486_v56 = vld [vmem:[%s5409_s8 + $0x1] ss:$0 sm:$0xff] }
 0xe61   : > { %v4227_v60 = vpop.eup %4226 }
 0xe62   : > { %3855 = vmatprep.mubr.msk.bf16.mxu1 %vm1199_vm13, %v2501_v54  ;;  %v2494_v43 = vmul.f32 %v4227_v60, %v5131_v8  ;;  %v4087_v8 = vld [vmem:[%s5408_s7 + $0x58] sm:$0xff]  }
 0xe63   : > { %v4229_v47 = vpop.eup %4228  ;;  %3869 = vmatprep.subr.bf16.mxu0 %v4087_v8 }
 0xe64   : > { %v2502_v62 = vpack.c.bf16 %v2494_v43, %v2493_v61  ;;  %v2495_v2 = vmul.f32 %v4229_v47, %v5135_v10  ;;  %3870 = vmatpush3.bf16.msra.mxu0 %v4087_v8  ;;  %v4089_v10 = vld [vmem:[%s5408_s7 + $0x68] sm:$0xff]  }
 0xe65   : > { %v4231_v63 = vpop.eup %4230  ;;  %3871 = vmatprep.subr.bf16.mxu0 %v4088_v3 }
 0xe66   : > { %3856 = vmatmul.mubr.msk.bf16.gmra.mrb[36].mxu1 %vm1199_vm13, %v2502_v62  ;;  %v2496_v31 = vmul.f32 %v4231_v63, %v5139_v1  ;;  %v4091_v1 = vld [vmem:[%s5408_s7 + $0x78] sm:$0xff]  }
 0xe67   : > { %v4233_v33 = vpop.eup %4232 }
 0xe68   : > { %v2503_v52 = vpack.c.bf16 %v2496_v31, %v2495_v2  ;;  %v2497_v4 = vmul.f32 %v4233_v33, %v5143_v15  ;;  %3872 = vmatpush3.bf16.msra.mxu0 %v4088_v3  ;;  %v4092_v31 = vld [vmem:[%s5412_s11 + $0x40] sm:$0xff]   ;;  %v4093_v33 = vld [vmem:[%s5412_s11 + $0x48] sm:$0xff]  }
 0xe69   : > { %v4235_v58 = vpop.eup %4234  ;;  %3873 = vmatprep.subr.bf16.mxu0 %v4089_v10  ;;  %3883 = vmatprep.subr.bf16.mxu1 %v4092_v31 }
 0xe6a   : > { %3859 = vmatprep.mubr.msk.bf16.mxu1 %vm1199_vm13, %v2503_v52  ;;  %v2498_v30 = vmul.f32 %v4235_v58, %v5147_v20  ;;  %3884 = vmatpush3.bf16.msra.mxu1 %v4092_v31 }
 0xe6b   : > { %3885 = vmatprep.subr.bf16.mxu1 %v4093_v33 }
 0xe6c   : > { %v2504_v34 = vpack.c.bf16 %v2498_v30, %v2497_v4  ;;  %3874 = vmatpush3.bf16.msra.mxu0 %v4089_v10 }
 0xe6d   : > { %3875 = vmatprep.subr.bf16.mxu0 %v4090_v12 }
 0xe6e   : > { %3860 = vmatmul.mubr.msk.bf16.gmra.mrb[40].mxu1 %vm1199_vm13, %v2504_v34 }
 0xe6f   : > { %3886 = vmatpush3.bf16.msra.mxu1 %v4093_v33 }
 0xe70   : > { %3876 = vmatpush3.bf16.msra.mxu0 %v4090_v12 }
 0xe71   : > { %3877 = vmatprep.subr.bf16.mxu0 %v4091_v1 }
 0xe74   : > { %3878 = vmatpush3.bf16.msra.mxu0 %v4091_v1 }
 0xf31   : > { %v3853_v7 = vpop.f32.mrb[32].mxu1 }
 0xf32   : > { %v2562_v15 = vpop.f32.mrb[33].mxu1  ;;  %v2611_v22 = vmul.f32 %v3853_v7, %v4667_v41 }
 0xf33   : > { %v2609_v18 = vmul.f32 %v4667_v41, %v2562_v15  ;;  %v3854_v20 = vpop.f32.mrb[34].mxu1  ;;  %v4094_v15 = vld [vmem:[%s5412_s11 + $0x50] sm:$0xff]  }
 0xf34   : > { %v2612_v9 = vmul.f32 %v3854_v20, %v4680_v59  ;;  %v2565_v6 = vpop.f32.mrb[35].mxu1  ;;  %3887 = vmatprep.subr.bf16.mxu1 %v4094_v15  ;;  %v4096_v20 = vld [vmem:[%s5412_s11 + $0x60] sm:$0xff]  }
 0xf35   : > { %v2610_v26 = vmul.f32 %v4667_v41, %v2565_v6  ;;  %3888 = vmatpush3.bf16.msra.mxu1 %v4094_v15  ;;  %v4098_v6 = vld [vmem:[%s5412_s11 + $0x70] sm:$0xff]  }
 0xf36   : > { %v2615_v19 = vadd.f32 %v2612_v9, %v2609_v18  ;;  %v4095_v18 = vld [vmem:[%s5412_s11 + $0x58] sm:$0xff]   ;;  %v4097_v9 = vld [vmem:[%s5412_s11 + $0x68] sm:$0xff]  }
 0xf37   : > { %3889 = vmatprep.subr.bf16.mxu1 %v4095_v18 }
 0xf39   : > { %v3857_v23 = vpop.f32.mrb[36].mxu1  ;;  %3890 = vmatpush3.bf16.msra.mxu1 %v4095_v18 }
 0xf3a   : > { %v2618_v13 = vmul.f32 %v3857_v23, %v4671_v44  ;;  %v2578_v21 = vpop.f32.mrb[37].mxu1  ;;  %3891 = vmatprep.subr.bf16.mxu1 %v4096_v20 }
 0xf3b   : > { %v2613_v24 = vmul.f32 %v4680_v59, %v2578_v21  ;;  %v3858_v14 = vpop.f32.mrb[38].mxu1 }
 0xf3c   : > { %v2621_v16 = vadd.f32 %v2618_v13, %v2615_v19  ;;  %v2619_v27 = vmul.f32 %v3858_v14, %v4671_v44  ;;  %v2581_v32 = vpop.f32.mrb[39].mxu1  ;;  %v4099_v19 = vld [vmem:[%s5412_s11 + $0x78] sm:$0xff]  }
 0xf3d   : > { %v2616_v36 = vadd.f32 %v2613_v24, %v2610_v26  ;;  %v2614_v35 = vmul.f32 %v4680_v59, %v2581_v32  ;;  %3892 = vmatpush3.bf16.msra.mxu1 %v4096_v20 }
 0xf3e   : > { %3893 = vmatprep.subr.bf16.mxu1 %v4097_v9 }
 0xf3f   : > { %v2622_v37 = vadd.f32 %v2619_v27, %v2616_v36  ;;  %v2617_v39 = vadd.f32 %v2614_v35, %v2611_v22  ;;  %v3497_v36 = vld [vmem:[%s5410_s9 + $0x1] ss:$0 sm:$0xff] }
 0xf41   : > { %v3861_v38 = vpop.f32.mrb[40].mxu1  ;;  %3894 = vmatpush3.bf16.msra.mxu1 %v4097_v9 }
 0xf42   : > { %v2625_v45 = vmul.f32 %v3861_v38, %v4683_v0  ;;  %v2594_v46 = vpop.f32.mrb[41].mxu1  ;;  %3895 = vmatprep.subr.bf16.mxu1 %v4098_v6 }
 0xf43   : > { %v2620_v42 = vmul.f32 %v4671_v44, %v2594_v46  ;;  %v3862_v49 = vpop.f32.mrb[42].mxu1  ;;  %v3498_v46 = vld [vmem:[%s5411_s10 + $0x1] ss:$0 sm:$0xff] }
 0xf44   : > { %v2628_v50 = vadd.f32 %v2625_v45, %v2622_v37  ;;  %v2626_v51 = vmul.f32 %v3862_v49, %v4683_v0  ;;  %v2597_v53 = vpop.f32.mrb[43].mxu1 }
 0xf45   : > { %v2623_v40 = vadd.f32 %v2620_v42, %v2617_v39  ;;  %v2624_v48 = vmul.f32 %v4683_v0, %v2597_v53  ;;  %3896 = vmatpush3.bf16.msra.mxu1 %v4098_v6 }
 0xf46   : > { %3897 = vmatprep.subr.bf16.mxu1 %v4099_v19 }
 0xf47   : > { %v2629_v41 = vadd.f32 %v2626_v51, %v2623_v40  ;;  %v2627_v55 = vadd.f32 %v2624_v48, %v2621_v16 }
 0xf49   : > { %v2631_v57 = vpack.c.bf16 %v2629_v41, %v2629_v41  ;;  %v2630_v59 = vpack.c.bf16 %v2628_v50, %v2627_v55  ;;  %3898 = vmatpush3.bf16.msra.mxu1 %v4099_v19  ;;  %v4100_v55 = vld [vmem:[%s5414_s13 + $0x40] sm:$0xff]  }
 0xf4a   : > { %3923 = vmatprep.subr.bf16.mxu1 %v4346_v28  ;;  %3903 = vmatprep.subr.bf16.mxu0 %v4100_v55 }
 0xf4b   : > { %3879 = vmatprep.mubr.bf16.mxu0 %v2630_v59  ;;  %v4102_v59 = vld [vmem:[%s5414_s13 + $0x50] sm:$0xff]  }
 0xf4c   : > { %3880 = vmatmul.mubr.bf16.vlgmr.msra.gmra.mrb[44].mxu0 %v2631_v57  ;;  %v4101_v57 = vld [vmem:[%s5414_s13 + $0x48] sm:$0xff]  }
 0xf4d   : > { %3904 = vmatpush3.bf16.msra.mxu0 %v4100_v55  ;;  %v4111_v55 = vld [vmem:[%s5418_s17 + $0x18] sm:$0xff]  }
 0xf4e   : > { %3905 = vmatprep.subr.bf16.mxu0 %v4101_v57 }
 0xf51   : > { %3906 = vmatpush3.bf16.msra.mxu0 %v4101_v57  ;;  %v4113_v57 = vld [vmem:[%s5418_s17 + $0x28] sm:$0xff]  }
 0xf52   : > { %3907 = vmatprep.subr.bf16.mxu0 %v4102_v59 }
 0xf55   : > { %3908 = vmatpush3.bf16.msra.mxu0 %v4102_v59  ;;  %v4114_v59 = vld [vmem:[%s5418_s17 + $0x30] sm:$0xff]  }
0x101f   : > { %v3881_v54 = vpop.f32.mrb[44].mxu0 }
0x1020   : > { %v2739_v44 = vpop.f32.mrb[45].mxu0  ;;  %v2748_v47 = vadd.f32 %v3881_v54, %v3486_v56  ;;  %v4104_v54 = vld [vmem:[%s5414_s13 + $0x60] sm:$0xff]  }
0x1021   : > { %v2740_v60 = vadd.f32 %v3486_v56, %v2739_v44  ;;  %v3882_v61 = vpop.f32.mrb[46].mxu0  ;;  %v4105_v44 = vld [vmem:[%s5414_s13 + $0x68] sm:$0xff]  }
0x1022   : > { %v2742_v43 = vpop.f32.mrb[47].mxu0  ;;  %v2755_v2 = vadd.f32 %v2748_v47, %v4932_v25  ;;  %v4107_v61 = vld [vmem:[%s5414_s13 + $0x78] sm:$0xff]  }
0x1023   : > { %v5209_v62 = vadd.f32 %v2740_v60, %v4925_v17  ;;  %v2743_v0 = vadd.f32 %v3486_v56, %v2742_v43  ;;  %v4103_v56 = vld [vmem:[%s5414_s13 + $0x58] sm:$0xff]   ;;  %v4106_v60 = vld [vmem:[%s5414_s13 + $0x70] sm:$0xff]   ;;  %v3516_v43 = vld [vmem:[%s5413_s12 + $0x1] ss:$0 sm:$0xff] }
0x1024   : > { %3909 = vmatprep.subr.bf16.mxu0 %v4103_v56 }
0x1025   : > { %2760 = vadd.xlane.f32.xlu0 %v5209_v62  ;;  %v2754_v63 = vadd.f32 %v2743_v0, %v4928_v11  ;;  %3910 = vmatpush3.bf16.msra.mxu0 %v4103_v56  ;;  %v4115_v56 = vld [vmem:[%s5418_s17 + $0x38] sm:$0xff]  }
0x1026   : > { %3911 = vmatprep.subr.bf16.mxu0 %v4104_v54 }
0x1027   : > { %2762 = vadd.xlane.f32.xlu1 %v2754_v63 }
0x1029   : > { %2764 = vadd.xlane.f32.xlu0 %v2755_v2  ;;  %3912 = vmatpush3.bf16.msra.mxu0 %v4104_v54 }
0x102a   : > { %3913 = vmatprep.subr.bf16.mxu0 %v4105_v44 }
0x102d   : > { %3914 = vmatpush3.bf16.msra.mxu0 %v4105_v44 }
0x102e   : > { %3915 = vmatprep.subr.bf16.mxu0 %v4106_v60 }
0x1031   : > { %3916 = vmatpush3.bf16.msra.mxu0 %v4106_v60 }
0x1032   : > { %3917 = vmatprep.subr.bf16.mxu0 %v4107_v61 }
0x1035   : > { %3918 = vmatpush3.bf16.msra.mxu0 %v4107_v61 }
0x10b2   : > { %v2761_v17 = vpop.xlane.xlu0 %2760 }
0x10b3   : > { %v2766_v52 = vmul.f32 0.03125, %v2761_v17 }
0x10b4   : > { %v2763_v58 = vpop.xlane.xlu1 %2762 }
0x10b5   : > { %v2769_v11 = vsub.f32 %v5209_v62, %v2766_v52  ;;  %v2767_v4 = vmul.f32 0.03125, %v2763_v58 }
0x10b6   : > { %v2765_v25 = vpop.xlane.xlu0 %2764 }
0x10b7   : > { %v2770_v30 = vsub.f32 %v2754_v63, %v2767_v4  ;;  %v2768_v34 = vmul.f32 0.03125, %v2765_v25  ;;  %v2772_v5 = vmul.f32 %v4555_v29, %v2769_v11 }
0x10b9   : > { %v2771_v8 = vsub.f32 %v2755_v2, %v2768_v34  ;;  %v2775_v3 = vmul.f32 %v2772_v5, %v2772_v5  ;;  %v2773_v10 = vmul.f32 %v4555_v29, %v2770_v30 }
0x10bb   : > { %2778 = vadd.xlane.f32.xlu1 %v2775_v3  ;;  %v2776_v12 = vmul.f32 %v2773_v10, %v2773_v10  ;;  %v2774_v1 = vmul.f32 %v4555_v29, %v2771_v8 }
0x10bd   : > { %2780 = vadd.xlane.f32.xlu0 %v2776_v12  ;;  %v2777_v7 = vmul.f32 %v2774_v1, %v2774_v1 }
0x10bf   : > { %2782 = vadd.xlane.f32.xlu1 %v2777_v7 }
0x1148   : > { %v2779_v23 = vpop.xlane.xlu1 %2778 }
0x1149   : > { %v2784_v13 = vmul.f32 0.03125, %v2779_v23 }
0x114a   : > { %v2781_v21 = vpop.xlane.xlu0 %2780 }
0x114b   : > { %v2787_v26 = vadd.f32 1e-06, %v2784_v13  ;;  %v2785_v24 = vmul.f32 0.03125, %v2781_v21 }
0x114c   : > { %v2783_v14 = vpop.xlane.xlu1 %2782 }
0x114d   : > { %4236 = vrsqrt.f32 %v2787_v26  ;;  %v2788_v16 = vadd.f32 1e-06, %v2785_v24  ;;  %v2786_v27 = vmul.f32 0.03125, %v2783_v14 }
0x114f   : > { %4238 = vrsqrt.f32 %v2788_v16  ;;  %v2789_v32 = vadd.f32 1e-06, %v2786_v27 }
0x1151   : > { %4240 = vrsqrt.f32 %v2789_v32 }
0x1157   : > { %v4237_v22 = vpop.eup %4236 }
0x1158   : > { %v2793_v35 = vmul.f32 %v4237_v22, %v2772_v5  ;;  %v3542_v22 = vld [vmem:[%s5415_s14 + $0x1] ss:$0 sm:$0xff] }
0x1159   : > { %v4239_v37 = vpop.eup %4238 }
0x115a   : > { %v2794_v39 = vmul.f32 %v4239_v37, %v2773_v10  ;;  %v2802_v38 = vmul.f32 %v3497_v36, %v2793_v35 }
0x115b   : > { %v4241_v45 = vpop.eup %4240 }
0x115c   : > { %v2795_v42 = vmul.f32 %v4241_v45, %v2774_v1  ;;  %v2803_v49 = vmul.f32 %v3497_v36, %v2794_v39  ;;  %v2811_v51 = vadd.f32 %v3498_v46, %v2802_v38 }
0x115e   : > { %v2804_v50 = vmul.f32 %v3497_v36, %v2795_v42  ;;  %v2812_v53 = vadd.f32 %v3498_v46, %v2803_v49  ;;  %v4108_v42 = vld [vmem:[%s5418_s17] sm:$0xff]   ;;  %v4109_v49 = vld [vmem:[%s5418_s17 + $0x8] sm:$0xff]  }
0x1160   : > { %v2813_v40 = vadd.f32 %v3498_v46, %v2804_v50  ;;  %v2814_v48 = vpack.c.bf16 %v2812_v53, %v2811_v51 }
0x1162   : > { %v2815_v41 = vpack.c.bf16 %v2813_v40, %v2813_v40  ;;  %3899 = vmatprep.mubr.bf16.mxu1 %v2814_v48 }
0x1164   : > { %3900 = vmatmul.mubr.bf16.vlgmr.msra.gmra.mrb[44].mxu1 %v2815_v41  ;;  %v4110_v41 = vld [vmem:[%s5418_s17 + $0x10] sm:$0xff]  }
0x1165   : > { %3924 = vmatpush3.bf16.msra.mxu1 %v4108_v42  ;;  %3939 = vmatprep.mubr.msk.bf16.mxu1 %vm4348_vm15, %v4346_v28 }
0x1166   : > { %3925 = vmatprep.subr.bf16.mxu1 %v4346_v28 }
0x1169   : > { %3926 = vmatpush3.bf16.msra.mxu1 %v4109_v49 }
0x116a   : > { %3927 = vmatprep.subr.bf16.mxu1 %v4346_v28 }
0x116d   : > { %3928 = vmatpush3.bf16.msra.mxu1 %v4110_v41 }
0x116e   : > { %3929 = vmatprep.subr.bf16.mxu1 %v4346_v28 }
0x1171   : > { %3930 = vmatpush3.bf16.msra.mxu1 %v4111_v55 }
0x1172   : > { %3931 = vmatprep.subr.bf16.mxu1 %v4346_v28 }
0x1237   : > { %v3901_v47 = vpop.f32.mrb[44].mxu1 }
0x1238   : > { %v2932_v0 = vadd.f32 %v3901_v47, %v3516_v43  ;;  %v2923_v63 = vpop.f32.mrb[45].mxu1 }
0x1239   : > { %v2924_v2 = vadd.f32 %v3516_v43, %v2923_v63  ;;  %v3902_v31 = vpop.f32.mrb[46].mxu1 }
0x123a   : > { %v2939_v33 = vmul.f32 %v2932_v0, %v2932_v0  ;;  %v2926_v17 = vpop.f32.mrb[47].mxu1 }
0x123b   : > { %v2937_v52 = vmul.f32 %v2924_v2, %v2924_v2  ;;  %v2927_v58 = vadd.f32 %v3516_v43, %v2926_v17  ;;  %v3086_v43 = vld [vmem:[%s5416_s15] sm:$0x1] }
0x123c   : > { %v2942_v11 = vmul.f32 %v2939_v33, %v2932_v0 }
0x123d   : > { %v2940_v4 = vmul.f32 %v2937_v52, %v2924_v2  ;;  %v2938_v25 = vmul.f32 %v2927_v58, %v2927_v58 }
0x123e   : > { %v2945_v30 = vmul.f32 0.044715, %v2942_v11 }
0x123f   : > { %v2943_v34 = vmul.f32 0.044715, %v2940_v4  ;;  %v2941_v5 = vmul.f32 %v2938_v25, %v2927_v58 }
0x1240   : > { %v2948_v8 = vadd.f32 %v2945_v30, %v2932_v0 }
0x1241   : > { %v2946_v3 = vadd.f32 %v2943_v34, %v2924_v2  ;;  %v2944_v10 = vmul.f32 0.044715, %v2941_v5 }
0x1242   : > { %v2951_v12 = vmul.f32 0.7978846, %v2948_v8 }
0x1243   : > { %v2949_v1 = vmul.f32 0.7978846, %v2946_v3  ;;  %v2947_v7 = vadd.f32 %v2944_v10, %v2927_v58 }
0x1244   : > { %4242 = vtanh.f32 %v2951_v12 }
0x1245   : > { %4244 = vtanh.f32 %v2949_v1  ;;  %v2950_v15 = vmul.f32 0.7978846, %v2947_v7 }
0x1247   : > { %4246 = vtanh.f32 %v2950_v15 }
0x124e   : > { %v4243_v18 = vpop.eup %4242 }
0x124f   : > { %v4245_v20 = vpop.eup %4244  ;;  %v2957_v9 = vadd.f32 1.0, %v4243_v18 }
0x1250   : > { %v2955_v6 = vadd.f32 1.0, %v4245_v20 }
0x1251   : > { %v4247_v19 = vpop.eup %4246  ;;  %v2960_v23 = vmul.f32 0.5, %v2957_v9 }
0x1252   : > { %v2956_v13 = vadd.f32 1.0, %v4247_v19  ;;  %v2958_v21 = vmul.f32 0.5, %v2955_v6 }
0x1253   : > { %v2963_v24 = vmul.f32 %v2960_v23, %v2932_v0 }
0x1254   : > { %v2959_v26 = vmul.f32 0.5, %v2956_v13  ;;  %v2961_v14 = vmul.f32 %v2958_v21, %v2924_v2 }
0x1255   : > { %v2965_v32 = vpack.c.bf16 %v2963_v24, %v2963_v24 }
0x1256   : > { %v2962_v16 = vmul.f32 %v2959_v26, %v2927_v58 }
0x1258   : > { %v2964_v27 = vpack.c.bf16 %v2962_v16, %v2961_v14 }
0x125a   : > { %3919 = vmatprep.mubr.bf16.mxu0 %v2964_v27 }
0x125b   : > { %3920 = vmatmul.mubr.bf16.vlgmr.msra.gmra.mrb[48].mxu0 %v2965_v32 }
0x132e   : > { %v3921_v36 = vpop.f32.mrb[48].mxu0 }
0x132f   : > { %v3073_v35 = vpop.f32.mrb[49].mxu0 }
0x1330   : > { %v3074_v37 = vadd.f32 %v3542_v22, %v3073_v35  ;;  %v3922_v39 = vpop.f32.mrb[50].mxu0 }
0x1331   : > { %v3076_v38 = vpop.f32.mrb[51].mxu0 }
0x1332   : > { %v3085_v45 = vadd.f32 %v3074_v37, %v5209_v62 }
0x1334   : > { %v3089_v46 = vsel %vm3088_vm14, %v3085_v45, 0.0 }
0x1335   : > { %3090 = vadd.xlane.f32.xlu0 %v3089_v46 }
0x13c2   : > { %v3091_v50 = vpop.xlane.xlu0 %3090 }
0x13c3   : > { %v3092_v51 = vmul.f32 0.03125, %v3091_v50 }
0x13c5   : > { %v3093_v53 = vsub.f32 %v3085_v45, %v3092_v51 }
0x13c7   : > { %v3094_v62 = vmul.f32 %v4555_v29, %v3093_v53  ;;  %v4112_v29 = vld [vmem:[%s5418_s17 + $0x20] sm:$0xff]  }
0x13c8   : > { %3932 = vmatpush3.bf16.msra.mxu1 %v4112_v29 }
0x13c9   : > { %v3095_v40 = vmul.f32 %v3094_v62, %v3094_v62  ;;  %3933 = vmatprep.subr.bf16.mxu1 %v4346_v28 }
0x13cb   : > { %v3096_v48 = vsel %vm3088_vm14, %v3095_v40, 0.0 }
0x13cc   : > { %3097 = vadd.xlane.f32.xlu1 %v3096_v48  ;;  %3934 = vmatpush3.bf16.msra.mxu1 %v4113_v57 }
0x13cd   : > { %3935 = vmatprep.subr.bf16.mxu1 %v4346_v28 }
0x13d0   : > { %3936 = vmatpush3.bf16.msra.mxu1 %v4114_v59 }
0x13d1   : > { %3937 = vmatprep.subr.bf16.mxu1 %v4346_v28  ;;  %v3087_v28 = vld [vmem:[%s5417_s16] sm:$0x1] }
0x13d4   : > { %3938 = vmatpush3.bf16.msra.mxu1 %v4115_v56 }
0x1459   : > { %v3098_v54 = vpop.xlane.xlu1 %3097 }
0x145a   : > { %v3099_v44 = vmul.f32 0.03125, %v3098_v54 }
0x145c   : > { %v3100_v60 = vadd.f32 1e-06, %v3099_v44 }
0x145e   : > { %4248 = vrsqrt.f32 %v3100_v60 }
0x1468   : > { %v4249_v61 = vpop.eup %4248 }
0x1469   : > { %v3102_v47 = vmul.f32 %v4249_v61, %v3094_v62 }
0x146b   : > { %v3103_v0 = vmul.f32 %v3102_v47, %v3086_v43 }
0x146d   : > { %v3104_v63 = vadd.f32 %v3103_v0, %v3087_v28 }
0x146f   : > { %v3106_v2 = vpack.c.bf16 %v3104_v63, %v3104_v63  ;;  %3105 = vst [vmem:[%s625_s28] sm:$0x1] %v3104_v63 }
0x1471   : > { %3940 = vmatmul.mubr.bf16.vlgmr.msra.gmra.mrb[48].mxu1 %v3106_v2 }
0x1472   : > { %4263 = shalt.err (!%p4260_p3)
}
0x1473   : > { %s4264_s28 = scalar_lea.hbm %s5329_s27, 16  ;;  %s4268_s24 = scalar_lea.hbm %s5420_s19, 32 }
0x1474   : > { %p4265_p4 = scmp.ne.s32.totalorder %s5329_s27, %s4264_s28  ;;  %p4269_p9 = scmp.lt.u32.totalorder %s5329_s27, %s5420_s19 }
0x1475   : > { %p4270_p10 = scmp.lt.u32.totalorder %s4268_s24, %s4264_s28  ;;  %p4272_p12 = scmp.lt.u32.totalorder %s4264_s28, %s5329_s27 }
0x1476   : > { %p4266_p7 = pnand %p4265_p4, %p4494_p5 }
0x1477   : > { %p4271_p11 = por %p4270_p10, %p4269_p9 }
0x1478   : > { %p4267_p8 = pneg %p4266_p7 }
0x1479   : > { %p4273_p13 = por %p4272_p12, %p4271_p11 }
0x147b   : > { %p4274_p0 = pnand %p4273_p13, %p4267_p8 }
0x147d   : > { %4277 = shalt.err (!%p4274_p0)
}
0x147e   : > { %3946 = dma.vmem_to_hbm [thread:$0]  (%p4494_p5), %s3231_s1, 16, %s5329_s27, %s3214_s3   ;;  %v3123_v31 = vld [vmem:[%s5419_s18] sm:$0x1] }
0x147f   : > { %s631_s25 = scalar_lea.vmem [#allocation4], %s5317_s29  ;;  %s5458_s28 = sshll.u32 %s4477_s2, 4 }
0x1480   : > { %s3243_s23 = sshll.u32 %s631_s25, 4  ;;  %s5358_s5 = scalar_lea.hbm %s5421_s20, %s5458_s28  ;;  %s5360_s23 = int_to_ptr.vmem [resolvable:$true] %s3243_s23 }
0x1481   : > { %s3218_s27 = scalar_lea.sflag [#allocation5], %s5317_s29  ;;  %s4278_s1 = scalar_lea.vmem %s5360_s23, 16 }
0x1482   : > { %p4279_p1 = scmp.ne.s32.totalorder %s5360_s23, %s4278_s1  ;;  %s4350_s2 = smov [#allocation4]  }
0x1483   : > { %s4282_s3 = sshll.u32 %s4350_s2, 4  ;;  %s4283_s3 = int_to_ptr.vmem [resolvable:$false] %s4282_s3 }
0x1484   : > { %p4280_p2 = pnand %p4279_p1, %p4494_p5  ;;  %s4284_s6 = scalar_lea.vmem %s4283_s3, 32 }
0x1485   : > { %p4285_p4 = scmp.lt.s32.totalorder %s5360_s23, %s4283_s3  ;;  %p4286_p7 = scmp.lt.s32.totalorder %s4284_s6, %s4278_s1 }
0x1486   : > { %p4281_p3 = pneg %p4280_p2 }
0x1487   : > { %p4287_p8 = por %p4286_p7, %p4285_p4 }
0x1489   : > { %p4288_p9 = pnand %p4287_p8, %p4281_p3 }
0x1544   : > { %v3206_v33 = vpop.f32.mrb[48].mxu1 }
0x1545   : > { %v3207_v17 = vadd.f32 %v3206_v33, %v3123_v31  ;;  %v3941_v52 = vpop.f32.mrb[49].mxu1 }
0x1546   : > { %v3209_v58 = vpop.f32.mrb[50].mxu1 }
0x1547   : > { %3212 = vst [vmem:[%s631_s25] sm:$0x1] %v3207_v17  ;;  %v3942_v11 = vpop.f32.mrb[51].mxu1 }
0x1548   : > { %4291 = shalt.err (!%p4288_p9)
}
0x1549   : > { %s4292_s29 = scalar_lea.hbm %s5358_s5, 16  ;;  %s4296_s28 = scalar_lea.hbm %s5421_s20, 32 }
0x154a   : > { %p4293_p10 = scmp.ne.s32.totalorder %s5358_s5, %s4292_s29  ;;  %p4297_p13 = scmp.lt.u32.totalorder %s5358_s5, %s5421_s20 }
0x154b   : > { %p4298_p0 = scmp.lt.u32.totalorder %s4296_s28, %s4292_s29  ;;  %p4300_p2 = scmp.lt.u32.totalorder %s4292_s29, %s5358_s5 }
0x154c   : > { %p4294_p11 = pnand %p4293_p10, %p4494_p5 }
0x154d   : > { %p4299_p1 = por %p4298_p0, %p4297_p13 }
0x154e   : > { %p4295_p12 = pneg %p4294_p11 }
0x154f   : > { %p4301_p3 = por %p4300_p2, %p4299_p1 }
0x1551   : > { %p4302_p4 = pnand %p4301_p3, %p4295_p12 }
0x1553   : > { %4305 = shalt.err (!%p4302_p4)
}
0x1554   : > { %3947 = dma.vmem_to_hbm [thread:$0]  (%p4494_p5), %s5360_s23, 16, %s5358_s5, %s3218_s27  }
0x1555 PF: > { %s5459_s1 = sld [smem:[#allocation10_spill]]  ;;  %s5460_s2 = sld [smem:[#allocation8_spill]] }
0x155b   : > { %p3957_p7 = scmp.ge.s32.totalorder %s5459_s1, 2  ;;  %s3255_s6 = sand.u32 1, %s5460_s2  }
0x155c   : > { %s3256_s0 = scalar_lea.sflag [#allocation3], %s3255_s6 }
0x155d   : > { %p3951_p8 = pnand %p3957_p7, %p4498_p6 }
0x155f   : > { %4323 = dma.done.wait (!%p3951_p8), %s3256_s0, 16  }
0x1560   : > { %4325 = vsyncadd (!%p3951_p8), %s3256_s0, 4294967280  ;;  %s3264_s29 = scalar_lea.sflag [#allocation5], %s3255_s6 }
0x1561   : > { %4327 = dma.done.wait (!%p3951_p8), %s3264_s29, 16  }
0x1562   : > { %4329 = vsyncadd (!%p3951_p8), %s3264_s29, 4294967280  ;;  %s5462_s24 = sld [smem:[#allocation11_spill]]  ;;  %s5463_s4 = sld [smem:[#allocation9_spill]] }
0x1563   : > { %s5464_s23 = sld [smem:[#allocation12_spill]]  ;;  %s5465_s1 = smov %s4336_s22 }
0x1568   : > { %p34_p5 = scmp.ge.s32.totalorder %s5462_s24, 4   ;;  %s5466_s22 = smov %s5463_s4 }
0x156a   :  { %36 = sbr.rel (!%p34_p5) target bundleno = 13 (0xd), region = 160 }
0x1571   :  { %3268 = vsyncpa [#allocation3], 1 }
0x1572   :  { %3270 = vsyncpa [#allocation3 + $0x1], 1 }
0x1573   :  { %3271 = vsyncpa [#allocation5], 1 }
0x1574   :  { %3273 = vsyncpa [#allocation5 + $0x1], 1 }

</bundles_post_ra>
